<compile_context>
chip_gen: v7x
topology: tpu7x:2x2x1
jax: 0.10.0
libtpu: 0.0.40
codegen_flags: <defaults>
</compile_context>

<pallas_src>
import numpy as np

import jax
import jax.numpy as jnp
from jax.experimental import pallas as pl
from jax.experimental.pallas import tpu as pltpu


# ----------------------------------------------------------------------------
# Model configuration (matches the PyTorch module's hard constraints)
# ----------------------------------------------------------------------------
NUM_CONV = 3
CONV_DIM = 8
NUM_CLASSES = 4
LATENT_DIM = 128
IMG = 28
ENC_SIDE = {1: 14, 2: 7, 3: 4, 4: 2}[NUM_CONV]  # = 4

PACKED_KEYS = (
    "e1_r", "e1_m", "e1_b",
    "e2_r", "e2_m", "e2_b",
    "e3_r", "e3_m", "e3_b",
    "wmv", "bmv", "wfz", "wfc", "bfc",
    "d1_r", "d1_m", "d1_b",
    "d2_r", "d2_m", "d2_b",
    "d3_r", "d3_m", "d3_b",
    "oc_r", "oc_m", "oc_b",
)


# ----------------------------------------------------------------------------
# Fused Pallas kernel (one program = one image of the batch)
# ----------------------------------------------------------------------------
def _cvae_fused_kernel(
    x_ref,          # (1, 28, 28) f32   input mask
    aux_ref,        # (1, 1, 132) f32   [eps(128) | onehot(4)]
    e1_r, e1_m, e1_b,   # (3,14,30)  (3,30,112)  bf16 ; (1,112) f32
    e2_r, e2_m, e2_b,   # (3,7,16)   (3,128,56)        ; (1,56)
    e3_r, e3_m, e3_b,   # (3,4,9)    (3,72,32)         ; (1,32)
    wmv_ref, bmv_ref,   # (128,256) bf16 ; (1,256) f32   [means | log_vars]
    wfz_ref, wfc_ref, bfc_ref,  # (128,128) (4,128) bf16 ; (1,128) f32
    d1_r, d1_m, d1_b,   # (2,8,4)    (2,32,64)         ; (1,64)
    d2_r, d2_m, d2_b,   # (2,16,8)   (2,64,128)        ; (1,112)
    d3_r, d3_m, d3_b,   # (2,28,14)  (2,112,224)       ; (1,224)
    oc_r, oc_m, oc_b,   # (3,28,30)  (3,240,28)        ; (1,28)
    recon_ref,      # (1, 28, 28) f32
    mean_ref,       # (1, 1, 128) f32
    logvar_ref,     # (1, 1, 128) f32
    a0, a1, a2, d2s, a4, xd,   # VMEM scratch (f32)
):
    f32, bf16 = jnp.float32, jnp.bfloat16

    def conv_taps(act, r_ref, m_ref):
        """sum_t  R[t] @ act @ M[t]   (bf16 operands, f32 accumulation)."""
        a16 = act.astype(bf16)
        acc = None
        for t in range(r_ref.shape[0]):
            sel = jnp.dot(r_ref[t], a16, preferred_element_type=f32).astype(bf16)
            part = jnp.dot(sel, m_ref[t], preferred_element_type=f32)
            acc = part if acc is None else acc + part
        return acc

    def relu(v):
        return jnp.maximum(v, 0.0)

    # ---------------- encoder: 3 x (conv3x3 s2 p1 + bias + relu) -------------
    a0[...] = jnp.zeros(a0.shape, f32)               # padded (30, 30)
    a0[1:29, 1:29] = x_ref[0]
    h1 = relu(conv_taps(a0[...], e1_r, e1_m) + e1_b[...])        # (14, 14*8)

    a1[...] = jnp.zeros(a1.shape, f32)               # padded (16, 16*8)
    a1[1:15, 8:120] = h1
    h2 = relu(conv_taps(a1[...], e2_r, e2_m) + e2_b[...])        # (7, 7*8)

    a2[...] = jnp.zeros(a2.shape, f32)               # padded (9, 9*8)
    a2[1:8, 8:64] = h2
    h3 = relu(conv_taps(a2[...], e3_r, e3_m) + e3_b[...])        # (4, 4*8)

    # ---------------- latent heads (means | log_vars fused) ------------------
    h3_16 = h3.astype(bf16)
    hv = None
    for hrow in range(4):                            # flatten (4,32) -> (1,128)
        p = jnp.dot(h3_16[hrow:hrow + 1, :],
                    wmv_ref[32 * hrow:32 * (hrow + 1), :],
                    preferred_element_type=f32)
        hv = p if hv is None else hv + p
    hv = hv + bmv_ref[...]                           # (1, 256)
    mu = hv[:, :128]
    lv = hv[:, 128:]
    mean_ref[0] = mu
    logvar_ref[0] = lv

    # ---------------- reparameterization + class-conditioned fc --------------
    aux = aux_ref[0]                                 # (1, 132)
    eps = aux[:, :128]
    onehot = aux[:, 128:132]
    z = eps * jnp.exp(0.5 * lv) + mu                 # (1, 128)

    hfc = (jnp.dot(z.astype(bf16), wfz_ref[...], preferred_element_type=f32)
           + jnp.dot(onehot.astype(bf16), wfc_ref[...], preferred_element_type=f32)
           + bfc_ref[...])                           # (1, 128)

    for hrow in range(4):                            # (1,128) -> (4, 32)
        xd[hrow:hrow + 1, :] = hfc[:, 32 * hrow:32 * (hrow + 1)]
    xdec = xd[...]                                   # (4, 4*8)

    # ---------------- decoder: 3 x (convT 2x2 s2 (+crop) + bias + relu) ------
    d1o = relu(conv_taps(xdec, d1_r, d1_m) + d1_b[...])          # (8, 8*8)

    d2s[...] = conv_taps(d1o, d2_r, d2_m)                        # (16, 16*8) full
    d2o = relu(d2s[1:15, 8:120] + d2_b[...])                     # crop pad=1 -> (14, 14*8)

    d3o = relu(conv_taps(d2o, d3_r, d3_m) + d3_b[...])           # (28, 28*8)

    # ---------------- outconv 3x3 s1 p1 + sigmoid -----------------------------
    a4[...] = jnp.zeros(a4.shape, f32)               # padded (30, 30*8)
    a4[1:29, 8:232] = d3o
    logits = conv_taps(a4[...], oc_r, oc_m) + oc_b[...]          # (28, 28)
    recon_ref[0] = pl.reciprocal(1.0 + jnp.exp(-logits), approx=True)


# ----------------------------------------------------------------------------
# Forward wrapper: one pallas_call for the whole network
# ----------------------------------------------------------------------------
@jax.jit
def cvae_forward(packed, x_nchw, c, eps):
    B = x_nchw.shape[0]
    x2d = x_nchw.reshape(B, IMG, IMG).astype(jnp.float32)

    iota = jax.lax.broadcasted_iota(jnp.int32, (B, NUM_CLASSES), 1)
    onehot = jnp.where(iota == c[:, None].astype(jnp.int32), 1.0, -1.0)
    aux = jnp.concatenate([eps.astype(jnp.float32), onehot], axis=1)[:, None, :]

    weights = [packed[k] for k in PACKED_KEYS]

    def _wspec(a):
        if a.ndim == 2:
            return pl.BlockSpec(a.shape, lambda b: (0, 0))
        return pl.BlockSpec(a.shape, lambda b: (0, 0, 0))

    in_specs = [
        pl.BlockSpec((1, IMG, IMG), lambda b: (b, 0, 0)),
        pl.BlockSpec((1, 1, LATENT_DIM + NUM_CLASSES), lambda b: (b, 0, 0)),
    ] + [_wspec(w) for w in weights]

    out_shape = (
        jax.ShapeDtypeStruct((B, IMG, IMG), jnp.float32),
        jax.ShapeDtypeStruct((B, 1, LATENT_DIM), jnp.float32),
        jax.ShapeDtypeStruct((B, 1, LATENT_DIM), jnp.float32),
    )
    out_specs = (
        pl.BlockSpec((1, IMG, IMG), lambda b: (b, 0, 0)),
        pl.BlockSpec((1, 1, LATENT_DIM), lambda b: (b, 0, 0)),
        pl.BlockSpec((1, 1, LATENT_DIM), lambda b: (b, 0, 0)),
    )
    scratch_shapes = [
        pltpu.VMEM((30, 30), jnp.float32),    # padded input image
        pltpu.VMEM((16, 128), jnp.float32),   # padded enc1 output
        pltpu.VMEM((9, 72), jnp.float32),     # padded enc2 output
        pltpu.VMEM((16, 128), jnp.float32),   # deconv2 full output (pre-crop)
        pltpu.VMEM((30, 240), jnp.float32),   # padded dec3 output
        pltpu.VMEM((4, 32), jnp.float32),     # decoder input (fc reshaped)
    ]

    recon, means, log_vars = pl.pallas_call(
        _cvae_fused_kernel,
        out_shape=out_shape,
        grid=(B,),
        in_specs=in_specs,
        out_specs=out_specs,
        scratch_shapes=scratch_shapes,
        compiler_params=pltpu.CompilerParams(dimension_semantics=("parallel",)),
    )(x2d, aux, *weights)

    return recon[:, None, :, :], means[:, 0, :], log_vars[:, 0, :]


# ----------------------------------------------------------------------------
# One-time weight packing (hoisted out of the forward, per the perf review)
# ----------------------------------------------------------------------------
def pack_params(params):
    bf, f32 = jnp.bfloat16, jnp.float32
    packed = {}

    def conv_pack(w, b, hin, win, stride):
        # PyTorch Conv2d weight (Cout, Cin, 3, 3), stride s, padding 1.
        w = np.asarray(w, np.float32)
        b = np.asarray(b, np.float32)
        cout, cin, _, _ = w.shape
        hp, wp = hin + 2, win + 2
        hout = (hin + 2 - 3) // stride + 1
        wout = (win + 2 - 3) // stride + 1
        R = np.zeros((3, hout, hp), np.float32)
        M = np.zeros((3, wp * cin, wout * cout), np.float32)
        for di in range(3):
            for i in range(hout):
                R[di, i, stride * i + di] = 1.0
            for j in range(wout):
                for dj in range(3):
                    wcol = stride * j + dj
                    M[di, wcol * cin:(wcol + 1) * cin,
                      j * cout:(j + 1) * cout] = w[:, :, di, dj].T
        brow = np.tile(b, wout)[None, :]
        return jnp.asarray(R, bf), jnp.asarray(M, bf), jnp.asarray(brow, f32)

    def deconv_pack(w, b, hin, win, crop):
        # PyTorch ConvTranspose2d weight (Cin, Cout, 2, 2), stride 2, padding=crop.
        w = np.asarray(w, np.float32)
        b = np.asarray(b, np.float32)
        cin, cout, _, _ = w.shape
        hfull, wfull = 2 * hin, 2 * win
        R = np.zeros((2, hfull, hin), np.float32)
        M = np.zeros((2, win * cin, wfull * cout), np.float32)
        for di in range(2):
            for a in range(hin):
                R[di, 2 * a + di, a] = 1.0
            for bcol in range(win):
                for dj in range(2):
                    q = 2 * bcol + dj
                    M[di, bcol * cin:(bcol + 1) * cin,
                      q * cout:(q + 1) * cout] = w[:, :, di, dj]
        wout = wfull - 2 * crop
        brow = np.tile(b, wout)[None, :]
        return jnp.asarray(R, bf), jnp.asarray(M, bf), jnp.asarray(brow, f32)

    # encoder convs
    packed["e1_r"], packed["e1_m"], packed["e1_b"] = conv_pack(
        params["enc0_w"], params["enc0_b"], 28, 28, 2)
    packed["e2_r"], packed["e2_m"], packed["e2_b"] = conv_pack(
        params["enc1_w"], params["enc1_b"], 14, 14, 2)
    packed["e3_r"], packed["e3_m"], packed["e3_b"] = conv_pack(
        params["enc2_w"], params["enc2_b"], 7, 7, 2)
    # decoder deconvs (padding=1 only on the middle layer, as in the module)
    packed["d1_r"], packed["d1_m"], packed["d1_b"] = deconv_pack(
        params["dec0_w"], params["dec0_b"], 4, 4, 0)
    packed["d2_r"], packed["d2_m"], packed["d2_b"] = deconv_pack(
        params["dec1_w"], params["dec1_b"], 8, 8, 1)
    packed["d3_r"], packed["d3_m"], packed["d3_b"] = deconv_pack(
        params["dec2_w"], params["dec2_b"], 14, 14, 0)
    # outconv
    packed["oc_r"], packed["oc_m"], packed["oc_b"] = conv_pack(
        params["out_w"], params["out_b"], 28, 28, 1)

    # permutation: ours (h, w, c) flatten  ->  PyTorch NCHW (c, h, w) flatten
    side, C = ENC_SIDE, CONV_DIM
    perm = np.zeros(side * side * C, np.int64)
    for h in range(side):
        for w in range(side):
            for c_ in range(C):
                perm[(h * side + w) * C + c_] = c_ * side * side + h * side + w

    mw = np.asarray(params["mean_w"], np.float32)
    vw = np.asarray(params["logvar_w"], np.float32)
    packed["wmv"] = jnp.asarray(
        np.concatenate([mw[:, perm].T, vw[:, perm].T], axis=1), bf)   # (128, 256)
    packed["bmv"] = jnp.asarray(
        np.concatenate([np.asarray(params["mean_b"], np.float32),
                        np.asarray(params["logvar_b"], np.float32)])[None, :], f32)

    fw = np.asarray(params["fc_w"], np.float32)          # (128, 132)
    fb = np.asarray(params["fc_b"], np.float32)
    packed["wfz"] = jnp.asarray(fw[perm, :LATENT_DIM].T, bf)     # (128, 128)
    packed["wfc"] = jnp.asarray(fw[perm, LATENT_DIM:].T, bf)     # (4, 128)
    packed["bfc"] = jnp.asarray(fb[perm][None, :], f32)          # (1, 128)
    return packed


# ----------------------------------------------------------------------------
# Parameter init (PyTorch layouts, same as the nn.Module would hold)
# ----------------------------------------------------------------------------
def init_params(key):
    params = {}
    ks = iter(jax.random.split(key, 64))

    def nrm(shape, scale=0.1):
        return scale * jax.random.normal(next(ks), shape, dtype=jnp.float32)

    in_ch = 1
    for k in range(NUM_CONV):
        params[f"enc{k}_w"] = nrm((CONV_DIM, in_ch, 3, 3))     # Conv2d (Cout,Cin,kh,kw)
        params[f"enc{k}_b"] = nrm((CONV_DIM,))
        in_ch = CONV_DIM
    for k in range(NUM_CONV):
        params[f"dec{k}_w"] = nrm((CONV_DIM, CONV_DIM, 2, 2))  # ConvTranspose2d (Cin,Cout,kh,kw)
        params[f"dec{k}_b"] = nrm((CONV_DIM,))
    params["out_w"] = nrm((1, CONV_DIM, 3, 3))
    params["out_b"] = nrm((1,))

    flat_dim = CONV_DIM * ENC_SIDE * ENC_SIDE              # = 128
    params["mean_w"] = nrm((LATENT_DIM, flat_dim))          # Linear (out, in)
    params["mean_b"] = nrm((LATENT_DIM,))
    params["logvar_w"] = nrm((LATENT_DIM, flat_dim))
    params["logvar_b"] = nrm((LATENT_DIM,))
    params["fc_w"] = nrm((LATENT_DIM, flat_dim + NUM_CLASSES))
    params["fc_b"] = nrm((LATENT_DIM,))
    return params


# ----------------------------------------------------------------------------
# Pure-JAX reference (PyTorch semantics, bf16-rounded matmul operands to match
# the kernel's MXU inputs) -- used only as a correctness tripwire.
# ----------------------------------------------------------------------------
def _rdot(a, w):
    return jnp.dot(a.astype(jnp.bfloat16).astype(jnp.float32),
                   w.astype(jnp.bfloat16).astype(jnp.float32))


def _ref_im2col(x_nhwc, ksize, stride, pad):
    N, H, W, C = x_nhwc.shape
    xp = jnp.pad(x_nhwc, ((0, 0), (pad, pad), (pad, pad), (0, 0)))
    Ho = (H + 2 * pad - ksize) // stride + 1
    Wo = (W + 2 * pad - ksize) // stride + 1
    patches = []
    for di in range(ksize):
        for dj in range(ksize):
            patches.append(xp[:, di:di + stride * Ho:stride, dj:dj + stride * Wo:stride, :])
    cols = jnp.stack(patches, axis=-2)
    return cols.reshape(N, Ho, Wo, ksize * ksize * C), Ho, Wo


def _ref_conv3x3(x_nhwc, W, b, stride, pad, act):
    Cout, Cin, kh, kw = W.shape
    Nb = x_nhwc.shape[0]
    cols, Ho, Wo = _ref_im2col(x_nhwc, 3, stride, pad)
    Wmat = jnp.transpose(W, (2, 3, 1, 0)).reshape(kh * kw * Cin, Cout)
    out = _rdot(cols.reshape(Nb * Ho * Wo, -1), Wmat) + b
    if act == "relu":
        out = jnp.maximum(out, 0.0)
    elif act == "sigmoid":
        out = jax.nn.sigmoid(out)
    return out.reshape(Nb, Ho, Wo, Cout)


def _ref_deconv2x2(x_nhwc, W, b, crop):
    Nb, H, Wd, Cin = x_nhwc.shape
    _, Cout, kh, kw = W.shape
    Wmat = jnp.transpose(W, (0, 2, 3, 1)).reshape(Cin, kh * kw * Cout)
    btile = jnp.tile(b, kh * kw)
    out = _rdot(x_nhwc.reshape(Nb * H * Wd, Cin), Wmat) + btile
    out = out.reshape(Nb, H, Wd, kh, kw, Cout)
    out = jnp.transpose(out, (0, 1, 3, 2, 4, 5)).reshape(Nb, 2 * H, 2 * Wd, Cout)
    if crop > 0:
        out = out[:, crop:-crop, crop:-crop, :]
    return jnp.maximum(out, 0.0)


def ref_forward(params, x_nchw, c, eps):
    B = x_nchw.shape[0]
    x = jnp.transpose(x_nchw, (0, 2, 3, 1))
    for k in range(NUM_CONV):
        x = _ref_conv3x3(x, params[f"enc{k}_w"], params[f"enc{k}_b"], 2, 1, "relu")
    side = x.shape[1]
    x_flat = jnp.transpose(x, (0, 3, 1, 2)).reshape(B, -1)
    means = _rdot(x_flat, params["mean_w"].T) + params["mean_b"]
    log_vars = _rdot(x_flat, params["logvar_w"].T) + params["logvar_b"]
    z = eps * jnp.exp(0.5 * log_vars) + means
    iota = jax.lax.broadcasted_iota(jnp.int32, (B, NUM_CLASSES), 1)
    oh = jnp.where(iota == c[:, None].astype(jnp.int32), 1.0, -1.0)
    zc = jnp.concatenate([z, oh], axis=1)
    h = _rdot(zc, params["fc_w"].T) + params["fc_b"]
    h = h.reshape(B, CONV_DIM, side, side)
    x = jnp.transpose(h, (0, 2, 3, 1))
    for k in range(NUM_CONV):
        crop = 1 if (k == NUM_CONV - 2 and NUM_CONV > 2) else 0
        x = _ref_deconv2x2(x, params[f"dec{k}_w"], params[f"dec{k}_b"], crop)
    x = _ref_conv3x3(x, params["out_w"], params["out_b"], 1, 1, "sigmoid")
    return jnp.transpose(x, (0, 3, 1, 2)), means, log_vars


# ----------------------------------------------------------------------------
if __name__ == "__main__":
    key = jax.random.PRNGKey(0)
    k_param, k_x, k_c, k_eps = jax.random.split(key, 4)

    B = 2
    params = init_params(k_param)
    packed = pack_params(params)                 # one-time weight packing

    x = jax.random.uniform(k_x, (B, 1, IMG, IMG), dtype=jnp.float32)
    c = jax.random.randint(k_c, (B,), 0, NUM_CLASSES)
    # TODO(synk): torch.randn is drawn inside the PyTorch forward; here eps is
    # drawn deterministically outside and passed in (pltpu.prng_* could be used
    # in-kernel if on-device randomness is required).
    eps = jax.random.normal(k_eps, (B, LATENT_DIM), dtype=jnp.float32)

    recon, means, log_vars = cvae_forward(packed, x, c, eps)
    jax.block_until_ready((recon, means, log_vars))

    assert recon.shape == (B, 1, IMG, IMG)
    assert means.shape == (B, LATENT_DIM)
    assert log_vars.shape == (B, LATENT_DIM)

    r_want, m_want, lv_want = ref_forward(params, x, c, eps)
    for got, want in ((recon, r_want), (means, m_want), (log_vars, lv_want)):
        err = float(jnp.max(jnp.abs(got - want)))
        assert np.isfinite(err) and err < 2e-2, f"max abs err {err}"

    print("KERNEL_OK")
</pallas_src>

<mosaic_0001>
module attributes {stable_mosaic.version = 11 : i64} {
  func.func @_cvae_fused_kernel(%arg0: i32, %arg1: memref<1x28x28xf32, #tpu.memory_space<vmem>>, %arg2: memref<1x1x132xf32, #tpu.memory_space<vmem>>, %arg3: memref<3x14x30xbf16, #tpu.memory_space<vmem>>, %arg4: memref<3x30x112xbf16, #tpu.memory_space<vmem>>, %arg5: memref<1x112xf32, #tpu.memory_space<vmem>>, %arg6: memref<3x7x16xbf16, #tpu.memory_space<vmem>>, %arg7: memref<3x128x56xbf16, #tpu.memory_space<vmem>>, %arg8: memref<1x56xf32, #tpu.memory_space<vmem>>, %arg9: memref<3x4x9xbf16, #tpu.memory_space<vmem>>, %arg10: memref<3x72x32xbf16, #tpu.memory_space<vmem>>, %arg11: memref<1x32xf32, #tpu.memory_space<vmem>>, %arg12: memref<128x256xbf16, #tpu.memory_space<vmem>>, %arg13: memref<1x256xf32, #tpu.memory_space<vmem>>, %arg14: memref<128x128xbf16, #tpu.memory_space<vmem>>, %arg15: memref<4x128xbf16, #tpu.memory_space<vmem>>, %arg16: memref<1x128xf32, #tpu.memory_space<vmem>>, %arg17: memref<2x8x4xbf16, #tpu.memory_space<vmem>>, %arg18: memref<2x32x64xbf16, #tpu.memory_space<vmem>>, %arg19: memref<1x64xf32, #tpu.memory_space<vmem>>, %arg20: memref<2x16x8xbf16, #tpu.memory_space<vmem>>, %arg21: memref<2x64x128xbf16, #tpu.memory_space<vmem>>, %arg22: memref<1x112xf32, #tpu.memory_space<vmem>>, %arg23: memref<2x28x14xbf16, #tpu.memory_space<vmem>>, %arg24: memref<2x112x224xbf16, #tpu.memory_space<vmem>>, %arg25: memref<1x224xf32, #tpu.memory_space<vmem>>, %arg26: memref<3x28x30xbf16, #tpu.memory_space<vmem>>, %arg27: memref<3x240x28xbf16, #tpu.memory_space<vmem>>, %arg28: memref<1x28xf32, #tpu.memory_space<vmem>>, %arg29: memref<1x28x28xf32, #tpu.memory_space<vmem>>, %arg30: memref<1x1x128xf32, #tpu.memory_space<vmem>>, %arg31: memref<1x1x128xf32, #tpu.memory_space<vmem>>, %arg32: memref<30x30xf32, #tpu.memory_space<vmem>>, %arg33: memref<16x128xf32, #tpu.memory_space<vmem>>, %arg34: memref<9x72xf32, #tpu.memory_space<vmem>>, %arg35: memref<16x128xf32, #tpu.memory_space<vmem>>, %arg36: memref<30x240xf32, #tpu.memory_space<vmem>>, %arg37: memref<4x32xf32, #tpu.memory_space<vmem>>) attributes {dimension_semantics = [#tpu.dimension_semantics<parallel>], iteration_bounds = array<i64: 2>, scalar_prefetch = 0 : i64, scratch_operands = 6 : i64, tpu.core_type = #tpu.core_type<tc>, window_params = [{transform_indices = @transform_0, window_bounds = array<i64: 1, 28, 28>}, {transform_indices = @transform_1, window_bounds = array<i64: 1, 1, 132>}, {pipeline_mode = #tpu.pipeline_mode<synchronous>, transform_indices = @transform_2, window_bounds = array<i64: 3, 14, 30>}, {pipeline_mode = #tpu.pipeline_mode<synchronous>, transform_indices = @transform_3, window_bounds = array<i64: 3, 30, 112>}, {pipeline_mode = #tpu.pipeline_mode<synchronous>, transform_indices = @transform_4, window_bounds = array<i64: 1, 112>}, {pipeline_mode = #tpu.pipeline_mode<synchronous>, transform_indices = @transform_5, window_bounds = array<i64: 3, 7, 16>}, {pipeline_mode = #tpu.pipeline_mode<synchronous>, transform_indices = @transform_6, window_bounds = array<i64: 3, 128, 56>}, {pipeline_mode = #tpu.pipeline_mode<synchronous>, transform_indices = @transform_7, window_bounds = array<i64: 1, 56>}, {pipeline_mode = #tpu.pipeline_mode<synchronous>, transform_indices = @transform_8, window_bounds = array<i64: 3, 4, 9>}, {pipeline_mode = #tpu.pipeline_mode<synchronous>, transform_indices = @transform_9, window_bounds = array<i64: 3, 72, 32>}, {pipeline_mode = #tpu.pipeline_mode<synchronous>, transform_indices = @transform_10, window_bounds = array<i64: 1, 32>}, {pipeline_mode = #tpu.pipeline_mode<synchronous>, transform_indices = @transform_11, window_bounds = array<i64: 128, 256>}, {pipeline_mode = #tpu.pipeline_mode<synchronous>, transform_indices = @transform_12, window_bounds = array<i64: 1, 256>}, {pipeline_mode = #tpu.pipeline_mode<synchronous>, transform_indices = @transform_13, window_bounds = array<i64: 128, 128>}, {pipeline_mode = #tpu.pipeline_mode<synchronous>, transform_indices = @transform_14, window_bounds = array<i64: 4, 128>}, {pipeline_mode = #tpu.pipeline_mode<synchronous>, transform_indices = @transform_15, window_bounds = array<i64: 1, 128>}, {pipeline_mode = #tpu.pipeline_mode<synchronous>, transform_indices = @transform_16, window_bounds = array<i64: 2, 8, 4>}, {pipeline_mode = #tpu.pipeline_mode<synchronous>, transform_indices = @transform_17, window_bounds = array<i64: 2, 32, 64>}, {pipeline_mode = #tpu.pipeline_mode<synchronous>, transform_indices = @transform_18, window_bounds = array<i64: 1, 64>}, {pipeline_mode = #tpu.pipeline_mode<synchronous>, transform_indices = @transform_19, window_bounds = array<i64: 2, 16, 8>}, {pipeline_mode = #tpu.pipeline_mode<synchronous>, transform_indices = @transform_20, window_bounds = array<i64: 2, 64, 128>}, {pipeline_mode = #tpu.pipeline_mode<synchronous>, transform_indices = @transform_21, window_bounds = array<i64: 1, 112>}, {pipeline_mode = #tpu.pipeline_mode<synchronous>, transform_indices = @transform_22, window_bounds = array<i64: 2, 28, 14>}, {pipeline_mode = #tpu.pipeline_mode<synchronous>, transform_indices = @transform_23, window_bounds = array<i64: 2, 112, 224>}, {pipeline_mode = #tpu.pipeline_mode<synchronous>, transform_indices = @transform_24, window_bounds = array<i64: 1, 224>}, {pipeline_mode = #tpu.pipeline_mode<synchronous>, transform_indices = @transform_25, window_bounds = array<i64: 3, 28, 30>}, {pipeline_mode = #tpu.pipeline_mode<synchronous>, transform_indices = @transform_26, window_bounds = array<i64: 3, 240, 28>}, {pipeline_mode = #tpu.pipeline_mode<synchronous>, transform_indices = @transform_27, window_bounds = array<i64: 1, 28>}, {transform_indices = @transform_28, window_bounds = array<i64: 1, 28, 28>}, {transform_indices = @transform_29, window_bounds = array<i64: 1, 1, 128>}, {transform_indices = @transform_30, window_bounds = array<i64: 1, 1, 128>}]} {
    %cst = arith.constant 0.000000e+00 : f32
    %0 = vector.broadcast %cst : f32 to vector<30x30xf32>
    %c0 = arith.constant 0 : index
    %c0_0 = arith.constant 0 : index
    %1 = vector.load %arg32[%c0, %c0_0] : memref<30x30xf32, #tpu.memory_space<vmem>>, vector<30x30xf32>
    tpu.vector_store %arg32[%c0, %c0_0], %0 {strides = array<i32>} : memref<30x30xf32, #tpu.memory_space<vmem>>, vector<30x30xf32>,
    %c0_1 = arith.constant 0 : index
    %c0_2 = arith.constant 0 : index
    %c0_3 = arith.constant 0 : index
    %2 = vector.load %arg1[%c0_1, %c0_2, %c0_3] : memref<1x28x28xf32, #tpu.memory_space<vmem>>, vector<1x28x28xf32>
    %3 = vector.shape_cast %2 : vector<1x28x28xf32> to vector<28x28xf32>
    %c1 = arith.constant 1 : index
    %c1_4 = arith.constant 1 : index
    %4 = vector.load %arg32[%c1, %c1_4] : memref<30x30xf32, #tpu.memory_space<vmem>>, vector<28x28xf32>
    tpu.vector_store %arg32[%c1, %c1_4], %3 {strides = array<i32>} : memref<30x30xf32, #tpu.memory_space<vmem>>, vector<28x28xf32>,
    %c0_5 = arith.constant 0 : index
    %c0_6 = arith.constant 0 : index
    %5 = vector.load %arg32[%c0_5, %c0_6] : memref<30x30xf32, #tpu.memory_space<vmem>>, vector<30x30xf32>
    %6 = arith.truncf %5 : vector<30x30xf32> to vector<30x30xbf16>
    %c0_7 = arith.constant 0 : index
    %c0_8 = arith.constant 0 : index
    %c0_9 = arith.constant 0 : index
    %7 = vector.load %arg3[%c0_7, %c0_8, %c0_9] : memref<3x14x30xbf16, #tpu.memory_space<vmem>>, vector<1x14x30xbf16>
    %8 = vector.shape_cast %7 : vector<1x14x30xbf16> to vector<14x30xbf16>
    %cst_10 = arith.constant dense<0.000000e+00> : vector<14x30xf32>
    %9 = tpu.matmul %8, %6, %cst_10 {dimension_numbers = #tpu.dot_dimension_numbers<[1], [0], [0], [1], [0, 0, 1, 1], [], []>} : vector<14x30xbf16>, vector<30x30xbf16>, vector<14x30xf32> -> vector<14x30xf32>
    %10 = arith.truncf %9 : vector<14x30xf32> to vector<14x30xbf16>
    %c0_11 = arith.constant 0 : index
    %c0_12 = arith.constant 0 : index
    %c0_13 = arith.constant 0 : index
    %11 = vector.load %arg4[%c0_11, %c0_12, %c0_13] : memref<3x30x112xbf16, #tpu.memory_space<vmem>>, vector<1x30x112xbf16>
    %12 = vector.shape_cast %11 : vector<1x30x112xbf16> to vector<30x112xbf16>
    %cst_14 = arith.constant dense<0.000000e+00> : vector<14x112xf32>
    %13 = tpu.matmul %10, %12, %cst_14 {dimension_numbers = #tpu.dot_dimension_numbers<[1], [0], [0], [1], [0, 0, 1, 1], [], []>} : vector<14x30xbf16>, vector<30x112xbf16>, vector<14x112xf32> -> vector<14x112xf32>
    %c1_15 = arith.constant 1 : index
    %c0_16 = arith.constant 0 : index
    %c0_17 = arith.constant 0 : index
    %14 = vector.load %arg3[%c1_15, %c0_16, %c0_17] : memref<3x14x30xbf16, #tpu.memory_space<vmem>>, vector<1x14x30xbf16>
    %15 = vector.shape_cast %14 : vector<1x14x30xbf16> to vector<14x30xbf16>
    %cst_18 = arith.constant dense<0.000000e+00> : vector<14x30xf32>
    %16 = tpu.matmul %15, %6, %cst_18 {dimension_numbers = #tpu.dot_dimension_numbers<[1], [0], [0], [1], [0, 0, 1, 1], [], []>} : vector<14x30xbf16>, vector<30x30xbf16>, vector<14x30xf32> -> vector<14x30xf32>
    %17 = arith.truncf %16 : vector<14x30xf32> to vector<14x30xbf16>
    %c1_19 = arith.constant 1 : index
    %c0_20 = arith.constant 0 : index
    %c0_21 = arith.constant 0 : index
    %18 = vector.load %arg4[%c1_19, %c0_20, %c0_21] : memref<3x30x112xbf16, #tpu.memory_space<vmem>>, vector<1x30x112xbf16>
    %19 = vector.shape_cast %18 : vector<1x30x112xbf16> to vector<30x112xbf16>
    %cst_22 = arith.constant dense<0.000000e+00> : vector<14x112xf32>
    %20 = tpu.matmul %17, %19, %cst_22 {dimension_numbers = #tpu.dot_dimension_numbers<[1], [0], [0], [1], [0, 0, 1, 1], [], []>} : vector<14x30xbf16>, vector<30x112xbf16>, vector<14x112xf32> -> vector<14x112xf32>
    %21 = arith.addf %13, %20 : vector<14x112xf32>
    %c2 = arith.constant 2 : index
    %c0_23 = arith.constant 0 : index
    %c0_24 = arith.constant 0 : index
    %22 = vector.load %arg3[%c2, %c0_23, %c0_24] : memref<3x14x30xbf16, #tpu.memory_space<vmem>>, vector<1x14x30xbf16>
    %23 = vector.shape_cast %22 : vector<1x14x30xbf16> to vector<14x30xbf16>
    %cst_25 = arith.constant dense<0.000000e+00> : vector<14x30xf32>
    %24 = tpu.matmul %23, %6, %cst_25 {dimension_numbers = #tpu.dot_dimension_numbers<[1], [0], [0], [1], [0, 0, 1, 1], [], []>} : vector<14x30xbf16>, vector<30x30xbf16>, vector<14x30xf32> -> vector<14x30xf32>
    %25 = arith.truncf %24 : vector<14x30xf32> to vector<14x30xbf16>
    %c2_26 = arith.constant 2 : index
    %c0_27 = arith.constant 0 : index
    %c0_28 = arith.constant 0 : index
    %26 = vector.load %arg4[%c2_26, %c0_27, %c0_28] : memref<3x30x112xbf16, #tpu.memory_space<vmem>>, vector<1x30x112xbf16>
    %27 = vector.shape_cast %26 : vector<1x30x112xbf16> to vector<30x112xbf16>
    %cst_29 = arith.constant dense<0.000000e+00> : vector<14x112xf32>
    %28 = tpu.matmul %25, %27, %cst_29 {dimension_numbers = #tpu.dot_dimension_numbers<[1], [0], [0], [1], [0, 0, 1, 1], [], []>} : vector<14x30xbf16>, vector<30x112xbf16>, vector<14x112xf32> -> vector<14x112xf32>
    %29 = arith.addf %21, %28 : vector<14x112xf32>
    %c0_30 = arith.constant 0 : index
    %c0_31 = arith.constant 0 : index
    %30 = vector.load %arg5[%c0_30, %c0_31] : memref<1x112xf32, #tpu.memory_space<vmem>>, vector<1x112xf32>
    %31 = vector.broadcast %30 : vector<1x112xf32> to vector<14x112xf32>
    %32 = arith.addf %29, %31 : vector<14x112xf32>
    %cst_32 = arith.constant 0.000000e+00 : f32
    %33 = vector.broadcast %cst_32 : f32 to vector<14x112xf32>
    %34 = arith.maximumf %32, %33 : vector<14x112xf32>
    %cst_33 = arith.constant 0.000000e+00 : f32
    %35 = vector.broadcast %cst_33 : f32 to vector<16x128xf32>
    %c0_34 = arith.constant 0 : index
    %c0_35 = arith.constant 0 : index
    %36 = vector.load %arg33[%c0_34, %c0_35] : memref<16x128xf32, #tpu.memory_space<vmem>>, vector<16x128xf32>
    tpu.vector_store %arg33[%c0_34, %c0_35], %35 {strides = array<i32>} : memref<16x128xf32, #tpu.memory_space<vmem>>, vector<16x128xf32>,
    %c1_36 = arith.constant 1 : index
    %c8 = arith.constant 8 : index
    %37 = vector.load %arg33[%c1_36, %c8] : memref<16x128xf32, #tpu.memory_space<vmem>>, vector<14x112xf32>
    tpu.vector_store %arg33[%c1_36, %c8], %34 {strides = array<i32>} : memref<16x128xf32, #tpu.memory_space<vmem>>, vector<14x112xf32>,
    %c0_37 = arith.constant 0 : index
    %c0_38 = arith.constant 0 : index
    %38 = vector.load %arg33[%c0_37, %c0_38] : memref<16x128xf32, #tpu.memory_space<vmem>>, vector<16x128xf32>
    %39 = arith.truncf %38 : vector<16x128xf32> to vector<16x128xbf16>
    %c0_39 = arith.constant 0 : index
    %c0_40 = arith.constant 0 : index
    %c0_41 = arith.constant 0 : index
    %40 = vector.load %arg6[%c0_39, %c0_40, %c0_41] : memref<3x7x16xbf16, #tpu.memory_space<vmem>>, vector<1x7x16xbf16>
    %41 = vector.shape_cast %40 : vector<1x7x16xbf16> to vector<7x16xbf16>
    %cst_42 = arith.constant dense<0.000000e+00> : vector<7x128xf32>
    %42 = tpu.matmul %41, %39, %cst_42 {dimension_numbers = #tpu.dot_dimension_numbers<[1], [0], [0], [1], [0, 0, 1, 1], [], []>} : vector<7x16xbf16>, vector<16x128xbf16>, vector<7x128xf32> -> vector<7x128xf32>
    %43 = arith.truncf %42 : vector<7x128xf32> to vector<7x128xbf16>
    %c0_43 = arith.constant 0 : index
    %c0_44 = arith.constant 0 : index
    %c0_45 = arith.constant 0 : index
    %44 = vector.load %arg7[%c0_43, %c0_44, %c0_45] : memref<3x128x56xbf16, #tpu.memory_space<vmem>>, vector<1x128x56xbf16>
    %45 = vector.shape_cast %44 : vector<1x128x56xbf16> to vector<128x56xbf16>
    %cst_46 = arith.constant dense<0.000000e+00> : vector<7x56xf32>
    %46 = tpu.matmul %43, %45, %cst_46 {dimension_numbers = #tpu.dot_dimension_numbers<[1], [0], [0], [1], [0, 0, 1, 1], [], []>} : vector<7x128xbf16>, vector<128x56xbf16>, vector<7x56xf32> -> vector<7x56xf32>
    %c1_47 = arith.constant 1 : index
    %c0_48 = arith.constant 0 : index
    %c0_49 = arith.constant 0 : index
    %47 = vector.load %arg6[%c1_47, %c0_48, %c0_49] : memref<3x7x16xbf16, #tpu.memory_space<vmem>>, vector<1x7x16xbf16>
    %48 = vector.shape_cast %47 : vector<1x7x16xbf16> to vector<7x16xbf16>
    %cst_50 = arith.constant dense<0.000000e+00> : vector<7x128xf32>
    %49 = tpu.matmul %48, %39, %cst_50 {dimension_numbers = #tpu.dot_dimension_numbers<[1], [0], [0], [1], [0, 0, 1, 1], [], []>} : vector<7x16xbf16>, vector<16x128xbf16>, vector<7x128xf32> -> vector<7x128xf32>
    %50 = arith.truncf %49 : vector<7x128xf32> to vector<7x128xbf16>
    %c1_51 = arith.constant 1 : index
    %c0_52 = arith.constant 0 : index
    %c0_53 = arith.constant 0 : index
    %51 = vector.load %arg7[%c1_51, %c0_52, %c0_53] : memref<3x128x56xbf16, #tpu.memory_space<vmem>>, vector<1x128x56xbf16>
    %52 = vector.shape_cast %51 : vector<1x128x56xbf16> to vector<128x56xbf16>
    %cst_54 = arith.constant dense<0.000000e+00> : vector<7x56xf32>
    %53 = tpu.matmul %50, %52, %cst_54 {dimension_numbers = #tpu.dot_dimension_numbers<[1], [0], [0], [1], [0, 0, 1, 1], [], []>} : vector<7x128xbf16>, vector<128x56xbf16>, vector<7x56xf32> -> vector<7x56xf32>
    %54 = arith.addf %46, %53 : vector<7x56xf32>
    %c2_55 = arith.constant 2 : index
    %c0_56 = arith.constant 0 : index
    %c0_57 = arith.constant 0 : index
    %55 = vector.load %arg6[%c2_55, %c0_56, %c0_57] : memref<3x7x16xbf16, #tpu.memory_space<vmem>>, vector<1x7x16xbf16>
    %56 = vector.shape_cast %55 : vector<1x7x16xbf16> to vector<7x16xbf16>
    %cst_58 = arith.constant dense<0.000000e+00> : vector<7x128xf32>
    %57 = tpu.matmul %56, %39, %cst_58 {dimension_numbers = #tpu.dot_dimension_numbers<[1], [0], [0], [1], [0, 0, 1, 1], [], []>} : vector<7x16xbf16>, vector<16x128xbf16>, vector<7x128xf32> -> vector<7x128xf32>
    %58 = arith.truncf %57 : vector<7x128xf32> to vector<7x128xbf16>
    %c2_59 = arith.constant 2 : index
    %c0_60 = arith.constant 0 : index
    %c0_61 = arith.constant 0 : index
    %59 = vector.load %arg7[%c2_59, %c0_60, %c0_61] : memref<3x128x56xbf16, #tpu.memory_space<vmem>>, vector<1x128x56xbf16>
    %60 = vector.shape_cast %59 : vector<1x128x56xbf16> to vector<128x56xbf16>
    %cst_62 = arith.constant dense<0.000000e+00> : vector<7x56xf32>
    %61 = tpu.matmul %58, %60, %cst_62 {dimension_numbers = #tpu.dot_dimension_numbers<[1], [0], [0], [1], [0, 0, 1, 1], [], []>} : vector<7x128xbf16>, vector<128x56xbf16>, vector<7x56xf32> -> vector<7x56xf32>
    %62 = arith.addf %54, %61 : vector<7x56xf32>
    %c0_63 = arith.constant 0 : index
    %c0_64 = arith.constant 0 : index
    %63 = vector.load %arg8[%c0_63, %c0_64] : memref<1x56xf32, #tpu.memory_space<vmem>>, vector<1x56xf32>
    %64 = vector.broadcast %63 : vector<1x56xf32> to vector<7x56xf32>
    %65 = arith.addf %62, %64 : vector<7x56xf32>
    %cst_65 = arith.constant 0.000000e+00 : f32
    %66 = vector.broadcast %cst_65 : f32 to vector<7x56xf32>
    %67 = arith.maximumf %65, %66 : vector<7x56xf32>
    %cst_66 = arith.constant 0.000000e+00 : f32
    %68 = vector.broadcast %cst_66 : f32 to vector<9x72xf32>
    %c0_67 = arith.constant 0 : index
    %c0_68 = arith.constant 0 : index
    %69 = vector.load %arg34[%c0_67, %c0_68] : memref<9x72xf32, #tpu.memory_space<vmem>>, vector<9x72xf32>
    tpu.vector_store %arg34[%c0_67, %c0_68], %68 {strides = array<i32>} : memref<9x72xf32, #tpu.memory_space<vmem>>, vector<9x72xf32>,
    %c1_69 = arith.constant 1 : index
    %c8_70 = arith.constant 8 : index
    %70 = vector.load %arg34[%c1_69, %c8_70] : memref<9x72xf32, #tpu.memory_space<vmem>>, vector<7x56xf32>
    tpu.vector_store %arg34[%c1_69, %c8_70], %67 {strides = array<i32>} : memref<9x72xf32, #tpu.memory_space<vmem>>, vector<7x56xf32>,
    %c0_71 = arith.constant 0 : index
    %c0_72 = arith.constant 0 : index
    %71 = vector.load %arg34[%c0_71, %c0_72] : memref<9x72xf32, #tpu.memory_space<vmem>>, vector<9x72xf32>
    %72 = arith.truncf %71 : vector<9x72xf32> to vector<9x72xbf16>
    %c0_73 = arith.constant 0 : index
    %c0_74 = arith.constant 0 : index
    %c0_75 = arith.constant 0 : index
    %73 = vector.load %arg9[%c0_73, %c0_74, %c0_75] : memref<3x4x9xbf16, #tpu.memory_space<vmem>>, vector<1x4x9xbf16>
    %74 = vector.shape_cast %73 : vector<1x4x9xbf16> to vector<4x9xbf16>
    %cst_76 = arith.constant dense<0.000000e+00> : vector<4x72xf32>
    %75 = tpu.matmul %74, %72, %cst_76 {dimension_numbers = #tpu.dot_dimension_numbers<[1], [0], [0], [1], [0, 0, 1, 1], [], []>} : vector<4x9xbf16>, vector<9x72xbf16>, vector<4x72xf32> -> vector<4x72xf32>
    %76 = arith.truncf %75 : vector<4x72xf32> to vector<4x72xbf16>
    %c0_77 = arith.constant 0 : index
    %c0_78 = arith.constant 0 : index
    %c0_79 = arith.constant 0 : index
    %77 = vector.load %arg10[%c0_77, %c0_78, %c0_79] : memref<3x72x32xbf16, #tpu.memory_space<vmem>>, vector<1x72x32xbf16>
    %78 = vector.shape_cast %77 : vector<1x72x32xbf16> to vector<72x32xbf16>
    %cst_80 = arith.constant dense<0.000000e+00> : vector<4x32xf32>
    %79 = tpu.matmul %76, %78, %cst_80 {dimension_numbers = #tpu.dot_dimension_numbers<[1], [0], [0], [1], [0, 0, 1, 1], [], []>} : vector<4x72xbf16>, vector<72x32xbf16>, vector<4x32xf32> -> vector<4x32xf32>
    %c1_81 = arith.constant 1 : index
    %c0_82 = arith.constant 0 : index
    %c0_83 = arith.constant 0 : index
    %80 = vector.load %arg9[%c1_81, %c0_82, %c0_83] : memref<3x4x9xbf16, #tpu.memory_space<vmem>>, vector<1x4x9xbf16>
    %81 = vector.shape_cast %80 : vector<1x4x9xbf16> to vector<4x9xbf16>
    %cst_84 = arith.constant dense<0.000000e+00> : vector<4x72xf32>
    %82 = tpu.matmul %81, %72, %cst_84 {dimension_numbers = #tpu.dot_dimension_numbers<[1], [0], [0], [1], [0, 0, 1, 1], [], []>} : vector<4x9xbf16>, vector<9x72xbf16>, vector<4x72xf32> -> vector<4x72xf32>
    %83 = arith.truncf %82 : vector<4x72xf32> to vector<4x72xbf16>
    %c1_85 = arith.constant 1 : index
    %c0_86 = arith.constant 0 : index
    %c0_87 = arith.constant 0 : index
    %84 = vector.load %arg10[%c1_85, %c0_86, %c0_87] : memref<3x72x32xbf16, #tpu.memory_space<vmem>>, vector<1x72x32xbf16>
    %85 = vector.shape_cast %84 : vector<1x72x32xbf16> to vector<72x32xbf16>
    %cst_88 = arith.constant dense<0.000000e+00> : vector<4x32xf32>
    %86 = tpu.matmul %83, %85, %cst_88 {dimension_numbers = #tpu.dot_dimension_numbers<[1], [0], [0], [1], [0, 0, 1, 1], [], []>} : vector<4x72xbf16>, vector<72x32xbf16>, vector<4x32xf32> -> vector<4x32xf32>
    %87 = arith.addf %79, %86 : vector<4x32xf32>
    %c2_89 = arith.constant 2 : index
    %c0_90 = arith.constant 0 : index
    %c0_91 = arith.constant 0 : index
    %88 = vector.load %arg9[%c2_89, %c0_90, %c0_91] : memref<3x4x9xbf16, #tpu.memory_space<vmem>>, vector<1x4x9xbf16>
    %89 = vector.shape_cast %88 : vector<1x4x9xbf16> to vector<4x9xbf16>
    %cst_92 = arith.constant dense<0.000000e+00> : vector<4x72xf32>
    %90 = tpu.matmul %89, %72, %cst_92 {dimension_numbers = #tpu.dot_dimension_numbers<[1], [0], [0], [1], [0, 0, 1, 1], [], []>} : vector<4x9xbf16>, vector<9x72xbf16>, vector<4x72xf32> -> vector<4x72xf32>
    %91 = arith.truncf %90 : vector<4x72xf32> to vector<4x72xbf16>
    %c2_93 = arith.constant 2 : index
    %c0_94 = arith.constant 0 : index
    %c0_95 = arith.constant 0 : index
    %92 = vector.load %arg10[%c2_93, %c0_94, %c0_95] : memref<3x72x32xbf16, #tpu.memory_space<vmem>>, vector<1x72x32xbf16>
    %93 = vector.shape_cast %92 : vector<1x72x32xbf16> to vector<72x32xbf16>
    %cst_96 = arith.constant dense<0.000000e+00> : vector<4x32xf32>
    %94 = tpu.matmul %91, %93, %cst_96 {dimension_numbers = #tpu.dot_dimension_numbers<[1], [0], [0], [1], [0, 0, 1, 1], [], []>} : vector<4x72xbf16>, vector<72x32xbf16>, vector<4x32xf32> -> vector<4x32xf32>
    %95 = arith.addf %87, %94 : vector<4x32xf32>
    %c0_97 = arith.constant 0 : index
    %c0_98 = arith.constant 0 : index
    %96 = vector.load %arg11[%c0_97, %c0_98] : memref<1x32xf32, #tpu.memory_space<vmem>>, vector<1x32xf32>
    %97 = vector.broadcast %96 : vector<1x32xf32> to vector<4x32xf32>
    %98 = arith.addf %95, %97 : vector<4x32xf32>
    %cst_99 = arith.constant 0.000000e+00 : f32
    %99 = vector.broadcast %cst_99 : f32 to vector<4x32xf32>
    %100 = arith.maximumf %98, %99 : vector<4x32xf32>
    %101 = arith.truncf %100 : vector<4x32xf32> to vector<4x32xbf16>
    %102 = vector.extract_strided_slice %101 {offsets = [0, 0], sizes = [1, 32], strides = [1, 1]} : vector<4x32xbf16> to vector<1x32xbf16>
    %c0_100 = arith.constant 0 : index
    %c0_101 = arith.constant 0 : index
    %103 = vector.load %arg12[%c0_100, %c0_101] : memref<128x256xbf16, #tpu.memory_space<vmem>>, vector<32x256xbf16>
    %cst_102 = arith.constant dense<0.000000e+00> : vector<1x256xf32>
    %104 = tpu.matmul %102, %103, %cst_102 {dimension_numbers = #tpu.dot_dimension_numbers<[1], [0], [0], [1], [0, 0, 1, 1], [], []>} : vector<1x32xbf16>, vector<32x256xbf16>, vector<1x256xf32> -> vector<1x256xf32>
    %105 = vector.extract_strided_slice %101 {offsets = [1, 0], sizes = [1, 32], strides = [1, 1]} : vector<4x32xbf16> to vector<1x32xbf16>
    %c32 = arith.constant 32 : index
    %c0_103 = arith.constant 0 : index
    %106 = vector.load %arg12[%c32, %c0_103] : memref<128x256xbf16, #tpu.memory_space<vmem>>, vector<32x256xbf16>
    %cst_104 = arith.constant dense<0.000000e+00> : vector<1x256xf32>
    %107 = tpu.matmul %105, %106, %cst_104 {dimension_numbers = #tpu.dot_dimension_numbers<[1], [0], [0], [1], [0, 0, 1, 1], [], []>} : vector<1x32xbf16>, vector<32x256xbf16>, vector<1x256xf32> -> vector<1x256xf32>
    %108 = arith.addf %104, %107 : vector<1x256xf32>
    %109 = vector.extract_strided_slice %101 {offsets = [2, 0], sizes = [1, 32], strides = [1, 1]} : vector<4x32xbf16> to vector<1x32xbf16>
    %c64 = arith.constant 64 : index
    %c0_105 = arith.constant 0 : index
    %110 = vector.load %arg12[%c64, %c0_105] : memref<128x256xbf16, #tpu.memory_space<vmem>>, vector<32x256xbf16>
    %cst_106 = arith.constant dense<0.000000e+00> : vector<1x256xf32>
    %111 = tpu.matmul %109, %110, %cst_106 {dimension_numbers = #tpu.dot_dimension_numbers<[1], [0], [0], [1], [0, 0, 1, 1], [], []>} : vector<1x32xbf16>, vector<32x256xbf16>, vector<1x256xf32> -> vector<1x256xf32>
    %112 = arith.addf %108, %111 : vector<1x256xf32>
    %113 = vector.extract_strided_slice %101 {offsets = [3, 0], sizes = [1, 32], strides = [1, 1]} : vector<4x32xbf16> to vector<1x32xbf16>
    %c96 = arith.constant 96 : index
    %c0_107 = arith.constant 0 : index
    %114 = vector.load %arg12[%c96, %c0_107] : memref<128x256xbf16, #tpu.memory_space<vmem>>, vector<32x256xbf16>
    %cst_108 = arith.constant dense<0.000000e+00> : vector<1x256xf32>
    %115 = tpu.matmul %113, %114, %cst_108 {dimension_numbers = #tpu.dot_dimension_numbers<[1], [0], [0], [1], [0, 0, 1, 1], [], []>} : vector<1x32xbf16>, vector<32x256xbf16>, vector<1x256xf32> -> vector<1x256xf32>
    %116 = arith.addf %112, %115 : vector<1x256xf32>
    %c0_109 = arith.constant 0 : index
    %c0_110 = arith.constant 0 : index
    %117 = vector.load %arg13[%c0_109, %c0_110] : memref<1x256xf32, #tpu.memory_space<vmem>>, vector<1x256xf32>
    %118 = arith.addf %116, %117 : vector<1x256xf32>
    %119 = vector.extract_strided_slice %118 {offsets = [0, 0], sizes = [1, 128], strides = [1, 1]} : vector<1x256xf32> to vector<1x128xf32>
    %120 = vector.extract_strided_slice %118 {offsets = [0, 128], sizes = [1, 128], strides = [1, 1]} : vector<1x256xf32> to vector<1x128xf32>
    %c0_111 = arith.constant 0 : index
    %c0_112 = arith.constant 0 : index
    %c0_113 = arith.constant 0 : index
    %121 = vector.load %arg30[%c0_111, %c0_112, %c0_113] : memref<1x1x128xf32, #tpu.memory_space<vmem>>, vector<1x1x128xf32>
    %122 = vector.shape_cast %121 : vector<1x1x128xf32> to vector<1x128xf32>
    %123 = vector.shape_cast %119 : vector<1x128xf32> to vector<1x1x128xf32>
    tpu.vector_store %arg30[%c0_111, %c0_112, %c0_113], %123 {strides = array<i32>} : memref<1x1x128xf32, #tpu.memory_space<vmem>>, vector<1x1x128xf32>,
    %c0_114 = arith.constant 0 : index
    %c0_115 = arith.constant 0 : index
    %c0_116 = arith.constant 0 : index
    %124 = vector.load %arg31[%c0_114, %c0_115, %c0_116] : memref<1x1x128xf32, #tpu.memory_space<vmem>>, vector<1x1x128xf32>
    %125 = vector.shape_cast %124 : vector<1x1x128xf32> to vector<1x128xf32>
    %126 = vector.shape_cast %120 : vector<1x128xf32> to vector<1x1x128xf32>
    tpu.vector_store %arg31[%c0_114, %c0_115, %c0_116], %126 {strides = array<i32>} : memref<1x1x128xf32, #tpu.memory_space<vmem>>, vector<1x1x128xf32>,
    %c0_117 = arith.constant 0 : index
    %c0_118 = arith.constant 0 : index
    %c0_119 = arith.constant 0 : index
    %127 = vector.load %arg2[%c0_117, %c0_118, %c0_119] : memref<1x1x132xf32, #tpu.memory_space<vmem>>, vector<1x1x132xf32>
    %128 = vector.shape_cast %127 : vector<1x1x132xf32> to vector<1x132xf32>
    %129 = vector.extract_strided_slice %128 {offsets = [0, 0], sizes = [1, 128], strides = [1, 1]} : vector<1x132xf32> to vector<1x128xf32>
    %130 = vector.extract_strided_slice %128 {offsets = [0, 128], sizes = [1, 4], strides = [1, 1]} : vector<1x132xf32> to vector<1x4xf32>
    %cst_120 = arith.constant 5.000000e-01 : f32
    %131 = vector.broadcast %cst_120 : f32 to vector<1x128xf32>
    %132 = arith.mulf %131, %120 : vector<1x128xf32>
    %133 = math.exp %132 : vector<1x128xf32>
    %134 = arith.mulf %129, %133 : vector<1x128xf32>
    %135 = arith.addf %134, %119 : vector<1x128xf32>
    %136 = arith.truncf %135 : vector<1x128xf32> to vector<1x128xbf16>
    %c0_121 = arith.constant 0 : index
    %c0_122 = arith.constant 0 : index
    %137 = vector.load %arg14[%c0_121, %c0_122] : memref<128x128xbf16, #tpu.memory_space<vmem>>, vector<128x128xbf16>
    %cst_123 = arith.constant dense<0.000000e+00> : vector<1x128xf32>
    %138 = tpu.matmul %136, %137, %cst_123 {dimension_numbers = #tpu.dot_dimension_numbers<[1], [0], [0], [1], [0, 0, 1, 1], [], []>} : vector<1x128xbf16>, vector<128x128xbf16>, vector<1x128xf32> -> vector<1x128xf32>
    %139 = arith.truncf %130 : vector<1x4xf32> to vector<1x4xbf16>
    %c0_124 = arith.constant 0 : index
    %c0_125 = arith.constant 0 : index
    %140 = vector.load %arg15[%c0_124, %c0_125] : memref<4x128xbf16, #tpu.memory_space<vmem>>, vector<4x128xbf16>
    %cst_126 = arith.constant dense<0.000000e+00> : vector<1x128xf32>
    %141 = tpu.matmul %139, %140, %cst_126 {dimension_numbers = #tpu.dot_dimension_numbers<[1], [0], [0], [1], [0, 0, 1, 1], [], []>} : vector<1x4xbf16>, vector<4x128xbf16>, vector<1x128xf32> -> vector<1x128xf32>
    %142 = arith.addf %138, %141 : vector<1x128xf32>
    %c0_127 = arith.constant 0 : index
    %c0_128 = arith.constant 0 : index
    %143 = vector.load %arg16[%c0_127, %c0_128] : memref<1x128xf32, #tpu.memory_space<vmem>>, vector<1x128xf32>
    %144 = arith.addf %142, %143 : vector<1x128xf32>
    %145 = vector.extract_strided_slice %144 {offsets = [0, 0], sizes = [1, 32], strides = [1, 1]} : vector<1x128xf32> to vector<1x32xf32>
    %c0_129 = arith.constant 0 : index
    %c0_130 = arith.constant 0 : index
    %146 = vector.load %arg37[%c0_129, %c0_130] : memref<4x32xf32, #tpu.memory_space<vmem>>, vector<1x32xf32>
    tpu.vector_store %arg37[%c0_129, %c0_130], %145 {strides = array<i32>} : memref<4x32xf32, #tpu.memory_space<vmem>>, vector<1x32xf32>,
    %147 = vector.extract_strided_slice %144 {offsets = [0, 32], sizes = [1, 32], strides = [1, 1]} : vector<1x128xf32> to vector<1x32xf32>
    %c1_131 = arith.constant 1 : index
    %c0_132 = arith.constant 0 : index
    %148 = vector.load %arg37[%c1_131, %c0_132] : memref<4x32xf32, #tpu.memory_space<vmem>>, vector<1x32xf32>
    tpu.vector_store %arg37[%c1_131, %c0_132], %147 {strides = array<i32>} : memref<4x32xf32, #tpu.memory_space<vmem>>, vector<1x32xf32>,
    %149 = vector.extract_strided_slice %144 {offsets = [0, 64], sizes = [1, 32], strides = [1, 1]} : vector<1x128xf32> to vector<1x32xf32>
    %c2_133 = arith.constant 2 : index
    %c0_134 = arith.constant 0 : index
    %150 = vector.load %arg37[%c2_133, %c0_134] : memref<4x32xf32, #tpu.memory_space<vmem>>, vector<1x32xf32>
    tpu.vector_store %arg37[%c2_133, %c0_134], %149 {strides = array<i32>} : memref<4x32xf32, #tpu.memory_space<vmem>>, vector<1x32xf32>,
    %151 = vector.extract_strided_slice %144 {offsets = [0, 96], sizes = [1, 32], strides = [1, 1]} : vector<1x128xf32> to vector<1x32xf32>
    %c3 = arith.constant 3 : index
    %c0_135 = arith.constant 0 : index
    %152 = vector.load %arg37[%c3, %c0_135] : memref<4x32xf32, #tpu.memory_space<vmem>>, vector<1x32xf32>
    tpu.vector_store %arg37[%c3, %c0_135], %151 {strides = array<i32>} : memref<4x32xf32, #tpu.memory_space<vmem>>, vector<1x32xf32>,
    %c0_136 = arith.constant 0 : index
    %c0_137 = arith.constant 0 : index
    %153 = vector.load %arg37[%c0_136, %c0_137] : memref<4x32xf32, #tpu.memory_space<vmem>>, vector<4x32xf32>
    %154 = arith.truncf %153 : vector<4x32xf32> to vector<4x32xbf16>
    %c0_138 = arith.constant 0 : index
    %c0_139 = arith.constant 0 : index
    %c0_140 = arith.constant 0 : index
    %155 = vector.load %arg17[%c0_138, %c0_139, %c0_140] : memref<2x8x4xbf16, #tpu.memory_space<vmem>>, vector<1x8x4xbf16>
    %156 = vector.shape_cast %155 : vector<1x8x4xbf16> to vector<8x4xbf16>
    %cst_141 = arith.constant dense<0.000000e+00> : vector<8x32xf32>
    %157 = tpu.matmul %156, %154, %cst_141 {dimension_numbers = #tpu.dot_dimension_numbers<[1], [0], [0], [1], [0, 0, 1, 1], [], []>} : vector<8x4xbf16>, vector<4x32xbf16>, vector<8x32xf32> -> vector<8x32xf32>
    %158 = arith.truncf %157 : vector<8x32xf32> to vector<8x32xbf16>
    %c0_142 = arith.constant 0 : index
    %c0_143 = arith.constant 0 : index
    %c0_144 = arith.constant 0 : index
    %159 = vector.load %arg18[%c0_142, %c0_143, %c0_144] : memref<2x32x64xbf16, #tpu.memory_space<vmem>>, vector<1x32x64xbf16>
    %160 = vector.shape_cast %159 : vector<1x32x64xbf16> to vector<32x64xbf16>
    %cst_145 = arith.constant dense<0.000000e+00> : vector<8x64xf32>
    %161 = tpu.matmul %158, %160, %cst_145 {dimension_numbers = #tpu.dot_dimension_numbers<[1], [0], [0], [1], [0, 0, 1, 1], [], []>} : vector<8x32xbf16>, vector<32x64xbf16>, vector<8x64xf32> -> vector<8x64xf32>
    %c1_146 = arith.constant 1 : index
    %c0_147 = arith.constant 0 : index
    %c0_148 = arith.constant 0 : index
    %162 = vector.load %arg17[%c1_146, %c0_147, %c0_148] : memref<2x8x4xbf16, #tpu.memory_space<vmem>>, vector<1x8x4xbf16>
    %163 = vector.shape_cast %162 : vector<1x8x4xbf16> to vector<8x4xbf16>
    %cst_149 = arith.constant dense<0.000000e+00> : vector<8x32xf32>
    %164 = tpu.matmul %163, %154, %cst_149 {dimension_numbers = #tpu.dot_dimension_numbers<[1], [0], [0], [1], [0, 0, 1, 1], [], []>} : vector<8x4xbf16>, vector<4x32xbf16>, vector<8x32xf32> -> vector<8x32xf32>
    %165 = arith.truncf %164 : vector<8x32xf32> to vector<8x32xbf16>
    %c1_150 = arith.constant 1 : index
    %c0_151 = arith.constant 0 : index
    %c0_152 = arith.constant 0 : index
    %166 = vector.load %arg18[%c1_150, %c0_151, %c0_152] : memref<2x32x64xbf16, #tpu.memory_space<vmem>>, vector<1x32x64xbf16>
    %167 = vector.shape_cast %166 : vector<1x32x64xbf16> to vector<32x64xbf16>
    %cst_153 = arith.constant dense<0.000000e+00> : vector<8x64xf32>
    %168 = tpu.matmul %165, %167, %cst_153 {dimension_numbers = #tpu.dot_dimension_numbers<[1], [0], [0], [1], [0, 0, 1, 1], [], []>} : vector<8x32xbf16>, vector<32x64xbf16>, vector<8x64xf32> -> vector<8x64xf32>
    %169 = arith.addf %161, %168 : vector<8x64xf32>
    %c0_154 = arith.constant 0 : index
    %c0_155 = arith.constant 0 : index
    %170 = vector.load %arg19[%c0_154, %c0_155] : memref<1x64xf32, #tpu.memory_space<vmem>>, vector<1x64xf32>
    %171 = vector.broadcast %170 : vector<1x64xf32> to vector<8x64xf32>
    %172 = arith.addf %169, %171 : vector<8x64xf32>
    %cst_156 = arith.constant 0.000000e+00 : f32
    %173 = vector.broadcast %cst_156 : f32 to vector<8x64xf32>
    %174 = arith.maximumf %172, %173 : vector<8x64xf32>
    %175 = arith.truncf %174 : vector<8x64xf32> to vector<8x64xbf16>
    %c0_157 = arith.constant 0 : index
    %c0_158 = arith.constant 0 : index
    %c0_159 = arith.constant 0 : index
    %176 = vector.load %arg20[%c0_157, %c0_158, %c0_159] : memref<2x16x8xbf16, #tpu.memory_space<vmem>>, vector<1x16x8xbf16>
    %177 = vector.shape_cast %176 : vector<1x16x8xbf16> to vector<16x8xbf16>
    %cst_160 = arith.constant dense<0.000000e+00> : vector<16x64xf32>
    %178 = tpu.matmul %177, %175, %cst_160 {dimension_numbers = #tpu.dot_dimension_numbers<[1], [0], [0], [1], [0, 0, 1, 1], [], []>} : vector<16x8xbf16>, vector<8x64xbf16>, vector<16x64xf32> -> vector<16x64xf32>
    %179 = arith.truncf %178 : vector<16x64xf32> to vector<16x64xbf16>
    %c0_161 = arith.constant 0 : index
    %c0_162 = arith.constant 0 : index
    %c0_163 = arith.constant 0 : index
    %180 = vector.load %arg21[%c0_161, %c0_162, %c0_163] : memref<2x64x128xbf16, #tpu.memory_space<vmem>>, vector<1x64x128xbf16>
    %181 = vector.shape_cast %180 : vector<1x64x128xbf16> to vector<64x128xbf16>
    %cst_164 = arith.constant dense<0.000000e+00> : vector<16x128xf32>
    %182 = tpu.matmul %179, %181, %cst_164 {dimension_numbers = #tpu.dot_dimension_numbers<[1], [0], [0], [1], [0, 0, 1, 1], [], []>} : vector<16x64xbf16>, vector<64x128xbf16>, vector<16x128xf32> -> vector<16x128xf32>
    %c1_165 = arith.constant 1 : index
    %c0_166 = arith.constant 0 : index
    %c0_167 = arith.constant 0 : index
    %183 = vector.load %arg20[%c1_165, %c0_166, %c0_167] : memref<2x16x8xbf16, #tpu.memory_space<vmem>>, vector<1x16x8xbf16>
    %184 = vector.shape_cast %183 : vector<1x16x8xbf16> to vector<16x8xbf16>
    %cst_168 = arith.constant dense<0.000000e+00> : vector<16x64xf32>
    %185 = tpu.matmul %184, %175, %cst_168 {dimension_numbers = #tpu.dot_dimension_numbers<[1], [0], [0], [1], [0, 0, 1, 1], [], []>} : vector<16x8xbf16>, vector<8x64xbf16>, vector<16x64xf32> -> vector<16x64xf32>
    %186 = arith.truncf %185 : vector<16x64xf32> to vector<16x64xbf16>
    %c1_169 = arith.constant 1 : index
    %c0_170 = arith.constant 0 : index
    %c0_171 = arith.constant 0 : index
    %187 = vector.load %arg21[%c1_169, %c0_170, %c0_171] : memref<2x64x128xbf16, #tpu.memory_space<vmem>>, vector<1x64x128xbf16>
    %188 = vector.shape_cast %187 : vector<1x64x128xbf16> to vector<64x128xbf16>
    %cst_172 = arith.constant dense<0.000000e+00> : vector<16x128xf32>
    %189 = tpu.matmul %186, %188, %cst_172 {dimension_numbers = #tpu.dot_dimension_numbers<[1], [0], [0], [1], [0, 0, 1, 1], [], []>} : vector<16x64xbf16>, vector<64x128xbf16>, vector<16x128xf32> -> vector<16x128xf32>
    %190 = arith.addf %182, %189 : vector<16x128xf32>
    %c0_173 = arith.constant 0 : index
    %c0_174 = arith.constant 0 : index
    %191 = vector.load %arg35[%c0_173, %c0_174] : memref<16x128xf32, #tpu.memory_space<vmem>>, vector<16x128xf32>
    tpu.vector_store %arg35[%c0_173, %c0_174], %190 {strides = array<i32>} : memref<16x128xf32, #tpu.memory_space<vmem>>, vector<16x128xf32>,
    %c1_175 = arith.constant 1 : index
    %c8_176 = arith.constant 8 : index
    %192 = vector.load %arg35[%c1_175, %c8_176] : memref<16x128xf32, #tpu.memory_space<vmem>>, vector<14x112xf32>
    %c0_177 = arith.constant 0 : index
    %c0_178 = arith.constant 0 : index
    %193 = vector.load %arg22[%c0_177, %c0_178] : memref<1x112xf32, #tpu.memory_space<vmem>>, vector<1x112xf32>
    %194 = vector.broadcast %193 : vector<1x112xf32> to vector<14x112xf32>
    %195 = arith.addf %192, %194 : vector<14x112xf32>
    %cst_179 = arith.constant 0.000000e+00 : f32
    %196 = vector.broadcast %cst_179 : f32 to vector<14x112xf32>
    %197 = arith.maximumf %195, %196 : vector<14x112xf32>
    %198 = arith.truncf %197 : vector<14x112xf32> to vector<14x112xbf16>
    %c0_180 = arith.constant 0 : index
    %c0_181 = arith.constant 0 : index
    %c0_182 = arith.constant 0 : index
    %199 = vector.load %arg23[%c0_180, %c0_181, %c0_182] : memref<2x28x14xbf16, #tpu.memory_space<vmem>>, vector<1x28x14xbf16>
    %200 = vector.shape_cast %199 : vector<1x28x14xbf16> to vector<28x14xbf16>
    %cst_183 = arith.constant dense<0.000000e+00> : vector<28x112xf32>
    %201 = tpu.matmul %200, %198, %cst_183 {dimension_numbers = #tpu.dot_dimension_numbers<[1], [0], [0], [1], [0, 0, 1, 1], [], []>} : vector<28x14xbf16>, vector<14x112xbf16>, vector<28x112xf32> -> vector<28x112xf32>
    %202 = arith.truncf %201 : vector<28x112xf32> to vector<28x112xbf16>
    %c0_184 = arith.constant 0 : index
    %c0_185 = arith.constant 0 : index
    %c0_186 = arith.constant 0 : index
    %203 = vector.load %arg24[%c0_184, %c0_185, %c0_186] : memref<2x112x224xbf16, #tpu.memory_space<vmem>>, vector<1x112x224xbf16>
    %204 = vector.shape_cast %203 : vector<1x112x224xbf16> to vector<112x224xbf16>
    %cst_187 = arith.constant dense<0.000000e+00> : vector<28x224xf32>
    %205 = tpu.matmul %202, %204, %cst_187 {dimension_numbers = #tpu.dot_dimension_numbers<[1], [0], [0], [1], [0, 0, 1, 1], [], []>} : vector<28x112xbf16>, vector<112x224xbf16>, vector<28x224xf32> -> vector<28x224xf32>
    %c1_188 = arith.constant 1 : index
    %c0_189 = arith.constant 0 : index
    %c0_190 = arith.constant 0 : index
    %206 = vector.load %arg23[%c1_188, %c0_189, %c0_190] : memref<2x28x14xbf16, #tpu.memory_space<vmem>>, vector<1x28x14xbf16>
    %207 = vector.shape_cast %206 : vector<1x28x14xbf16> to vector<28x14xbf16>
    %cst_191 = arith.constant dense<0.000000e+00> : vector<28x112xf32>
    %208 = tpu.matmul %207, %198, %cst_191 {dimension_numbers = #tpu.dot_dimension_numbers<[1], [0], [0], [1], [0, 0, 1, 1], [], []>} : vector<28x14xbf16>, vector<14x112xbf16>, vector<28x112xf32> -> vector<28x112xf32>
    %209 = arith.truncf %208 : vector<28x112xf32> to vector<28x112xbf16>
    %c1_192 = arith.constant 1 : index
    %c0_193 = arith.constant 0 : index
    %c0_194 = arith.constant 0 : index
    %210 = vector.load %arg24[%c1_192, %c0_193, %c0_194] : memref<2x112x224xbf16, #tpu.memory_space<vmem>>, vector<1x112x224xbf16>
    %211 = vector.shape_cast %210 : vector<1x112x224xbf16> to vector<112x224xbf16>
    %cst_195 = arith.constant dense<0.000000e+00> : vector<28x224xf32>
    %212 = tpu.matmul %209, %211, %cst_195 {dimension_numbers = #tpu.dot_dimension_numbers<[1], [0], [0], [1], [0, 0, 1, 1], [], []>} : vector<28x112xbf16>, vector<112x224xbf16>, vector<28x224xf32> -> vector<28x224xf32>
    %213 = arith.addf %205, %212 : vector<28x224xf32>
    %c0_196 = arith.constant 0 : index
    %c0_197 = arith.constant 0 : index
    %214 = vector.load %arg25[%c0_196, %c0_197] : memref<1x224xf32, #tpu.memory_space<vmem>>, vector<1x224xf32>
    %215 = vector.broadcast %214 : vector<1x224xf32> to vector<28x224xf32>
    %216 = arith.addf %213, %215 : vector<28x224xf32>
    %cst_198 = arith.constant 0.000000e+00 : f32
    %217 = vector.broadcast %cst_198 : f32 to vector<28x224xf32>
    %218 = arith.maximumf %216, %217 : vector<28x224xf32>
    %cst_199 = arith.constant 0.000000e+00 : f32
    %219 = vector.broadcast %cst_199 : f32 to vector<30x240xf32>
    %c0_200 = arith.constant 0 : index
    %c0_201 = arith.constant 0 : index
    %220 = vector.load %arg36[%c0_200, %c0_201] : memref<30x240xf32, #tpu.memory_space<vmem>>, vector<30x240xf32>
    tpu.vector_store %arg36[%c0_200, %c0_201], %219 {strides = array<i32>} : memref<30x240xf32, #tpu.memory_space<vmem>>, vector<30x240xf32>,
    %c1_202 = arith.constant 1 : index
    %c8_203 = arith.constant 8 : index
    %221 = vector.load %arg36[%c1_202, %c8_203] : memref<30x240xf32, #tpu.memory_space<vmem>>, vector<28x224xf32>
    tpu.vector_store %arg36[%c1_202, %c8_203], %218 {strides = array<i32>} : memref<30x240xf32, #tpu.memory_space<vmem>>, vector<28x224xf32>,
    %c0_204 = arith.constant 0 : index
    %c0_205 = arith.constant 0 : index
    %222 = vector.load %arg36[%c0_204, %c0_205] : memref<30x240xf32, #tpu.memory_space<vmem>>, vector<30x240xf32>
    %223 = arith.truncf %222 : vector<30x240xf32> to vector<30x240xbf16>
    %c0_206 = arith.constant 0 : index
    %c0_207 = arith.constant 0 : index
    %c0_208 = arith.constant 0 : index
    %224 = vector.load %arg26[%c0_206, %c0_207, %c0_208] : memref<3x28x30xbf16, #tpu.memory_space<vmem>>, vector<1x28x30xbf16>
    %225 = vector.shape_cast %224 : vector<1x28x30xbf16> to vector<28x30xbf16>
    %cst_209 = arith.constant dense<0.000000e+00> : vector<28x240xf32>
    %226 = tpu.matmul %225, %223, %cst_209 {dimension_numbers = #tpu.dot_dimension_numbers<[1], [0], [0], [1], [0, 0, 1, 1], [], []>} : vector<28x30xbf16>, vector<30x240xbf16>, vector<28x240xf32> -> vector<28x240xf32>
    %227 = arith.truncf %226 : vector<28x240xf32> to vector<28x240xbf16>
    %c0_210 = arith.constant 0 : index
    %c0_211 = arith.constant 0 : index
    %c0_212 = arith.constant 0 : index
    %228 = vector.load %arg27[%c0_210, %c0_211, %c0_212] : memref<3x240x28xbf16, #tpu.memory_space<vmem>>, vector<1x240x28xbf16>
    %229 = vector.shape_cast %228 : vector<1x240x28xbf16> to vector<240x28xbf16>
    %cst_213 = arith.constant dense<0.000000e+00> : vector<28x28xf32>
    %230 = tpu.matmul %227, %229, %cst_213 {dimension_numbers = #tpu.dot_dimension_numbers<[1], [0], [0], [1], [0, 0, 1, 1], [], []>} : vector<28x240xbf16>, vector<240x28xbf16>, vector<28x28xf32> -> vector<28x28xf32>
    %c1_214 = arith.constant 1 : index
    %c0_215 = arith.constant 0 : index
    %c0_216 = arith.constant 0 : index
    %231 = vector.load %arg26[%c1_214, %c0_215, %c0_216] : memref<3x28x30xbf16, #tpu.memory_space<vmem>>, vector<1x28x30xbf16>
    %232 = vector.shape_cast %231 : vector<1x28x30xbf16> to vector<28x30xbf16>
    %cst_217 = arith.constant dense<0.000000e+00> : vector<28x240xf32>
    %233 = tpu.matmul %232, %223, %cst_217 {dimension_numbers = #tpu.dot_dimension_numbers<[1], [0], [0], [1], [0, 0, 1, 1], [], []>} : vector<28x30xbf16>, vector<30x240xbf16>, vector<28x240xf32> -> vector<28x240xf32>
    %234 = arith.truncf %233 : vector<28x240xf32> to vector<28x240xbf16>
    %c1_218 = arith.constant 1 : index
    %c0_219 = arith.constant 0 : index
    %c0_220 = arith.constant 0 : index
    %235 = vector.load %arg27[%c1_218, %c0_219, %c0_220] : memref<3x240x28xbf16, #tpu.memory_space<vmem>>, vector<1x240x28xbf16>
    %236 = vector.shape_cast %235 : vector<1x240x28xbf16> to vector<240x28xbf16>
    %cst_221 = arith.constant dense<0.000000e+00> : vector<28x28xf32>
    %237 = tpu.matmul %234, %236, %cst_221 {dimension_numbers = #tpu.dot_dimension_numbers<[1], [0], [0], [1], [0, 0, 1, 1], [], []>} : vector<28x240xbf16>, vector<240x28xbf16>, vector<28x28xf32> -> vector<28x28xf32>
    %238 = arith.addf %230, %237 : vector<28x28xf32>
    %c2_222 = arith.constant 2 : index
    %c0_223 = arith.constant 0 : index
    %c0_224 = arith.constant 0 : index
    %239 = vector.load %arg26[%c2_222, %c0_223, %c0_224] : memref<3x28x30xbf16, #tpu.memory_space<vmem>>, vector<1x28x30xbf16>
    %240 = vector.shape_cast %239 : vector<1x28x30xbf16> to vector<28x30xbf16>
    %cst_225 = arith.constant dense<0.000000e+00> : vector<28x240xf32>
    %241 = tpu.matmul %240, %223, %cst_225 {dimension_numbers = #tpu.dot_dimension_numbers<[1], [0], [0], [1], [0, 0, 1, 1], [], []>} : vector<28x30xbf16>, vector<30x240xbf16>, vector<28x240xf32> -> vector<28x240xf32>
    %242 = arith.truncf %241 : vector<28x240xf32> to vector<28x240xbf16>
    %c2_226 = arith.constant 2 : index
    %c0_227 = arith.constant 0 : index
    %c0_228 = arith.constant 0 : index
    %243 = vector.load %arg27[%c2_226, %c0_227, %c0_228] : memref<3x240x28xbf16, #tpu.memory_space<vmem>>, vector<1x240x28xbf16>
    %244 = vector.shape_cast %243 : vector<1x240x28xbf16> to vector<240x28xbf16>
    %cst_229 = arith.constant dense<0.000000e+00> : vector<28x28xf32>
    %245 = tpu.matmul %242, %244, %cst_229 {dimension_numbers = #tpu.dot_dimension_numbers<[1], [0], [0], [1], [0, 0, 1, 1], [], []>} : vector<28x240xbf16>, vector<240x28xbf16>, vector<28x28xf32> -> vector<28x28xf32>
    %246 = arith.addf %238, %245 : vector<28x28xf32>
    %c0_230 = arith.constant 0 : index
    %c0_231 = arith.constant 0 : index
    %247 = vector.load %arg28[%c0_230, %c0_231] : memref<1x28xf32, #tpu.memory_space<vmem>>, vector<1x28xf32>
    %248 = vector.broadcast %247 : vector<1x28xf32> to vector<28x28xf32>
    %249 = arith.addf %246, %248 : vector<28x28xf32>
    %cst_232 = arith.constant 0.000000e+00 : f32
    %250 = vector.broadcast %cst_232 : f32 to vector<28x28xf32>
    %251 = arith.subf %250, %249 : vector<28x28xf32>
    %252 = math.exp %251 : vector<28x28xf32>
    %cst_233 = arith.constant 1.000000e+00 : f32
    %253 = vector.broadcast %cst_233 : f32 to vector<28x28xf32>
    %254 = arith.addf %253, %252 : vector<28x28xf32>
    %255 = tpu.reciprocal %254 {approx = true} : vector<28x28xf32> -> vector<28x28xf32>
    %c0_234 = arith.constant 0 : index
    %c0_235 = arith.constant 0 : index
    %c0_236 = arith.constant 0 : index
    %256 = vector.load %arg29[%c0_234, %c0_235, %c0_236] : memref<1x28x28xf32, #tpu.memory_space<vmem>>, vector<1x28x28xf32>
    %257 = vector.shape_cast %256 : vector<1x28x28xf32> to vector<28x28xf32>
    %258 = vector.shape_cast %255 : vector<28x28xf32> to vector<1x28x28xf32>
    tpu.vector_store %arg29[%c0_234, %c0_235, %c0_236], %258 {strides = array<i32>} : memref<1x28x28xf32, #tpu.memory_space<vmem>>, vector<1x28x28xf32>,
    return
  }
  func.func @transform_0(%arg0: i32) -> (i32, i32, i32) {
    %c0_i32 = arith.constant 0 : i32
    %c0_i32_0 = arith.constant 0 : i32
    %c0_i32_1 = arith.constant 0 : i32
    return %arg0, %c0_i32, %c0_i32_0 : i32, i32, i32
  }
  func.func @transform_1(%arg0: i32) -> (i32, i32, i32) {
    %c0_i32 = arith.constant 0 : i32
    %c0_i32_0 = arith.constant 0 : i32
    %c0_i32_1 = arith.constant 0 : i32
    return %arg0, %c0_i32, %c0_i32_0 : i32, i32, i32
  }
  func.func @transform_2(%arg0: i32) -> (i32, i32, i32) {
    %c0_i32 = arith.constant 0 : i32
    %c0_i32_0 = arith.constant 0 : i32
    %c0_i32_1 = arith.constant 0 : i32
    %c0_i32_2 = arith.constant 0 : i32
    return %c0_i32, %c0_i32_0, %c0_i32_1 : i32, i32, i32
  }
  func.func @transform_3(%arg0: i32) -> (i32, i32, i32) {
    %c0_i32 = arith.constant 0 : i32
    %c0_i32_0 = arith.constant 0 : i32
    %c0_i32_1 = arith.constant 0 : i32
    %c0_i32_2 = arith.constant 0 : i32
    return %c0_i32, %c0_i32_0, %c0_i32_1 : i32, i32, i32
  }
  func.func @transform_4(%arg0: i32) -> (i32, i32) {
    %c0_i32 = arith.constant 0 : i32
    %c0_i32_0 = arith.constant 0 : i32
    %c0_i32_1 = arith.constant 0 : i32
    return %c0_i32, %c0_i32_0 : i32, i32
  }
  func.func @transform_5(%arg0: i32) -> (i32, i32, i32) {
    %c0_i32 = arith.constant 0 : i32
    %c0_i32_0 = arith.constant 0 : i32
    %c0_i32_1 = arith.constant 0 : i32
    %c0_i32_2 = arith.constant 0 : i32
    return %c0_i32, %c0_i32_0, %c0_i32_1 : i32, i32, i32
  }
  func.func @transform_6(%arg0: i32) -> (i32, i32, i32) {
    %c0_i32 = arith.constant 0 : i32
    %c0_i32_0 = arith.constant 0 : i32
    %c0_i32_1 = arith.constant 0 : i32
    %c0_i32_2 = arith.constant 0 : i32
    return %c0_i32, %c0_i32_0, %c0_i32_1 : i32, i32, i32
  }
  func.func @transform_7(%arg0: i32) -> (i32, i32) {
    %c0_i32 = arith.constant 0 : i32
    %c0_i32_0 = arith.constant 0 : i32
    %c0_i32_1 = arith.constant 0 : i32
    return %c0_i32, %c0_i32_0 : i32, i32
  }
  func.func @transform_8(%arg0: i32) -> (i32, i32, i32) {
    %c0_i32 = arith.constant 0 : i32
    %c0_i32_0 = arith.constant 0 : i32
    %c0_i32_1 = arith.constant 0 : i32
    %c0_i32_2 = arith.constant 0 : i32
    return %c0_i32, %c0_i32_0, %c0_i32_1 : i32, i32, i32
  }
  func.func @transform_9(%arg0: i32) -> (i32, i32, i32) {
    %c0_i32 = arith.constant 0 : i32
    %c0_i32_0 = arith.constant 0 : i32
    %c0_i32_1 = arith.constant 0 : i32
    %c0_i32_2 = arith.constant 0 : i32
    return %c0_i32, %c0_i32_0, %c0_i32_1 : i32, i32, i32
  }
  func.func @transform_10(%arg0: i32) -> (i32, i32) {
    %c0_i32 = arith.constant 0 : i32
    %c0_i32_0 = arith.constant 0 : i32
    %c0_i32_1 = arith.constant 0 : i32
    return %c0_i32, %c0_i32_0 : i32, i32
  }
  func.func @transform_11(%arg0: i32) -> (i32, i32) {
    %c0_i32 = arith.constant 0 : i32
    %c0_i32_0 = arith.constant 0 : i32
    %c0_i32_1 = arith.constant 0 : i32
    return %c0_i32, %c0_i32_0 : i32, i32
  }
  func.func @transform_12(%arg0: i32) -> (i32, i32) {
    %c0_i32 = arith.constant 0 : i32
    %c0_i32_0 = arith.constant 0 : i32
    %c0_i32_1 = arith.constant 0 : i32
    return %c0_i32, %c0_i32_0 : i32, i32
  }
  func.func @transform_13(%arg0: i32) -> (i32, i32) {
    %c0_i32 = arith.constant 0 : i32
    %c0_i32_0 = arith.constant 0 : i32
    %c0_i32_1 = arith.constant 0 : i32
    return %c0_i32, %c0_i32_0 : i32, i32
  }
  func.func @transform_14(%arg0: i32) -> (i32, i32) {
    %c0_i32 = arith.constant 0 : i32
    %c0_i32_0 = arith.constant 0 : i32
    %c0_i32_1 = arith.constant 0 : i32
    return %c0_i32, %c0_i32_0 : i32, i32
  }
  func.func @transform_15(%arg0: i32) -> (i32, i32) {
    %c0_i32 = arith.constant 0 : i32
    %c0_i32_0 = arith.constant 0 : i32
    %c0_i32_1 = arith.constant 0 : i32
    return %c0_i32, %c0_i32_0 : i32, i32
  }
  func.func @transform_16(%arg0: i32) -> (i32, i32, i32) {
    %c0_i32 = arith.constant 0 : i32
    %c0_i32_0 = arith.constant 0 : i32
    %c0_i32_1 = arith.constant 0 : i32
    %c0_i32_2 = arith.constant 0 : i32
    return %c0_i32, %c0_i32_0, %c0_i32_1 : i32, i32, i32
  }
  func.func @transform_17(%arg0: i32) -> (i32, i32, i32) {
    %c0_i32 = arith.constant 0 : i32
    %c0_i32_0 = arith.constant 0 : i32
    %c0_i32_1 = arith.constant 0 : i32
    %c0_i32_2 = arith.constant 0 : i32
    return %c0_i32, %c0_i32_0, %c0_i32_1 : i32, i32, i32
  }
  func.func @transform_18(%arg0: i32) -> (i32, i32) {
    %c0_i32 = arith.constant 0 : i32
    %c0_i32_0 = arith.constant 0 : i32
    %c0_i32_1 = arith.constant 0 : i32
    return %c0_i32, %c0_i32_0 : i32, i32
  }
  func.func @transform_19(%arg0: i32) -> (i32, i32, i32) {
    %c0_i32 = arith.constant 0 : i32
    %c0_i32_0 = arith.constant 0 : i32
    %c0_i32_1 = arith.constant 0 : i32
    %c0_i32_2 = arith.constant 0 : i32
    return %c0_i32, %c0_i32_0, %c0_i32_1 : i32, i32, i32
  }
  func.func @transform_20(%arg0: i32) -> (i32, i32, i32) {
    %c0_i32 = arith.constant 0 : i32
    %c0_i32_0 = arith.constant 0 : i32
    %c0_i32_1 = arith.constant 0 : i32
    %c0_i32_2 = arith.constant 0 : i32
    return %c0_i32, %c0_i32_0, %c0_i32_1 : i32, i32, i32
  }
  func.func @transform_21(%arg0: i32) -> (i32, i32) {
    %c0_i32 = arith.constant 0 : i32
    %c0_i32_0 = arith.constant 0 : i32
    %c0_i32_1 = arith.constant 0 : i32
    return %c0_i32, %c0_i32_0 : i32, i32
  }
  func.func @transform_22(%arg0: i32) -> (i32, i32, i32) {
    %c0_i32 = arith.constant 0 : i32
    %c0_i32_0 = arith.constant 0 : i32
    %c0_i32_1 = arith.constant 0 : i32
    %c0_i32_2 = arith.constant 0 : i32
    return %c0_i32, %c0_i32_0, %c0_i32_1 : i32, i32, i32
  }
  func.func @transform_23(%arg0: i32) -> (i32, i32, i32) {
    %c0_i32 = arith.constant 0 : i32
    %c0_i32_0 = arith.constant 0 : i32
    %c0_i32_1 = arith.constant 0 : i32
    %c0_i32_2 = arith.constant 0 : i32
    return %c0_i32, %c0_i32_0, %c0_i32_1 : i32, i32, i32
  }
  func.func @transform_24(%arg0: i32) -> (i32, i32) {
    %c0_i32 = arith.constant 0 : i32
    %c0_i32_0 = arith.constant 0 : i32
    %c0_i32_1 = arith.constant 0 : i32
    return %c0_i32, %c0_i32_0 : i32, i32
  }
  func.func @transform_25(%arg0: i32) -> (i32, i32, i32) {
    %c0_i32 = arith.constant 0 : i32
    %c0_i32_0 = arith.constant 0 : i32
    %c0_i32_1 = arith.constant 0 : i32
    %c0_i32_2 = arith.constant 0 : i32
    return %c0_i32, %c0_i32_0, %c0_i32_1 : i32, i32, i32
  }
  func.func @transform_26(%arg0: i32) -> (i32, i32, i32) {
    %c0_i32 = arith.constant 0 : i32
    %c0_i32_0 = arith.constant 0 : i32
    %c0_i32_1 = arith.constant 0 : i32
    %c0_i32_2 = arith.constant 0 : i32
    return %c0_i32, %c0_i32_0, %c0_i32_1 : i32, i32, i32
  }
  func.func @transform_27(%arg0: i32) -> (i32, i32) {
    %c0_i32 = arith.constant 0 : i32
    %c0_i32_0 = arith.constant 0 : i32
    %c0_i32_1 = arith.constant 0 : i32
    return %c0_i32, %c0_i32_0 : i32, i32
  }
  func.func @transform_28(%arg0: i32) -> (i32, i32, i32) {
    %c0_i32 = arith.constant 0 : i32
    %c0_i32_0 = arith.constant 0 : i32
    %c0_i32_1 = arith.constant 0 : i32
    return %arg0, %c0_i32, %c0_i32_0 : i32, i32, i32
  }
  func.func @transform_29(%arg0: i32) -> (i32, i32, i32) {
    %c0_i32 = arith.constant 0 : i32
    %c0_i32_0 = arith.constant 0 : i32
    %c0_i32_1 = arith.constant 0 : i32
    return %arg0, %c0_i32, %c0_i32_0 : i32, i32, i32
  }
  func.func @transform_30(%arg0: i32) -> (i32, i32, i32) {
    %c0_i32 = arith.constant 0 : i32
    %c0_i32_0 = arith.constant 0 : i32
    %c0_i32_1 = arith.constant 0 : i32
    return %arg0, %c0_i32, %c0_i32_0 : i32, i32, i32
  }
}

</mosaic_0001>

<bundles_post_ra>
// kernel: cvae_forward.1
= control target key start
LH: loop header
LB: loop body
LE: loop exit
PB: predicated region body
PF: predicated region fallthrough
CT: control target
= control target key end

     0   :  { %s6017_s6 = smov 1   ;;  %s6018_s10 = smov 2   ;;  %s6898_s0 = inlined_call_operand.smem [shape: u32[31], index: -1, kind: input, shape index: {}] }
   0x1   :  { %s6067_s5 = sld [smem:[%s6898_s0]]   ;;  %s6019_s14 = smov 3  }
   0x2   :  { %s6072_s9 = sld [smem:[%s6898_s0 + %s6017_s6]]   ;;  %s6020_s18 = smov 4  }
   0x3   :  { %s6077_s13 = sld [smem:[%s6898_s0 + %s6018_s10]]   ;;  %s6021_s22 = smov 5  }
   0x4   :  { %s6082_s17 = sld [smem:[%s6898_s0 + %s6019_s14]]   ;;  %s6022_s26 = smov 6  }
   0x5   :  { %s6087_s21 = sld [smem:[%s6898_s0 + %s6020_s18]]   ;;  %s6023_s30 = smov 7  }
   0x6   :  { %s6092_s25 = sld [smem:[%s6898_s0 + %s6021_s22]]   ;;  %s6024_s4 = smov 8  }
   0x7   :  { %6924 = sst [smem:[#allocation14_spill]] %s6067_s5  ;;  %s6025_s10 = smov 9  }
   0x8   :  { %6925 = sst [smem:[#allocation15_spill]] %s6072_s9  ;;  %s6026_s15 = smov 10  }
   0x9   :  { %6926 = sst [smem:[#allocation16_spill]] %s6077_s13  ;;  %s6027_s20 = smov 11  }
   0xa   :  { %6927 = sst [smem:[#allocation17_spill]] %s6082_s17  ;;  %s6029_s1 = smov 13  }
   0xb   :  { %6928 = sst [smem:[#allocation18_spill]] %s6087_s21  ;;  %s6030_s7 = smov 14  }
   0xc   :  { %s6097_s29 = sld [smem:[%s6898_s0 + %s6022_s26]]   ;;  %s6028_s26 = smov 12  }
   0xd   :  { %s6102_s3 = sld [smem:[%s6898_s0 + %s6023_s30]]   ;;  %s6032_s22 = smov 16  }
   0xe   :  { %s6107_s8 = sld [smem:[%s6898_s0 + %s6024_s4]]   ;;  %s6033_s28 = smov 17  }
   0xf   :  { %s6112_s14 = sld [smem:[%s6898_s0 + %s6025_s10]]  }
  0x10   :  { %s6117_s19 = sld [smem:[%s6898_s0 + %s6026_s15]]   ;;  %s6031_s15 = smov 15  }
  0x11   :  { %s6122_s24 = sld [smem:[%s6898_s0 + %s6027_s20]]  }
  0x12   :  { %s6127_s30 = sld [smem:[%s6898_s0 + %s6028_s26]]  }
  0x13   :  { %6929 = sst [smem:[#allocation19_spill]] %s6102_s3 }
  0x14   :  { %6930 = sst [smem:[#allocation20_spill]] %s6107_s8 }
  0x15   :  { %6931 = sst [smem:[#allocation21_spill]] %s6112_s14 }
  0x16   :  { %6932 = sst [smem:[#allocation22_spill]] %s6117_s19 }
  0x17   :  { %s6132_s6 = sld [smem:[%s6898_s0 + %s6029_s1]]  }
  0x18   :  { %6933 = sst [smem:[#allocation23_spill]] %s6127_s30 }
  0x19   :  { %s6137_s12 = sld [smem:[%s6898_s0 + %s6030_s7]]   ;;  %s6034_s7 = smov 18  }
  0x1a   :  { %s6142_s20 = sld [smem:[%s6898_s0 + %s6031_s15]]   ;;  %s6035_s15 = smov 19  }
  0x1b   :  { %s6147_s27 = sld [smem:[%s6898_s0 + %s6032_s22]]   ;;  %s6036_s22 = smov 20  }
  0x1c   :  { %s6152_s4 = sld [smem:[%s6898_s0 + %s6033_s28]]   ;;  %s6037_s28 = smov 21  }
  0x1d   :  { %6934 = sst [smem:[#allocation24_spill]] %s6132_s6 }
  0x1e   :  { %s6157_s30 = sld [smem:[%s6898_s0 + %s6034_s7]]   ;;  %s6038_s7 = smov 22  }
  0x1f   :  { %6935 = sst [smem:[#allocation25_spill]] %s6137_s12 }
  0x20   :  { %6936 = sst [smem:[#allocation26_spill]] %s6142_s20 }
  0x21   :  { %6937 = sst [smem:[#allocation27_spill]] %s6147_s27 }
  0x22   :  { %6938 = sst [smem:[#allocation28_spill]] %s6152_s4 }
  0x23   :  { %s6162_s20 = sld [smem:[%s6898_s0 + %s6035_s15]]   ;;  %s6039_s15 = smov 23  }
  0x24   :  { %6939 = sst [smem:[#allocation29_spill]] %s6157_s30 }
  0x25   :  { %s6167_s27 = sld [smem:[%s6898_s0 + %s6036_s22]]   ;;  %s6040_s22 = smov 24  }
  0x26   :  { %s6172_s4 = sld [smem:[%s6898_s0 + %s6037_s28]]   ;;  %s6041_s28 = smov 25  }
  0x27   :  { %s6177_s30 = sld [smem:[%s6898_s0 + %s6038_s7]]   ;;  %s6042_s7 = smov 26  }
  0x29   :  { %6940 = sst [smem:[#allocation30_spill]] %s6162_s20 }
  0x2a   :  { %s6182_s20 = sld [smem:[%s6898_s0 + %s6039_s15]]   ;;  %s6043_s15 = smov 27  }
  0x2b   :  { %6941 = sst [smem:[#allocation31_spill]] %s6167_s27 }
  0x2c   :  { %6942 = sst [smem:[#allocation32_spill]] %s6172_s4 }
  0x2d   :  { %6943 = sst [smem:[#allocation33_spill]] %s6177_s30 }
  0x2e   :  { %s6187_s27 = sld [smem:[%s6898_s0 + %s6040_s22]]   ;;  %s6044_s22 = smov 28  }
  0x2f   :  { %s6192_s4 = sld [smem:[%s6898_s0 + %s6041_s28]]   ;;  %s6045_s28 = smov 29  }
  0x30   :  { %6944 = sst [smem:[#allocation34_spill]] %s6182_s20 }
  0x31   :  { %s6197_s30 = sld [smem:[%s6898_s0 + %s6042_s7]]   ;;  %s6046_s7 = smov 30  }
  0x32   :  { %s6202_s20 = sld [smem:[%s6898_s0 + %s6043_s15]]  }
  0x34   :  { %6945 = sst [smem:[#allocation35_spill]] %s6187_s27 }
  0x35   :  { %6946 = sst [smem:[#allocation36_spill]] %s6192_s4 }
  0x36   :  { %s6207_s27 = sld [smem:[%s6898_s0 + %s6044_s22]]  }
  0x37   :  { %6947 = sst [smem:[#allocation37_spill]] %s6197_s30 }
  0x38   :  { %s6212_s4 = sld [smem:[%s6898_s0 + %s6045_s28]]  }
  0x39   :  { %s6217_s30 = sld [smem:[%s6898_s0 + %s6046_s7]]  }
  0x3e   :  { %6948 = sst [smem:[#allocation38_spill]] %s6212_s4 }
  0x3f   :  { %67 = vsyncpa [#allocation9], 0 }
  0x40   :  { %69 = vsyncpa [#allocation9 + $0x1], 0 }
  0x41   :  { %70 = vsyncpa [#allocation11], 0 }
  0x42   :  { %72 = vsyncpa [#allocation11 + $0x1], 0  ;;  %s6219_s15 = smov 0   ;;  %s6221_s16 = smov 0  }
  0x43   :  { %s6223_s18 = smov 0   ;;  %s6225_s22 = smov 0  }
  0x44 LB: > { %s6949_s4 = sld [smem:[#allocation38_spill]]  ;;  %s6950_s17 = sld [smem:[#allocation17_spill]]  ;;  %s6007_s16 = sphi %s6221_s16, %s6981_s16   ;;  %s6003_s15 = sphi %s6219_s15, %s6980_s15   ;;  %s6015_s22 = sphi %s6225_s22, %s6983_s22   ;;  %s6011_s18 = sphi %s6223_s18, %s6982_s18  }
  0x45   : > { %s6951_s14 = sld [smem:[#allocation21_spill]]  ;;  %s6952_s13 = sld [smem:[#allocation16_spill]] }
  0x46   : > { %s6953_s8 = sld [smem:[#allocation20_spill]]  ;;  %s6954_s6 = sld [smem:[#allocation24_spill]] }
  0x47   : > { %s6240_s0 = sadd.s32 4294967295, %s6015_s22   ;;  %s4800_s23 = sadd.s32 4294967294, %s6015_s22  }
  0x48   : > { %s6244_s26 = sadd.s32 1, %s6015_s22   ;;  %s709_s28 = sadd.s32 1, %s6011_s18 }
  0x49   : > { %s706_s1 = ssub.s32 %s6015_s22, %s6244_s26  ;;  %p719_p0 = scmp.ne.s32.totalorder %s6011_s18, %s6007_s16 }
  0x4a   : > { %p707_p1 = scmp.eq.s32.totalorder %s706_s1, 0  ;;  %p720_p2 = scmp.eq.s32.totalorder %s6240_s0, 1 }
  0x4b   : > { %p725_p3 = scmp.ne.s32.totalorder %s6007_s16, %s6003_s15  ;;  %p726_p4 = scmp.eq.s32.totalorder %s4800_s23, 1 }
  0x4c   : > { %s6255_s2 = scalar_select %p707_p1, %s6011_s18, %s709_s28  }
  0x4d   : > { %p6257_p5 = por %p720_p2, %p719_p0  ;;  %p6261_p6 = por %p726_p4, %p725_p3 }
  0x4e   : > { %p4803_p7 = scmp.ge.s32.totalorder %s6015_s22, 1  ;;  %p863_p8 = scmp.lt.s32.totalorder %s6015_s22, 3 }
  0x50   : > { %p864_p9 = pnand %p4803_p7, %p863_p8 }
  0x51   : > { %p953_p10 = scmp.lt.s32.totalorder (!%p864_p9), %s6240_s0, 1  ;;  %vm968_vm0 = vcmask (!%p864_p9), 244736   ;;  %vm972_vm1 = vcmask (!%p864_p9), 242688   ;;  %s6957_s5 = sld [smem:[#allocation14_spill]] (!%p864_p9)  ;;  %v6047_v0 = vmov (!%p864_p9), 0.0   ;;  %vm6049_vm2 = vmmov (!%p864_p9), 0  }
  0x52   : > { %867 = sbr.rel (%p864_p9) target bundleno = 5287 (0x14a7), region = 132  ;;  %971 = vst.msk [vmem:[#allocation2 + $0x10] sm:$0xff] (!%p864_p9), %vm968_vm0, %v6047_v0  ;;  %969 = vst.msk [vmem:[#allocation2] sm:$0xff] (!%p864_p9), %vm968_vm0, %v6047_v0  ;;  %5324 = vmatprep.subr.bf16.mxu0 (!%p864_p9), %v6047_v0  ;;  %5332 = vmatprep.subr.bf16.mxu1 (!%p864_p9), %v6047_v0  ;;  %s6048_s1 = smov (!%p864_p9), 1   ;;  %vm994_vm3 = vcmask (!%p864_p9), 236552   ;;  %vm998_vm4 = vcmask (!%p864_p9), 232456  }
  0x53   : > { %973 = vst.msk [vmem:[#allocation2 + $0x18] sm:$0x3f] (!%p864_p9), %vm972_vm1, %v6047_v0  ;;  %1369 = vst [vmem:[#allocation3] sm:$0xff] (!%p864_p9), %v6047_v0  ;;  %5328 = vmatprep.mubr.msk.bf16.mxu0 (!%p864_p9), %vm6049_vm2, %v6047_v0  ;;  %5336 = vmatprep.mubr.msk.bf16.mxu1 (!%p864_p9), %vm6049_vm2, %v6047_v0  ;;  %vm1016_vm5 = vcmask (!%p864_p9), 1046528   ;;  %v5710_v16 = vld [vmem:[%s6952_s13] sm:$0x7f] (!%p864_p9)  }
  0x54   : > { %970 = vst.msk [vmem:[#allocation2 + $0x8] sm:$0xff] (!%p864_p9), %vm968_vm0, %v6047_v0  ;;  %1370 = vst [vmem:[#allocation3 + $0x8] sm:$0xff] (!%p864_p9), %v6047_v0  ;;  %v5711_v17 = vld [vmem:[%s6952_s13 + $0x8] sm:$0x7f] (!%p864_p9)   ;;  %v5712_v18 = vld [vmem:[%s6950_s17 + $0x10] sm:$0xff] (!%p864_p9)   ;;  %s6958_s21 = sld [smem:[#allocation18_spill]] (!%p864_p9) }
  0x55   : > { %3719 = vst [vmem:[#allocation6] sm:$0xff] (!%p864_p9), %v6047_v0  ;;  %3721 = vst [vmem:[#allocation6 + $0x10] sm:$0xff] (!%p864_p9), %v6047_v0  ;;  %v5713_v19 = vld [vmem:[%s6950_s17] sm:$0xff] (!%p864_p9)   ;;  %v5714_v20 = vld [vmem:[%s6950_s17 + $0x18] sm:$0x7f] (!%p864_p9)   ;;  %vm1379_vm6 = vcmask (!%p864_p9), 982080  }
  0x56   : > { %3723 = vst [vmem:[#allocation6 + $0x20] sm:$0xff] (!%p864_p9), %v6047_v0  ;;  %3725 = vst [vmem:[#allocation6 + $0x30] sm:$0x3f] (!%p864_p9), %v6047_v0  ;;  %v5715_v21 = vld [vmem:[%s6950_s17 + $0x8] sm:$0x7f] (!%p864_p9)   ;;  %v1139_v22 = vsel (!%p864_p9), %vm1016_vm5, %v5714_v20, 0 }
  0x57   : > { %v1197_v23 = vsel (!%p864_p9), %vm1016_vm5, %v5715_v21, 0  ;;  %v5716_v34 = vld [vmem:[%s6952_s13 + $0x10] sm:$0x7f] (!%p864_p9)   ;;  %v5717_v35 = vld [vmem:[%s6950_s17 + $0x20] sm:$0xff] (!%p864_p9)   ;;  %v5718_v36 = vld [vmem:[%s6950_s17 + $0x28] sm:$0x7f] (!%p864_p9)  }
  0x58   : > { %v1313_v37 = vsel (!%p864_p9), %vm1016_vm5, %v5718_v36, 0  ;;  %vm1381_vm7 = vcmask (!%p864_p9), 980032   ;;  %vm1387_vm8 = vcmask (!%p864_p9), 130048   ;;  %v5733_v36 = vld [vmem:[%s6097_s29 + $0x30] sm:$0xff] (!%p864_p9)   ;;  %s6959_s3 = sld [smem:[#allocation19_spill]] (!%p864_p9)  ;;  %vm1848_vm9 = vcmask (!%p864_p9), 588800  }
  0x59   : > { %s6286_s11 = scalar_select %p953_p10, %s6240_s0, 1  ;;  %vm1850_vm10 = vcmask 581632   ;;  %vm1856_vm11 = vcmask 522304   ;;  %vm1866_vm12 = vcmask 1043456   ;;  %vm1867_vm13 = vcmask 1044480  }
  0x5a   : > { %v4836_v54 = vld [vmem:[%s6958_s21] ss:$0 sm:$0xff]  ;;  %vm1862_vm14 = vcmask 72704   ;;  %s6960_s19 = sld [smem:[#allocation22_spill]]  ;;  %vm2296_vm15 = vcmask 261120   ;;  %s6961_s9 = sld [smem:[#allocation15_spill]] }
  0x5b   : > { %s6907_s23 = sshll.u32 %s6286_s11, 5  ;;  %s6962_s12 = sld [smem:[#allocation25_spill]]  ;;  %vm2598_vm1 = vcmask 1041408  }
  0x5c   : > { %s957_s28 = scalar_lea.vmem %s6957_s5, %s6907_s23  ;;  %s6054_s5 = smov 96  }
  0x5d   : > { %v976_v1 = vld [vmem:[%s957_s28 + $0x10] sm:$0xff]  ;;  %v974_v2 = vld [vmem:[%s957_s28] sm:$0xff]  ;;  %v977_v3 = vld [vmem:[%s957_s28 + $0x18] sm:$0xf]  ;;  %s6057_s13 = smov [#allocation8]  }
  0x5e   : > { %986 = vrot.lane.b32.xlu1 %v976_v1, %s6048_s1  ;;  %982 = vrot.lane.b32.xlu0 %v974_v2, %s6048_s1  ;;  %v975_v4 = vld [vmem:[%s957_s28 + $0x8] sm:$0xff]  ;;  %s6908_s28 = smov 8  }
  0x62   : > { %988 = vrot.lane.b32.xlu1 %v977_v3, %s6048_s1  ;;  %984 = vrot.lane.b32.xlu0 %v975_v4, %s6048_s1  ;;  %s4806_s1 = sshll.u32 %s6286_s11, 1 }
  0x63   : > { %s961_s23 = scalar_lea.vmem %s6961_s9, %s4806_s1  ;;  %s6539_s1 = sand.u32 1, %s6007_s16  }
  0x64   : > { %s4618_s9 = scalar_lea.sflag [#allocation9], %s6539_s1 }
  0xd0   : > { %v987_v5 = vpop.permute.xlu1 %986  ;;  %v983_v6 = vpop.permute.xlu0 %982 }
  0xd1   : > { %997 = vst.msk [vmem:[#allocation2 + $0x11] sm:$0xff] %vm994_vm3, %v987_v5  ;;  %995 = vst.msk [vmem:[#allocation2 + $0x1] sm:$0xff] %vm994_vm3, %v983_v6  ;;  %v4838_v6 = vld [vmem:[%s6092_s25 + $0x4] sm:$0xf] }
  0xd4   : > { %v989_v7 = vpop.permute.xlu1 %988  ;;  %v985_v8 = vpop.permute.xlu0 %984 }
  0xd5   : > { %999 = vst.msk [vmem:[#allocation2 + $0x19] sm:$0xf] %vm998_vm4, %v989_v7  ;;  %v1386_v7 = vld [vmem:[%s6092_s25] sm:$0xf]  ;;  %vm2732_vm4 = vcmask 253952  }
  0xd6   : > { %996 = vst.msk [vmem:[#allocation2 + $0x9] sm:$0xff] %vm994_vm3, %v985_v8  ;;  %v5719_v8 = vld [vmem:[%s6097_s29 + $0x40] sm:$0xff]   ;;  %vm2594_vm3 = vcmask 31744  }
  0xd8   : > { %v1000_v9 = vld [vmem:[#allocation2] sm:$0xff] }
  0xdc   : > { %v1003_v12 = vld [vmem:[#allocation2 + $0x18] sm:$0x3f] }
  0xdd   : > { %v1001_v10 = vld [vmem:[#allocation2 + $0x8] sm:$0xff]  ;;  %v1002_v11 = vld [vmem:[#allocation2 + $0x10] sm:$0xff] }
  0xde   : > { %v1004_v13 = vpack.c.bf16 %v1001_v10, %v1000_v9  ;;  %v1005_v14 = vpack.c.bf16 %v1003_v12, %v1002_v11  ;;  %v5720_v9 = vld [vmem:[%s6097_s29 + $0x48] sm:$0xff]   ;;  %v5721_v11 = vld [vmem:[%s6097_s29 + $0x50] sm:$0xff]   ;;  %v5722_v12 = vld [vmem:[%s6097_s29 + $0x58] sm:$0xff]  }
  0xdf   : > { %v4872_v10 = vld [vmem:[%s6092_s25 + $0x8] sm:$0xf] }
  0xe0   : > { %5325 = vmatpush3.bf16.msra.mxu0 %v1004_v13  ;;  %5333 = vmatpush3.bf16.msra.mxu1 %v1004_v13  ;;  %v1018_v15 = vsel %vm1016_vm5, %v1005_v14, 0  ;;  %v5724_v14 = vld [vmem:[%s6097_s29 + $0x68] sm:$0xff]  }
  0xe1   : > { %5326 = vmatprep.subr.bf16.mxu0 %v6047_v0  ;;  %5334 = vmatprep.subr.bf16.mxu1 %v6047_v0 }
  0xe4   : > { %5327 = vmatpush3.bf16.msra.mxu0 %v1018_v15  ;;  %5335 = vmatpush3.bf16.msra.mxu1 %v1018_v15 }
  0xe5   : > { %5340 = vmatprep.subr.bf16.mxu0 %v6047_v0  ;;  %5348 = vmatprep.subr.bf16.mxu1 %v6047_v0 }
  0xe7   : > { %5329 = vmatmul.mubr.msk.bf16.vlgmr.msra.gmra.mrb[0].mxu0 %vm968_vm0, %v5710_v16  ;;  %5337 = vmatmul.mubr.msk.bf16.vlgmr.msra.gmra.mrb[0].mxu1 %vm968_vm0, %v5711_v17  ;;  %v5726_v16 = vld [vmem:[%s6097_s29 + $0x78] sm:$0xff]  }
  0xe8   : > { %5341 = vmatpush3.bf16.msra.mxu0 %v5712_v18  ;;  %5349 = vmatpush3.bf16.msra.mxu1 %v5713_v19  ;;  %v5727_v18 = vld [vmem:[%s6097_s29] sm:$0xff]  }
  0xe9   : > { %5342 = vmatprep.subr.bf16.mxu0 %v6047_v0  ;;  %5350 = vmatprep.subr.bf16.mxu1 %v6047_v0 }
  0xea   : > { %5344 = vmatprep.mubr.msk.bf16.mxu0 %vm6049_vm2, %v6047_v0  ;;  %5352 = vmatprep.mubr.msk.bf16.mxu1 %vm6049_vm2, %v6047_v0 }
  0xec   : > { %5343 = vmatpush3.bf16.msra.mxu0 %v1139_v22  ;;  %5351 = vmatpush3.bf16.msra.mxu1 %v1197_v23 }
  0xed   : > { %5356 = vmatprep.subr.bf16.mxu0 %v6047_v0  ;;  %5364 = vmatprep.subr.bf16.mxu1 %v6047_v0 }
 0x1ba   : > { %v1054_v24 = vpop.f32.mrb[0].mxu0  ;;  %v1111_v25 = vpop.f32.mrb[0].mxu1 }
 0x1bb   : > { %v5330_v26 = vpop.f32.mrb[1].mxu0  ;;  %v5338_v27 = vpop.f32.mrb[1].mxu1 }
 0x1bc   : > { %v1057_v28 = vpop.f32.mrb[2].mxu0  ;;  %v1114_v29 = vpop.f32.mrb[2].mxu1  ;;  %v5728_v27 = vld [vmem:[%s6097_s29 + $0x8] sm:$0xff]  }
 0x1bd   : > { %v1061_v30 = vpack.c.bf16 %v1057_v28, %v1054_v24  ;;  %v1118_v31 = vpack.c.bf16 %v1114_v29, %v1111_v25  ;;  %v5339_v32 = vpop.f32.mrb[3].mxu1  ;;  %v5331_v33 = vpop.f32.mrb[3].mxu0  ;;  %v5729_v28 = vld [vmem:[%s6097_s29 + $0x10] sm:$0xff]  }
 0x1be   : > { %v5730_v33 = vld [vmem:[%s6097_s29 + $0x18] sm:$0xff]  }
 0x1bf   : > { %5345 = vmatmul.mubr.msk.bf16.vlgmr.msra.gmra.mrb[4].mxu0 %vm968_vm0, %v1118_v31  ;;  %5353 = vmatmul.mubr.msk.bf16.vlgmr.msra.gmra.mrb[4].mxu1 %vm968_vm0, %v1061_v30 }
 0x1c0   : > { %5357 = vmatpush3.bf16.msra.mxu0 %v1004_v13  ;;  %5360 = vmatprep.mubr.msk.bf16.mxu0 %vm6049_vm2, %v6047_v0  ;;  %v5723_v13 = vld [vmem:[%s6097_s29 + $0x60] sm:$0xff]  }
 0x1c1   : > { %5358 = vmatprep.subr.bf16.mxu0 %v6047_v0  ;;  %5368 = vmatprep.mubr.msk.bf16.mxu1 %vm6049_vm2, %v6047_v0 }
 0x1c2   : > { %5365 = vmatpush3.bf16.msra.mxu1 %v5717_v35  ;;  %v5732_v35 = vld [vmem:[%s6097_s29 + $0x28] sm:$0xff]  }
 0x1c3   : > { %5366 = vmatprep.subr.bf16.mxu1 %v6047_v0 }
 0x1c4   : > { %5359 = vmatpush3.bf16.msra.mxu0 %v1018_v15  ;;  %v5725_v15 = vld [vmem:[%s6097_s29 + $0x70] sm:$0xff]  }
 0x1c5   : > { %5372 = vmatprep.subr.bf16.mxu0 %v6047_v0 }
 0x1c6   : > { %5367 = vmatpush3.bf16.msra.mxu1 %v1313_v37  ;;  %v5734_v37 = vld [vmem:[%s6097_s29 + $0x38] sm:$0xff]  }
 0x1c7   : > { %5361 = vmatmul.mubr.msk.bf16.vlgmr.msra.gmra.mrb[8].mxu0 %vm968_vm0, %v5716_v34  ;;  %5378 = vmatprep.subr.bf16.mxu1 %v6047_v0  ;;  %v5731_v34 = vld [vmem:[%s6097_s29 + $0x20] sm:$0xff]  }
 0x1c8   : > { %5374 = vmatprep.mubr.msk.bf16.mxu0 %vm6049_vm2, %v6047_v0 }
 0x292   : > { %v1175_v38 = vpop.f32.mrb[4].mxu0  ;;  %v1233_v39 = vpop.f32.mrb[4].mxu1 }
 0x293   : > { %v1234_v40 = vadd.f32 %v1233_v39, %v1175_v38  ;;  %v5346_v41 = vpop.f32.mrb[5].mxu0  ;;  %v5354_v42 = vpop.f32.mrb[5].mxu1  ;;  %v5735_v39 = vld [vmem:[%s6097_s29 + $0x80] sm:$0xff]  }
 0x294   : > { %v1178_v43 = vpop.f32.mrb[6].mxu0  ;;  %v1236_v44 = vpop.f32.mrb[6].mxu1  ;;  %v5737_v41 = vld [vmem:[%s6097_s29 + $0x90] sm:$0xff]  }
 0x295   : > { %v1237_v45 = vadd.f32 %v1236_v44, %v1178_v43  ;;  %v5347_v46 = vpop.f32.mrb[7].mxu0  ;;  %v5355_v47 = vpop.f32.mrb[7].mxu1  ;;  %v6397_v42 = vld [vmem:[#allocation6] sm:$0xff]  ;;  %v5738_v43 = vld [vmem:[%s6097_s29 + $0x98] sm:$0xff]   ;;  %v5739_v44 = vld [vmem:[%s6097_s29 + $0xa0] sm:$0xff]  }
 0x296   : > { %v5742_v46 = vld [vmem:[%s6097_s29 + $0xb8] sm:$0xff]   ;;  %1849 = vst.msk [vmem:[#allocation4] sm:$0xff] %vm1848_vm9, %v6397_v42 }
 0x297   : > { %1851 = vst.msk [vmem:[#allocation4 + $0x8] sm:$0x1] %vm1850_vm10, %v6397_v42  ;;  %vm3726_vm10 = vcmask 914432  }
 0x29a   : > { %v1285_v48 = vpop.f32.mrb[8].mxu0 }
 0x29b   : > { %v5362_v49 = vpop.f32.mrb[9].mxu0 }
 0x29c   : > { %v1288_v50 = vpop.f32.mrb[10].mxu0 }
 0x29d   : > { %v1292_v51 = vpack.c.bf16 %v1288_v50, %v1285_v48  ;;  %v5363_v52 = vpop.f32.mrb[11].mxu0 }
 0x29f   : > { %5369 = vmatmul.mubr.msk.bf16.vlgmr.msra.gmra.mrb[8].mxu1 %vm968_vm0, %v1292_v51 }
 0x2a0   : > { %5380 = vmatprep.mubr.msk.bf16.mxu1 %vm6049_vm2, %v6047_v0 }
 0x372   : > { %v1349_v53 = vpop.f32.mrb[8].mxu1 }
 0x373   : > { %v1356_v55 = vadd.f32 %v1349_v53, %v1234_v40  ;;  %v5370_v56 = vpop.f32.mrb[9].mxu1  ;;  %v5736_v40 = vld [vmem:[%s6097_s29 + $0x88] sm:$0xff]  }
 0x374   : > { %v1352_v57 = vpop.f32.mrb[10].mxu1 }
 0x375   : > { %v1365_v58 = vadd.f32 %v4836_v54, %v1356_v55  ;;  %v1357_v59 = vadd.f32 %v1352_v57, %v1237_v45  ;;  %v5371_v60 = vpop.f32.mrb[11].mxu1  ;;  %v5740_v45 = vld [vmem:[%s6097_s29 + $0xa8] sm:$0xff]  }
 0x377   : > { %v1367_v61 = vmax.f32 %v1365_v58, 0.0  ;;  %v1366_v62 = vadd.f32 %v4836_v54, %v1357_v59  ;;  %v4898_v58 = vld [vmem:[%s6959_s3] ss:$0 sm:$0xff]  ;;  %s6910_s3 = scalar_lea.vmem [#allocation10], %s6539_s1 }
 0x379   : > { %v1368_v63 = vmax.f32 %v1366_v62, 0.0  ;;  %1373 = vrot.lane.b32.xlu0 %v1367_v61, %s6908_s28 }
 0x37b   : > { %1375 = vrot.lane.b32.xlu1 %v1368_v63, %s6908_s28 }
 0x3eb   : > { %v1374_v1 = vpop.permute.xlu0 %1373 }
 0x3ec   : > { %1380 = vst.msk [vmem:[#allocation3 + $0x1] sm:$0xff] %vm1379_vm6, %v1374_v1  ;;  %vm2979_vm6 = vcmask 64512  }
 0x3ed   : > { %v1376_v2 = vpop.permute.xlu1 %1375 }
 0x3ee   : > { %1382 = vst.msk [vmem:[#allocation3 + $0x9] sm:$0x3f] %vm1381_vm7, %v1376_v2  ;;  %v5743_v2 = vld [vmem:[%s6951_s14] sm:$0xff]   ;;  %vm3122_vm7 = vcmask 523264  }
 0x3f3   : > { %v1383_v3 = vld [vmem:[#allocation3] sm:$0xff] }
 0x3f5   : > { %v1384_v4 = vld [vmem:[#allocation3 + $0x8] sm:$0xff] }
 0x3f6   : > { %v1385_v5 = vpack.c.bf16 %v1384_v4, %v1383_v3  ;;  %v5744_v3 = vld [vmem:[%s6951_s14 + $0x8] sm:$0xff]   ;;  %v5746_v4 = vld [vmem:[%s6951_s14 + $0x10] sm:$0xff]  }
 0x3f8   : > { %5373 = vmatpush3.bf16.msra.mxu0 %v1385_v5  ;;  %5379 = vmatpush3.bf16.msra.mxu1 %v1385_v5 }
 0x3f9   : > { %5424 = vmatprep.subr.bf16.mxu0 %v6047_v0  ;;  %5384 = vmatprep.subr.bf16.mxu1 %v6047_v0 }
 0x3fb   : > { %5381 = vmatmul.mubr.msk.bf16.vlgmr.msra.gmra.mrb[12].mxu1 %vm1387_vm8, %v4838_v6  ;;  %5375 = vmatmul.mubr.msk.bf16.vlgmr.msra.gmra.mrb[12].mxu0 %vm1387_vm8, %v1386_v7  ;;  %v6051_v7 = vmov 65535  }
 0x3fc   : > { %5425 = vmatpush3.bf16.msra.mxu0 %v1385_v5  ;;  %5426 = vmatprep.mubr.msk.bf16.mxu0 %vm6049_vm2, %v6047_v0  ;;  %v5748_v5 = vld [vmem:[%s6951_s14 + $0x18] sm:$0xff]  }
 0x3fd   : > { %5385 = vmatpush3.bf16.msra.mxu1 %v5719_v8  ;;  %5400 = vmatprep.mubr.msk.bf16.mxu1 %vm6049_vm2, %v6047_v0  ;;  %v1868_v8 = vsel %vm1866_vm12, 4294967295, %v6051_v7 }
 0x3fe   : > { %5386 = vmatprep.subr.bf16.mxu1 %v6047_v0  ;;  %5450 = vmatprep.subr.bf16.mxu0 %v6047_v0 }
 0x401   : > { %5387 = vmatpush3.bf16.msra.mxu1 %v5720_v9  ;;  %v1859_v9 = vld [vmem:[#allocation4 + $0x8] sm:$0x1] }
 0x402   : > { %5388 = vmatprep.subr.bf16.mxu1 %v6047_v0 }
 0x403   : > { %5427 = vmatmul.mubr.msk.bf16.vlgmr.msra.gmra.mrb[16].mxu0 %vm1387_vm8, %v4872_v10  ;;  %vm3502_vm8 = vcmask 916480  }
 0x404   : > { %5452 = vmatprep.mubr.msk.bf16.mxu0 %vm6049_vm2, %v6047_v0  ;;  %3720 = vst.msk [vmem:[#allocation6 + $0x8] sm:$0xff] %vm3502_vm8, %v6397_v42  ;;  %3722 = vst.msk [vmem:[#allocation6 + $0x18] sm:$0xff] %vm3502_vm8, %v6397_v42 }
 0x405   : > { %5389 = vmatpush3.bf16.msra.mxu1 %v5721_v11  ;;  %v1869_v11 = vsel %vm1867_vm13, %v1868_v8, 0  ;;  %3724 = vst.msk [vmem:[#allocation6 + $0x28] sm:$0xff] %vm3502_vm8, %v6397_v42  ;;  %vm3783_vm13 = vcmask 1047616  }
 0x406   : > { %5390 = vmatprep.subr.bf16.mxu1 %v6047_v0 }
 0x409   : > { %5391 = vmatpush3.bf16.msra.mxu1 %v5722_v12 }
 0x40a   : > { %5392 = vmatprep.subr.bf16.mxu1 %v6047_v0 }
 0x40d   : > { %5393 = vmatpush3.bf16.msra.mxu1 %v5723_v13 }
 0x40e   : > { %5394 = vmatprep.subr.bf16.mxu1 %v6047_v0 }
 0x411   : > { %5395 = vmatpush3.bf16.msra.mxu1 %v5724_v14  ;;  %v1861_v14 = vld [vmem:[%s6953_s8] sm:$0x3] }
 0x412   : > { %5396 = vmatprep.subr.bf16.mxu1 %v6047_v0 }
 0x415   : > { %5397 = vmatpush3.bf16.msra.mxu1 %v5725_v15  ;;  %v4900_v15 = vld [vmem:[%s6953_s8 + $0x2] sm:$0x3] }
 0x416   : > { %5398 = vmatprep.subr.bf16.mxu1 %v6047_v0 }
 0x419   : > { %5399 = vmatpush3.bf16.msra.mxu1 %v5726_v16  ;;  %v5745_v16 = vld [vmem:[%s6951_s14 + $0x24] sm:$0xff]  }
 0x41a   : > { %5404 = vmatprep.subr.bf16.mxu1 %v6047_v0 }
 0x4ce   : > { %v1487_v17 = vpop.f32.mrb[12].mxu1  ;;  %v1425_v19 = vpop.f32.mrb[12].mxu0 }
 0x4cf   : > { %v1493_v20 = vpack.c.bf16 %v1487_v17, %v1487_v17  ;;  %v5382_v21 = vpop.f32.mrb[13].mxu1  ;;  %v5376_v22 = vpop.f32.mrb[13].mxu0  ;;  %v1431_v38 = vpack.c.bf16 %v1425_v19, %v1425_v19  ;;  %v5747_v17 = vld [vmem:[%s6951_s14 + $0x2c] sm:$0xff]   ;;  %v5750_v19 = vld [vmem:[%s6951_s14 + $0x20] ss:$0 sps:$4 sm:$0xff]  }
 0x4d0   : > { %v1490_v23 = vpop.f32.mrb[14].mxu1  ;;  %v1428_v24 = vpop.f32.mrb[14].mxu0  ;;  %v5751_v21 = vld [vmem:[%s6951_s14 + $0x3c] sm:$0xff]   ;;  %v5752_v22 = vld [vmem:[%s6951_s14 + $0x44] ss:$0 sps:$4 sm:$0xff]  }
 0x4d1   : > { %v5383_v25 = vpop.f32.mrb[15].mxu1  ;;  %5401 = vmatmul.mubr.bf16.vlgmr.msra.gmra.mrb[16].mxu1 %v1493_v20  ;;  %v5377_v26 = vpop.f32.mrb[15].mxu0  ;;  %v2083_v20 = vsel %vm1866_vm12, %v5750_v19, 0  ;;  %v2010_v23 = vsel %vm1866_vm12, %v5752_v22, 0  ;;  %v5779_v19 = vld [vmem:[%s6122_s24 + $0x50] ss:$8 sps:$4 sm:$0xff]  }
 0x4d2   : > { %5405 = vmatpush3.bf16.msra.mxu1 %v5727_v18  ;;  %5420 = vmatprep.mubr.msk.bf16.mxu1 %vm6049_vm2, %v6047_v0  ;;  %v5749_v18 = vld [vmem:[%s6951_s14 + $0x34] sm:$0xff]   ;;  %v5783_v22 = vld [vmem:[%s6954_s6 + $0x8] sm:$0xff]  }
 0x4d3   : > { %5406 = vmatprep.subr.bf16.mxu1 %v6047_v0 }
 0x4d6   : > { %5407 = vmatpush3.bf16.msra.mxu1 %v5728_v27  ;;  %v1726_v29 = vpop.f32.mrb[16].mxu0 }
 0x4d7   : > { %5408 = vmatprep.subr.bf16.mxu1 %v6047_v0  ;;  %v5428_v30 = vpop.f32.mrb[17].mxu0  ;;  %v1732_v47 = vpack.c.bf16 %v1726_v29, %v1726_v29 }
 0x4d8   : > { %v1729_v31 = vpop.f32.mrb[18].mxu0 }
 0x4d9   : > { %v5429_v32 = vpop.f32.mrb[19].mxu0 }
 0x4da   : > { %5409 = vmatpush3.bf16.msra.mxu1 %v5729_v28 }
 0x4db   : > { %5410 = vmatprep.subr.bf16.mxu1 %v6047_v0 }
 0x4de   : > { %5411 = vmatpush3.bf16.msra.mxu1 %v5730_v33 }
 0x4df   : > { %5412 = vmatprep.subr.bf16.mxu1 %v6047_v0 }
 0x4e2   : > { %5413 = vmatpush3.bf16.msra.mxu1 %v5731_v34  ;;  %v4923_v34 = vld [vmem:[%s6953_s8 + $0x4] sm:$0x3]  ;;  %s6056_s8 = smov 120  }
 0x4e3   : > { %5414 = vmatprep.subr.bf16.mxu1 %v6047_v0 }
 0x4e6   : > { %5415 = vmatpush3.bf16.msra.mxu1 %v5732_v35  ;;  %v5753_v35 = vld [vmem:[%s6951_s14 + $0x48] sm:$0xff]  }
 0x4e7   : > { %5416 = vmatprep.subr.bf16.mxu1 %v6047_v0 }
 0x4ea   : > { %5417 = vmatpush3.bf16.msra.mxu1 %v5733_v36  ;;  %v5754_v36 = vld [vmem:[%s6951_s14 + $0x50] sm:$0xff]  }
 0x4eb   : > { %5418 = vmatprep.subr.bf16.mxu1 %v6047_v0 }
 0x4ee   : > { %5419 = vmatpush3.bf16.msra.mxu1 %v5734_v37  ;;  %v5755_v37 = vld [vmem:[%s6951_s14 + $0x58] sm:$0xff]  }
 0x4ef   : > { %5430 = vmatprep.subr.bf16.mxu1 %v6047_v0 }
 0x4f1   : > { %5421 = vmatmul.mubr.bf16.vlgmr.msra.gmra.mrb[20].mxu1 %v1431_v38  ;;  %v5756_v38 = vld [vmem:[%s6951_s14 + $0x60] sm:$0xff]  }
 0x4f2   : > { %5431 = vmatpush3.bf16.msra.mxu1 %v5735_v39  ;;  %5446 = vmatprep.mubr.msk.bf16.mxu1 %vm6049_vm2, %v6047_v0  ;;  %v5757_v39 = vld [vmem:[%s6951_s14 + $0x68] ss:$0 sps:$4 sm:$0xff]   ;;  %s5925_s14 = sshll.u32 %s6057_s13, 4  ;;  %s5926_s14 = int_to_ptr.vmem [resolvable:$false] %s5925_s14 }
 0x4f3   : > { %5432 = vmatprep.subr.bf16.mxu1 %v6047_v0  ;;  %v5741_v0 = vld [vmem:[%s6097_s29 + $0xb0] sm:$0xff]   ;;  %s5927_s17 = scalar_lea.vmem %s5926_s14, 32 }
 0x4f6   : > { %5433 = vmatpush3.bf16.msra.mxu1 %v5736_v40  ;;  %v2212_v40 = vsel %vm1866_vm12, %v5757_v39, 0 }
 0x4f7   : > { %5434 = vmatprep.subr.bf16.mxu1 %v6397_v42 }
 0x4fa   : > { %5435 = vmatpush3.bf16.msra.mxu1 %v5737_v41 }
 0x4fb   : > { %5436 = vmatprep.subr.bf16.mxu1 %v6397_v42 }
 0x4fe   : > { %5437 = vmatpush3.bf16.msra.mxu1 %v5738_v43 }
 0x4ff   : > { %5438 = vmatprep.subr.bf16.mxu1 %v6397_v42 }
 0x502   : > { %5439 = vmatpush3.bf16.msra.mxu1 %v5739_v44 }
 0x503   : > { %5440 = vmatprep.subr.bf16.mxu1 %v6397_v42 }
 0x506   : > { %5441 = vmatpush3.bf16.msra.mxu1 %v5740_v45 }
 0x507   : > { %5442 = vmatprep.subr.bf16.mxu1 %v6397_v42 }
 0x50a   : > { %5443 = vmatpush3.bf16.msra.mxu1 %v5741_v0 }
 0x50b   : > { %5444 = vmatprep.subr.bf16.mxu1 %v6397_v42 }
 0x50e   : > { %5445 = vmatpush3.bf16.msra.mxu1 %v5742_v46 }
 0x50f   : > { %5476 = vmatprep.subr.bf16.mxu1 %v6397_v42 }
 0x511   : > { %5447 = vmatmul.mubr.bf16.vlgmr.msra.gmra.mrb[24].mxu1 %v1732_v47 }
 0x512   : > { %5486 = vmatprep.mubr.msk.bf16.mxu1 %vm6049_vm2, %v6397_v42  ;;  %5477 = vmatpush3.bf16.msra.mxu1 %v5743_v2 }
 0x513   : > { %5478 = vmatprep.subr.bf16.mxu1 %v6397_v42 }
 0x516   : > { %5479 = vmatpush3.bf16.msra.mxu1 %v5744_v3  ;;  %v4940_v3 = vld [vmem:[%s6960_s19] ss:$0 sm:$0xff] }
 0x517   : > { %5480 = vmatprep.subr.bf16.mxu1 %v6397_v42 }
 0x51a   : > { %5481 = vmatpush3.bf16.msra.mxu1 %v5746_v4 }
 0x51b   : > { %5482 = vmatprep.subr.bf16.mxu1 %v6397_v42 }
 0x51e   : > { %5483 = vmatpush3.bf16.msra.mxu1 %v5748_v5 }
 0x51f   : > { %5484 = vmatprep.subr.bf16.mxu1 %v6397_v42 }
 0x522   : > { %5485 = vmatpush3.bf16.msra.mxu1 %v2083_v20 }
 0x5a4   : > { %v1593_v48 = vpop.f32.mrb[16].mxu1 }
 0x5a5   : > { %v5402_v49 = vpop.f32.mrb[17].mxu1 }
 0x5a6   : > { %v1596_v50 = vpop.f32.mrb[18].mxu1 }
 0x5a7   : > { %v5403_v51 = vpop.f32.mrb[19].mxu1 }
 0x5c4   : > { %v1681_v52 = vpop.f32.mrb[20].mxu1 }
 0x5c5   : > { %v1682_v53 = vadd.f32 %v1681_v52, %v1593_v48  ;;  %v5422_v54 = vpop.f32.mrb[21].mxu1 }
 0x5c6   : > { %v1684_v55 = vpop.f32.mrb[22].mxu1 }
 0x5c7   : > { %v5423_v56 = vpop.f32.mrb[23].mxu1  ;;  %v5760_v55 = vld [vmem:[%s6122_s24 + $0x24] ss:$8 sps:$4 sm:$0xff]  }
 0x5c8   : > { %v5758_v56 = vld [vmem:[%s6122_s24 + $0x20] ss:$8 sps:$4 sm:$0xff]   ;;  %2300 = vmatprep.subr.bf16.mxu1 %v5760_v55 }
 0x5e4   : > { %v1832_v57 = vpop.f32.mrb[24].mxu1 }
 0x5e5   : > { %v1838_v59 = vadd.f32 %v1832_v57, %v1682_v53  ;;  %v5448_v60 = vpop.f32.mrb[25].mxu1  ;;  %v5763_v57 = vld [vmem:[%s6122_s24 + $0x64] ss:$8 sps:$4 sm:$0xff]  }
 0x5e6   : > { %v1835_v61 = vpop.f32.mrb[26].mxu1  ;;  %v5764_v60 = vld [vmem:[%s6122_s24 + $0x30] ss:$8 sps:$4 sm:$0xff]  }
 0x5e7   : > { %v1846_v62 = vadd.f32 %v4898_v58, %v1838_v59  ;;  %v5449_v63 = vpop.f32.mrb[27].mxu1  ;;  %v5761_v58 = vld [vmem:[%s6122_s24 + $0x60] ss:$8 sps:$4 sm:$0xff]   ;;  %v5766_v59 = vld [vmem:[%s6122_s24 + $0x34] ss:$8 sps:$4 sm:$0xff]  }
 0x5e8   : > { %v5769_v61 = vld [vmem:[%s6122_s24 + $0x74] ss:$8 sps:$4 sm:$0xff]   ;;  %v5772_v63 = vld [vmem:[%s6122_s24 + $0x4] ss:$8 sps:$4 sm:$0xff]  }
 0x5e9   : > { %v1847_v1 = vmax.f32 %v1846_v62, 0.0  ;;  %v5767_v62 = vld [vmem:[%s6122_s24 + $0x70] ss:$8 sps:$4 sm:$0xff]  }
 0x5eb   : > { %1853 = vrot.lane.b32.xlu0 %v1847_v1, %s6908_s28  ;;  %v6052_v1 = vmov 0   ;;  %s6964_s28 = sld [smem:[#allocation26_spill]] }
 0x65d   : > { %v1854_v6 = vpop.permute.xlu0 %1853 }
 0x65e   : > { %1857 = vst.msk [vmem:[#allocation4 + $0x1] sm:$0x7f] %vm1856_vm11, %v1854_v6  ;;  %vm3779_vm11 = vcmask 1047617  }
 0x665   : > { %v1858_v10 = vld [vmem:[#allocation4] sm:$0xff] }
 0x666   : > { %v1860_v12 = vpack.c.bf16 %v1859_v9, %v1858_v10 }
 0x668   : > { %v1871_v13 = vand.u32 %v1869_v11, %v1860_v12  ;;  %v5770_v11 = vld [vmem:[%s6122_s24] ss:$8 sps:$4 sm:$0xff]  }
 0x66a   : > { %5451 = vmatpush3.bf16.msra.mxu0 %v1871_v13 }
 0x66b   : > { %5456 = vmatprep.subr.bf16.mxu0 %v6397_v42 }
 0x66d   : > { %5453 = vmatmul.mubr.msk.bf16.vlgmr.msra.gmra.mrb[20].mxu0 %vm1862_vm14, %v1861_v14 }
 0x66e   : > { %5457 = vmatpush3.bf16.msra.mxu0 %v1871_v13  ;;  %5458 = vmatprep.mubr.msk.bf16.mxu0 %vm6049_vm2, %v6397_v42 }
 0x66f   : > { %5462 = vmatprep.subr.bf16.mxu0 %v6397_v42 }
 0x675   : > { %5459 = vmatmul.mubr.msk.bf16.vlgmr.msra.gmra.mrb[24].mxu0 %vm1862_vm14, %v4900_v15  ;;  %v5773_v15 = vld [vmem:[%s6122_s24 + $0x10] ss:$8 sps:$4 sm:$0xff]  }
 0x676   : > { %5463 = vmatpush3.bf16.msra.mxu0 %v5745_v16  ;;  %5472 = vmatprep.mubr.msk.bf16.mxu0 %vm6049_vm2, %v6397_v42  ;;  %v5778_v16 = vld [vmem:[%s6122_s24 + $0x44] ss:$8 sps:$4 sm:$0xff]  }
 0x677   : > { %5464 = vmatprep.subr.bf16.mxu0 %v6397_v42 }
 0x67a   : > { %5465 = vmatpush3.bf16.msra.mxu0 %v5747_v17  ;;  %v5776_v17 = vld [vmem:[%s6122_s24 + $0x40] ss:$8 sps:$4 sm:$0xff]  }
 0x67b   : > { %5466 = vmatprep.subr.bf16.mxu0 %v6397_v42 }
 0x67e   : > { %5467 = vmatpush3.bf16.msra.mxu0 %v5749_v18  ;;  %v5781_v18 = vld [vmem:[%s6122_s24 + $0x54] ss:$8 sps:$4 sm:$0xff]  }
 0x67f   : > { %5468 = vmatprep.subr.bf16.mxu0 %v6397_v42 }
 0x682   : > { %5469 = vmatpush3.bf16.msra.mxu0 %v5751_v21  ;;  %v5782_v21 = vld [vmem:[%s6954_s6] sm:$0xff]  }
 0x683   : > { %5470 = vmatprep.subr.bf16.mxu0 %v6397_v42 }
 0x686   : > { %5471 = vmatpush3.bf16.msra.mxu0 %v2010_v23  ;;  %v2549_v23 = vlaneseq }
 0x687   : > { %5490 = vmatprep.subr.bf16.mxu0 %v6397_v42 }
 0x740   : > { %v1907_v24 = vpop.f32.mrb[20].mxu0 }
 0x741   : > { %v1913_v25 = vpack.c.bf16 %v1907_v24, %v1907_v24  ;;  %v5454_v26 = vpop.f32.mrb[21].mxu0  ;;  %v5784_v24 = vld [vmem:[%s6954_s6 + $0x10] sm:$0xff]  }
 0x742   : > { %v1910_v27 = vpop.f32.mrb[22].mxu0  ;;  %v6511_v26 = vld [vmem:[%s961_s23] sm:$0x3]  ;;  %s6963_s23 = sld [smem:[#allocation23_spill]] }
 0x743   : > { %v5455_v28 = vpop.f32.mrb[23].mxu0  ;;  %5487 = vmatmul.mubr.msk.bf16.vlgmr.msra.gmra.mrb[28].mxu1 %vm1848_vm9, %v1913_v25  ;;  %v6508_v25 = vshrl.u32 %v2549_v23, 7  ;;  %v5785_v27 = vld [vmem:[%s6954_s6 + $0x18] sm:$0xff]  }
 0x744   : > { %2301 = vmatpush1.bf16.msra.mxu1 %v5758_v56  ;;  %2332 = vmatprep.mubr.bf16.mxu1 %v6052_v1 }
 0x745   : > { %2302 = vmatprep.subr.bf16.mxu1 %v5766_v59  ;;  %v6515_v28 = vsub.s32 1, %v6508_v25 }
 0x748   : > { %v1962_v29 = vpop.f32.mrb[24].mxu0  ;;  %2303 = vmatpush1.bf16.msra.mxu1 %v5764_v60 }
 0x749   : > { %v1968_v30 = vpack.c.bf16 %v1962_v29, %v1962_v29  ;;  %v5460_v31 = vpop.f32.mrb[25].mxu0  ;;  %2363 = vmatprep.subr.bf16.mxu1 %v5772_v63  ;;  %v5786_v29 = vld [vmem:[%s6954_s6 + $0x20] sm:$0xff]  }
 0x74a   : > { %v1965_v32 = vpop.f32.mrb[26].mxu0  ;;  %v2593_v31 = vld [vmem:[%s6962_s12] sm:$0x3] }
 0x74b   : > { %v5461_v33 = vpop.f32.mrb[27].mxu0  ;;  %5473 = vmatmul.mubr.msk.bf16.vlgmr.msra.gmra.mrb[28].mxu0 %vm1848_vm9, %v1968_v30  ;;  %v2590_v30 = vrot.slane %v6511_v26, %v6515_v28  ;;  %v2600_v32 = vsel %vm2598_vm1, %v2593_v31, 0 }
 0x74c   : > { %5491 = vmatpush3.bf16.msra.mxu0 %v1871_v13  ;;  %5492 = vmatprep.mubr.msk.bf16.mxu0 %vm6049_vm2, %v6397_v42  ;;  %v5775_v13 = vld [vmem:[%s6122_s24 + $0x14] ss:$8 sps:$4 sm:$0xff]  }
 0x74d   : > { %5496 = vmatprep.subr.bf16.mxu0 %v6397_v42  ;;  %v2592_v33 = vpack.c.bf16 %v2590_v30, %v2590_v30 }
 0x753   : > { %5493 = vmatmul.mubr.msk.bf16.vlgmr.msra.gmra.mrb[32].mxu0 %vm1862_vm14, %v4923_v34  ;;  %v5787_v34 = vld [vmem:[%s6954_s6 + $0x28] sm:$0xff]   ;;  %vm3785_vm14 = vcmask 850944  }
 0x754   : > { %5506 = vmatprep.mubr.msk.bf16.mxu0 %vm6049_vm2, %v6397_v42  ;;  %5497 = vmatpush3.bf16.msra.mxu0 %v5753_v35  ;;  %v5788_v35 = vld [vmem:[%s6954_s6 + $0x30] sm:$0xff]  }
 0x755   : > { %5498 = vmatprep.subr.bf16.mxu0 %v6397_v42 }
 0x758   : > { %5499 = vmatpush3.bf16.msra.mxu0 %v5754_v36  ;;  %v5789_v36 = vld [vmem:[%s6954_s6 + $0x38] sm:$0xff]   ;;  %s6055_s6 = smov 32  }
 0x759   : > { %5500 = vmatprep.subr.bf16.mxu0 %v6397_v42 }
 0x75c   : > { %5501 = vmatpush3.bf16.msra.mxu0 %v5755_v37 }
 0x75d   : > { %5502 = vmatprep.subr.bf16.mxu0 %v6397_v42 }
 0x760   : > { %5503 = vmatpush3.bf16.msra.mxu0 %v5756_v38 }
 0x761   : > { %5504 = vmatprep.subr.bf16.mxu0 %v6397_v42 }
 0x764   : > { %5505 = vmatpush3.bf16.msra.mxu0 %v2212_v40 }
 0x765   : > { %2504 = vmatprep.subr.bf16.mxu0 %v5763_v57 }
 0x816   : > { %v2119_v41 = vpop.f32.mrb[28].mxu1 }
 0x817   : > { %v5488_v43 = vpop.f32.mrb[29].mxu1 }
 0x818   : > { %v2122_v44 = vpop.f32.mrb[30].mxu1 }
 0x819   : > { %v5489_v45 = vpop.f32.mrb[31].mxu1 }
 0x81e   : > { %v2046_v0 = vpop.f32.mrb[28].mxu0 }
 0x81f   : > { %v2120_v46 = vadd.f32 %v2119_v41, %v2046_v0  ;;  %v5474_v47 = vpop.f32.mrb[29].mxu0 }
 0x820   : > { %v2049_v48 = vpop.f32.mrb[30].mxu0 }
 0x821   : > { %v5475_v49 = vpop.f32.mrb[31].mxu0 }
 0x826   : > { %v2164_v50 = vpop.f32.mrb[32].mxu0 }
 0x827   : > { %v2170_v51 = vpack.c.bf16 %v2164_v50, %v2164_v50  ;;  %v5494_v52 = vpop.f32.mrb[33].mxu0 }
 0x828   : > { %v2167_v53 = vpop.f32.mrb[34].mxu0  ;;  %v2547_v52 = vld [vmem:[%s6963_s23] sm:$0x3]  ;;  %s6911_s23 = scalar_lea.vmem [#allocation8], %s6539_s1 }
 0x829   : > { %v5495_v54 = vpop.f32.mrb[35].mxu0  ;;  %5507 = vmatmul.mubr.msk.bf16.vlgmr.msra.gmra.mrb[36].mxu0 %vm1848_vm9, %v2170_v51  ;;  %v2551_v51 = vsub.s32 0, %v6508_v25  ;;  %vm3736_vm9 = vcmask 1040384  }
 0x82a   : > { %2505 = vmatpush1.bf16.msra.mxu0 %v5761_v58  ;;  %2536 = vmatprep.mubr.bf16.mxu0 %v6052_v1  ;;  %v2556_v58 = vrot.slane %v2547_v52, %v6515_v28 }
 0x82b   : > { %2506 = vmatprep.subr.bf16.mxu0 %v5769_v61  ;;  %v2552_v55 = vrot.slane %v2547_v52, %v2551_v51 }
 0x82e   : > { %2507 = vmatpush1.bf16.msra.mxu0 %v5767_v62 }
 0x82f   : > { %5516 = vmatprep.subr.bf16.mxu0 %v6397_v42 }
 0x8fc   : > { %v2248_v2 = vpop.f32.mrb[36].mxu0 }
 0x8fd   : > { %v2254_v4 = vadd.f32 %v2248_v2, %v2120_v46  ;;  %v5508_v5 = vpop.f32.mrb[37].mxu0 }
 0x8fe   : > { %v2251_v6 = vpop.f32.mrb[38].mxu0 }
 0x8ff   : > { %v2262_v7 = vadd.f32 %v4940_v3, %v2254_v4  ;;  %v5509_v8 = vpop.f32.mrb[39].mxu0 }
 0x901   : > { %v2263_v9 = vmax.f32 %v2262_v7, 0.0 }
 0x903   : > { %v2264_v10 = vpack.c.bf16 %v2263_v9, %v2263_v9 }
 0x905   : > { %v2274_v12 = vshrl.u32 %v2264_v10, 16  ;;  %v2409_v20 = vrot.slane %v2264_v10, 1 }
 0x907   : > { %v2480_v14 = vrot.slane %v2274_v12, 1  ;;  %4945 = vmatmul.mubr.msk.bf16.vlgmr.msra.gmra.mrb[32].mxu1 %vm2296_vm15, %v2274_v12 }
 0x908   : > { %2364 = vmatpush1.bf16.msra.mxu1 %v5770_v11  ;;  %2395 = vmatprep.mubr.bf16.mxu1 %v6052_v1 }
 0x909   : > { %4960 = vmatmul.mubr.msk.bf16.vlgmr.msra.gmra.mrb[40].mxu0 %vm2296_vm15, %v2480_v14  ;;  %2365 = vmatprep.subr.bf16.mxu1 %v5775_v13  ;;  %v2730_v14 = vld [vmem:[%s6964_s28] sm:$0x1]  ;;  %s6966_s28 = sld [smem:[#allocation28_spill]] }
 0x90a   : > { %5532 = vmatprep.mubr.msk.bf16.mxu0 %vm6049_vm2, %v6397_v42  ;;  %5517 = vmatpush3.bf16.msra.mxu0 %v5782_v21 }
 0x90b   : > { %5518 = vmatprep.subr.bf16.mxu0 %v6397_v42 }
 0x90c   : > { %2366 = vmatpush1.bf16.msra.mxu1 %v5773_v15 }
 0x90d   : > { %2433 = vmatprep.subr.bf16.mxu1 %v5778_v16 }
 0x90e   : > { %5519 = vmatpush3.bf16.msra.mxu0 %v5783_v22 }
 0x90f   : > { %4950 = vmatmul.mubr.msk.bf16.vlgmr.msra.gmra.mrb[36].mxu1 %vm2296_vm15, %v2264_v10  ;;  %5520 = vmatprep.subr.bf16.mxu0 %v6397_v42  ;;  %v5790_v30 = vld [vmem:[%s6966_s28 + $0x10] sm:$0xff]   ;;  %v5791_v31 = vld [vmem:[%s6966_s28 + $0x18] sm:$0xff]  }
 0x910   : > { %2434 = vmatpush1.bf16.msra.mxu1 %v5776_v17  ;;  %2465 = vmatprep.mubr.bf16.mxu1 %v6052_v1 }
 0x911   : > { %2435 = vmatprep.subr.bf16.mxu1 %v5781_v18 }
 0x912   : > { %5521 = vmatpush3.bf16.msra.mxu0 %v5784_v24 }
 0x913   : > { %5522 = vmatprep.subr.bf16.mxu0 %v6397_v42 }
 0x914   : > { %2436 = vmatpush1.bf16.msra.mxu1 %v5779_v19 }
 0x915   : > { %5510 = vmatprep.subr.bf16.mxu1 %v6397_v42 }
 0x916   : > { %5523 = vmatpush3.bf16.msra.mxu0 %v5785_v27 }
 0x917   : > { %4955 = vmatmul.mubr.msk.bf16.vlgmr.msra.gmra.mrb[40].mxu1 %vm2296_vm15, %v2409_v20  ;;  %5524 = vmatprep.subr.bf16.mxu0 %v6397_v42 }
 0x918   : > { %5512 = vmatprep.mubr.msk.bf16.mxu1 %vm6049_vm2, %v6397_v42  ;;  %5511 = vmatpush3.bf16.msra.mxu1 %v2600_v32 }
 0x919   : > { %5536 = vmatprep.subr.bf16.mxu1 %v6397_v42 }
 0x91a   : > { %5525 = vmatpush3.bf16.msra.mxu0 %v5786_v29 }
 0x91b   : > { %5526 = vmatprep.subr.bf16.mxu0 %v6397_v42 }
 0x91e   : > { %5527 = vmatpush3.bf16.msra.mxu0 %v5787_v34 }
 0x91f   : > { %5513 = vmatmul.mubr.msk.bf16.vlgmr.msra.gmra.mrb[44].mxu1 %vm2594_vm3, %v2592_v33  ;;  %5528 = vmatprep.subr.bf16.mxu0 %v6397_v42 }
 0x920   : > { %5538 = vmatprep.mubr.msk.bf16.mxu1 %vm6049_vm2, %v6397_v42 }
 0x922   : > { %5529 = vmatpush3.bf16.msra.mxu0 %v5788_v35 }
 0x923   : > { %5530 = vmatprep.subr.bf16.mxu0 %v6397_v42 }
 0x926   : > { %5531 = vmatpush3.bf16.msra.mxu0 %v5789_v36 }
 0x927   : > { %5564 = vmatprep.subr.bf16.mxu0 %v6397_v42 }
 0x9da   : > { %v2334_v37 = vpop.f32.mrb[32].mxu1 }
 0x9db   : > { %v2336_v38 = vpop.f32.mrb[33].mxu1 }
 0x9dc   : > { %v2338_v39 = vpop.f32.mrb[34].mxu1  ;;  %v2538_v40 = vpop.f32.mrb[40].mxu0 }
 0x9dd   : > { %v2339_v41 = vpop.f32.mrb[35].mxu1  ;;  %v2540_v43 = vpop.f32.mrb[41].mxu0 }
 0x9de   : > { %v2542_v44 = vpop.f32.mrb[42].mxu0 }
 0x9df   : > { %v2543_v45 = vpop.f32.mrb[43].mxu0 }
 0x9e2   : > { %v2397_v0 = vpop.f32.mrb[36].mxu1 }
 0x9e3   : > { %v2398_v46 = vadd.f32 %v2397_v0, %v2334_v37  ;;  %v2399_v47 = vpop.f32.mrb[37].mxu1  ;;  %v5792_v37 = vld [vmem:[%s6966_s28] sm:$0xff]  }
 0x9e4   : > { %v2400_v48 = vadd.f32 %v2399_v47, %v2336_v38  ;;  %v2401_v49 = vpop.f32.mrb[38].mxu1 }
 0x9e5   : > { %v2402_v50 = vpop.f32.mrb[39].mxu1 }
 0x9ea   : > { %v2467_v53 = vpop.f32.mrb[40].mxu1 }
 0x9eb   : > { %v2474_v54 = vadd.f32 %v2467_v53, %v2398_v46  ;;  %v2469_v56 = vpop.f32.mrb[41].mxu1 }
 0x9ec   : > { %v2475_v57 = vadd.f32 %v2469_v56, %v2400_v48  ;;  %v2471_v59 = vpop.f32.mrb[42].mxu1 }
 0x9ed   : > { %v2545_v60 = vadd.f32 %v2538_v40, %v2474_v54  ;;  %v2472_v61 = vpop.f32.mrb[43].mxu1 }
 0x9ee   : > { %v2546_v62 = vadd.f32 %v2540_v43, %v2475_v57  ;;  %v5793_v43 = vld [vmem:[%s6966_s28 + $0x8] sm:$0xff]  }
 0x9ef   : > { %v2559_v63 = vadd.f32 %v2552_v55, %v2545_v60 }
 0x9f0   : > { %v2560_v2 = vadd.f32 %v2556_v58, %v2546_v62 }
 0x9f1   : > { %2561 = vst [vmem:[%s6911_s23] sm:$0x1] %v2559_v63  ;;  %s6965_s23 = sld [smem:[#allocation27_spill]] }
 0x9f2   : > { %v2564_v3 = vmul.f32 0.5, %v2560_v2  ;;  %2562 = vst [vmem:[%s6910_s3] sm:$0x1] %v2560_v2  ;;  %v2636_v9 = vpop.f32.mrb[44].mxu1  ;;  %s6053_s3 = smov 64  }
 0x9f3   : > { %v5514_v10 = vpop.f32.mrb[45].mxu1 }
 0x9f4   : > { %v2565_v4 = vmul.f32 1.442695, %v2564_v3  ;;  %v2639_v11 = vpop.f32.mrb[46].mxu1 }
 0x9f5   : > { %v5515_v12 = vpop.f32.mrb[47].mxu1 }
 0x9f6   : > { %5901 = vpow2.f32 %v2565_v4 }
 0x9f7   : > { %v2749_v27 = vld [vmem:[%s6965_s23] sm:$0xf]  ;;  %v4971_v29 = vld [vmem:[%s6965_s23 + $0x4] sm:$0xf] }
 0xa00   : > { %v5902_v5 = vpop.eup %5901 }
 0xa01   : > { %v2567_v6 = vmul.f32 %v5902_v5, %v6511_v26 }
 0xa03   : > { %v2568_v7 = vadd.f32 %v2567_v6, %v2559_v63 }
 0xa05   : > { %v2569_v8 = vpack.c.bf16 %v2568_v7, %v2568_v7 }
 0xa07   : > { %5533 = vmatmul.mubr.bf16.vlgmr.msra.gmra.mrb[44].mxu0 %v2569_v8 }
 0xa08   : > { %5566 = vmatprep.mubr.msk.bf16.mxu0 %vm6049_vm2, %v6397_v42 }
 0xada   : > { %v2724_v13 = vpop.f32.mrb[44].mxu0 }
 0xadb   : > { %v2725_v15 = vadd.f32 %v2724_v13, %v2636_v9  ;;  %v5534_v16 = vpop.f32.mrb[45].mxu0 }
 0xadc   : > { %v2727_v17 = vpop.f32.mrb[46].mxu0 }
 0xadd   : > { %v2731_v18 = vadd.f32 %v2730_v14, %v2725_v15  ;;  %v5535_v19 = vpop.f32.mrb[47].mxu0 }
 0xadf   : > { %2739 = vrot.lane.b32.xlu0 %v2731_v18, %s6053_s3  ;;  %2735 = vrot.lane.b32.xlu1 %v2731_v18, %s6054_s5  ;;  %2733 = vst.msk [vmem:[#allocation7] sm:$0x1] %vm2732_vm4, %v2731_v18  ;;  %s6967_s5 = sld [smem:[#allocation29_spill]]  ;;  %s6968_s3 = sld [smem:[#allocation30_spill]] }
 0xae3   : > { %2743 = vrot.lane.b32.xlu1 %v2731_v18, %s6055_s6  ;;  %s6969_s6 = sld [smem:[#allocation31_spill]] }
 0xae5   : > { %v4983_v49 = vld [vmem:[%s6967_s5] ss:$0 sm:$0xff]  ;;  %v5794_v59 = vld [vmem:[%s6968_s3 + $0x8] sm:$0xff]   ;;  %s6970_s5 = sld [smem:[#allocation32_spill]] }
 0xae6   : > { %v5795_v60 = vld [vmem:[%s6968_s3] sm:$0xff]   ;;  %s6971_s3 = smov 8  }
 0xae9   : > { %v5796_v61 = vld [vmem:[%s6969_s6 + $0x20] sm:$0xff]   ;;  %v5797_v62 = vld [vmem:[%s6969_s6 + $0x28] sm:$0xff]   ;;  %v5798_v63 = vld [vmem:[%s6969_s6 + $0x30] sm:$0xff]  }
 0xaea   : > { %v5799_v2 = vld [vmem:[%s6969_s6 + $0x38] sm:$0xff]   ;;  %v5800_v9 = vld [vmem:[%s6969_s6] sm:$0xff]   ;;  %v5801_v15 = vld [vmem:[%s6969_s6 + $0x8] sm:$0xff]  }
 0xaeb   : > { %v5008_v3 = vld [vmem:[%s6970_s5] ss:$0 sm:$0xff]  ;;  %s6972_s5 = sld [smem:[#allocation33_spill]]  ;;  %v5802_v16 = vld [vmem:[%s6969_s6 + $0x10] sm:$0xff]   ;;  %v5803_v17 = vld [vmem:[%s6969_s6 + $0x18] sm:$0xff]   ;;  %s6973_s6 = sld [smem:[#allocation34_spill]] }
 0xaec   : > { %3245 = vrot.lane.b32.xlu0 %v5008_v3, %s6971_s3 }
 0xaf1   : > { %v5829_v3 = vld [vmem:[%s6973_s6] ss:$8 sps:$4 sm:$0xff]  }
 0xb51   : > { %v2740_v20 = vpop.permute.xlu0 %2739  ;;  %v2736_v21 = vpop.permute.xlu1 %2735 }
 0xb52   : > { %2742 = vst.msk [vmem:[#allocation7 + $0x2] sm:$0x1] %vm2732_vm4, %v2740_v20  ;;  %2738 = vst.msk [vmem:[#allocation7 + $0x1] sm:$0x1] %vm2732_vm4, %v2736_v21 }
 0xb55   : > { %v2744_v22 = vpop.permute.xlu1 %2743 }
 0xb56   : > { %2746 = vst.msk [vmem:[#allocation7 + $0x3] sm:$0x1] %vm2732_vm4, %v2744_v22  ;;  %v5804_v22 = vld [vmem:[%s6972_s5] sm:$0xff]  }
 0xb5d   : > { %v2747_v23 = vld [vmem:[#allocation7] sm:$0xf] }
 0xb5e   : > { %v2748_v24 = vpack.c.bf16 %v2747_v23, %v2747_v23  ;;  %v3246_v23 = vpop.permute.xlu0 %3245 }
 0xb60   : > { %v2754_v26 = vsel %vm2598_vm1, %v2748_v24, 0  ;;  %vm3791_vm1 = vcmask 847872  }
 0xb61   : > { %5537 = vmatpush3.bf16.msra.mxu1 %v2754_v26 }
 0xb62   : > { %5542 = vmatprep.subr.bf16.mxu1 %v6397_v42 }
 0xb64   : > { %5539 = vmatmul.mubr.msk.bf16.vlgmr.msra.gmra.mrb[48].mxu1 %vm2594_vm3, %v2749_v27 }
 0xb65   : > { %5543 = vmatpush3.bf16.msra.mxu1 %v2754_v26  ;;  %5544 = vmatprep.mubr.msk.bf16.mxu1 %vm6049_vm2, %v6397_v42 }
 0xb66   : > { %5548 = vmatprep.subr.bf16.mxu1 %v6397_v42 }
 0xb6c   : > { %5545 = vmatmul.mubr.msk.bf16.vlgmr.msra.gmra.mrb[52].mxu1 %vm2594_vm3, %v4971_v29 }
 0xb6d   : > { %5552 = vmatprep.mubr.msk.bf16.mxu1 %vm6049_vm2, %v6397_v42  ;;  %5549 = vmatpush3.bf16.msra.mxu1 %v5790_v30 }
 0xb6e   : > { %5550 = vmatprep.subr.bf16.mxu1 %v6397_v42 }
 0xb71   : > { %5551 = vmatpush3.bf16.msra.mxu1 %v5791_v31 }
 0xb72   : > { %5556 = vmatprep.subr.bf16.mxu1 %v6397_v42 }
 0xc37   : > { %v2790_v32 = vpop.f32.mrb[48].mxu1 }
 0xc38   : > { %v5540_v33 = vpop.f32.mrb[49].mxu1  ;;  %v2796_v44 = vpack.c.bf16 %v2790_v32, %v2790_v32 }
 0xc39   : > { %v2793_v34 = vpop.f32.mrb[50].mxu1 }
 0xc3a   : > { %v5541_v35 = vpop.f32.mrb[51].mxu1 }
 0xc3b   : > { %v5805_v35 = vld [vmem:[%s6972_s5 + $0x8] sm:$0x3f]  }
 0xc3f   : > { %v2840_v36 = vpop.f32.mrb[52].mxu1 }
 0xc40   : > { %v2846_v38 = vpack.c.bf16 %v2840_v36, %v2840_v36  ;;  %v5546_v39 = vpop.f32.mrb[53].mxu1  ;;  %v5806_v36 = vld [vmem:[%s6972_s5 + $0x10] sm:$0xff]  }
 0xc41   : > { %v2843_v40 = vpop.f32.mrb[54].mxu1  ;;  %v5808_v39 = vld [vmem:[%s6973_s6 + $0x70] ss:$8 sps:$4 sm:$0xff]  }
 0xc42   : > { %v5547_v41 = vpop.f32.mrb[55].mxu1  ;;  %5553 = vmatmul.mubr.msk.bf16.vlgmr.msra.gmra.mrb[56].mxu1 %vm2296_vm15, %v2846_v38  ;;  %v5807_v38 = vld [vmem:[%s6972_s5 + $0x18] sm:$0x3f]   ;;  %v5813_v40 = vld [vmem:[%s6973_s6 + $0x84] ss:$8 sps:$4 sm:$0xff]   ;;  %s6977_s5 = scalar_lea.vmem [#allocation8], %s6539_s1 }
 0xc43   : > { %5557 = vmatpush3.bf16.msra.mxu1 %v5792_v37  ;;  %5560 = vmatprep.mubr.msk.bf16.mxu1 %vm6049_vm2, %v6397_v42  ;;  %v5810_v37 = vld [vmem:[%s6973_s6 + $0x74] ss:$8 sps:$4 sm:$0xff]   ;;  %v5811_v41 = vld [vmem:[%s6973_s6 + $0x80] ss:$8 sps:$4 sm:$0xff]  }
 0xc44   : > { %5558 = vmatprep.subr.bf16.mxu1 %v6397_v42 }
 0xc47   : > { %5559 = vmatpush3.bf16.msra.mxu1 %v5793_v43  ;;  %v5816_v43 = vld [vmem:[%s6973_s6 + $0x94] ss:$8 sps:$4 sm:$0xff]  }
 0xc48   : > { %5570 = vmatprep.subr.bf16.mxu1 %v6397_v42 }
 0xc4a   : > { %5561 = vmatmul.mubr.msk.bf16.vlgmr.msra.gmra.mrb[60].mxu1 %vm2296_vm15, %v2796_v44  ;;  %v5814_v44 = vld [vmem:[%s6973_s6 + $0x90] ss:$8 sps:$4 sm:$0xff]   ;;  %vm3789_vm15 = vcmask 1044544  }
 0xc4b   : > { %5572 = vmatprep.mubr.msk.bf16.mxu1 %vm6049_vm2, %v6397_v42 }
 0xd15   : > { %v2901_v45 = vpop.f32.mrb[56].mxu1 }
 0xd16   : > { %v5554_v0 = vpop.f32.mrb[57].mxu1 }
 0xd17   : > { %v2904_v46 = vpop.f32.mrb[58].mxu1  ;;  %v5817_v0 = vld [vmem:[%s6973_s6 + $0xa0] ss:$8 sps:$4 sm:$0xff]  }
 0xd18   : > { %v5555_v47 = vpop.f32.mrb[59].mxu1  ;;  %v5822_v46 = vld [vmem:[%s6973_s6 + $0xb4] ss:$8 sps:$4 sm:$0xff]  }
 0xd19   : > { %v5820_v47 = vld [vmem:[%s6973_s6 + $0xb0] ss:$8 sps:$4 sm:$0xff]  }
 0xd1d   : > { %v2956_v48 = vpop.f32.mrb[60].mxu1 }
 0xd1e   : > { %v2957_v50 = vadd.f32 %v2956_v48, %v2901_v45  ;;  %v5562_v52 = vpop.f32.mrb[61].mxu1  ;;  %v5819_v45 = vld [vmem:[%s6973_s6 + $0xa4] ss:$8 sps:$4 sm:$0xff]  }
 0xd1f   : > { %v2959_v53 = vpop.f32.mrb[62].mxu1  ;;  %v5825_v48 = vld [vmem:[%s6973_s6 + $0xc4] ss:$8 sps:$4 sm:$0xff]   ;;  %v5826_v52 = vld [vmem:[%s6973_s6 + $0xd0] ss:$8 sps:$4 sm:$0xff]  }
 0xd20   : > { %v2969_v54 = vadd.f32 %v4983_v49, %v2957_v50  ;;  %v5563_v55 = vpop.f32.mrb[63].mxu1  ;;  %v5823_v49 = vld [vmem:[%s6973_s6 + $0xc0] ss:$8 sps:$4 sm:$0xff]   ;;  %v5828_v50 = vld [vmem:[%s6973_s6 + $0xd4] ss:$8 sps:$4 sm:$0xff]  }
 0xd21   : > { %v5831_v53 = vld [vmem:[%s6973_s6 + $0x4] ss:$8 sps:$4 sm:$0xff]  }
 0xd22   : > { %v2970_v56 = vmax.f32 %v2969_v54, 0.0 }
 0xd24   : > { %v2971_v57 = vpack.c.bf16 %v2970_v56, %v2970_v56 }
 0xd26   : > { %v2984_v58 = vsel %vm1866_vm12, %v2971_v57, 0  ;;  %vm3781_vm12 = vcmask 850945  }
 0xd27   : > { %5565 = vmatpush3.bf16.msra.mxu0 %v2984_v58  ;;  %5571 = vmatpush3.bf16.msra.mxu1 %v2984_v58 }
 0xd28   : > { %5576 = vmatprep.subr.bf16.mxu0 %v6397_v42 }
 0xd2a   : > { %5573 = vmatmul.mubr.msk.bf16.vlgmr.msra.gmra.mrb[64].mxu1 %vm2979_vm6, %v5794_v59  ;;  %5567 = vmatmul.mubr.msk.bf16.vlgmr.msra.gmra.mrb[48].mxu0 %vm2979_vm6, %v5795_v60 }
 0xd2b   : > { %5577 = vmatpush3.bf16.msra.mxu0 %v5796_v61  ;;  %5584 = vmatprep.mubr.msk.bf16.mxu0 %vm6049_vm2, %v6397_v42 }
 0xd2c   : > { %5578 = vmatprep.subr.bf16.mxu0 %v6397_v42 }
 0xd2f   : > { %5579 = vmatpush3.bf16.msra.mxu0 %v5797_v62 }
 0xd30   : > { %5580 = vmatprep.subr.bf16.mxu0 %v6397_v42 }
 0xd33   : > { %5581 = vmatpush3.bf16.msra.mxu0 %v5798_v63 }
 0xd34   : > { %5582 = vmatprep.subr.bf16.mxu0 %v6397_v42 }
 0xd37   : > { %5583 = vmatpush3.bf16.msra.mxu0 %v5799_v2 }
 0xd38   : > { %5588 = vmatprep.subr.bf16.mxu0 %v6397_v42 }
 0xdfd   : > { %v3081_v4 = vpop.f32.mrb[64].mxu1  ;;  %v3020_v5 = vpop.f32.mrb[48].mxu0 }
 0xdfe   : > { %v5574_v6 = vpop.f32.mrb[65].mxu1  ;;  %v5568_v7 = vpop.f32.mrb[49].mxu0 }
 0xdff   : > { %v3084_v8 = vpop.f32.mrb[66].mxu1  ;;  %v3023_v10 = vpop.f32.mrb[50].mxu0  ;;  %v5837_v6 = vld [vmem:[%s6973_s6 + $0x24] ss:$8 sps:$4 sm:$0xff]   ;;  %v5835_v7 = vld [vmem:[%s6973_s6 + $0x20] ss:$8 sps:$4 sm:$0xff]  }
 0xe00   : > { %v3088_v11 = vpack.c.bf16 %v3084_v8, %v3081_v4  ;;  %v5575_v12 = vpop.f32.mrb[67].mxu1  ;;  %v3027_v13 = vpack.c.bf16 %v3023_v10, %v3020_v5  ;;  %v5569_v14 = vpop.f32.mrb[51].mxu0  ;;  %v5834_v5 = vld [vmem:[%s6973_s6 + $0x14] ss:$8 sps:$4 sm:$0xff]   ;;  %v5843_v10 = vld [vmem:[%s6973_s6 + $0x44] ss:$8 sps:$4 sm:$0xff]  }
 0xe01   : > { %v5840_v8 = vld [vmem:[%s6973_s6 + $0x34] ss:$8 sps:$4 sm:$0xff]   ;;  %v5849_v14 = vld [vmem:[%s6973_s6 + $0x64] ss:$8 sps:$4 sm:$0xff]  }
 0xe02   : > { %5585 = vmatmul.mubr.msk.bf16.vlgmr.msra.gmra.mrb[52].mxu0 %vm3122_vm7, %v3088_v11  ;;  %v5841_v11 = vld [vmem:[%s6973_s6 + $0x40] ss:$8 sps:$4 sm:$0xff]   ;;  %v5846_v12 = vld [vmem:[%s6973_s6 + $0x54] ss:$8 sps:$4 sm:$0xff]  }
 0xe03   : > { %5589 = vmatpush3.bf16.msra.mxu0 %v5800_v9  ;;  %5596 = vmatprep.mubr.msk.bf16.mxu0 %vm6049_vm2, %v6397_v42  ;;  %vm3270_vm2 = vcmask 113664   ;;  %v5838_v9 = vld [vmem:[%s6973_s6 + $0x30] ss:$8 sps:$4 sm:$0xff]  }
 0xe04   : > { %5590 = vmatprep.subr.bf16.mxu0 %v6397_v42  ;;  %5602 = vmatprep.mubr.msk.bf16.mxu1 %vm3270_vm2, %v5804_v22 }
 0xe07   : > { %5591 = vmatpush3.bf16.msra.mxu0 %v5801_v15  ;;  %v5847_v15 = vld [vmem:[%s6973_s6 + $0x60] ss:$8 sps:$4 sm:$0xff]  }
 0xe08   : > { %5592 = vmatprep.subr.bf16.mxu0 %v6397_v42 }
 0xe0b   : > { %5593 = vmatpush3.bf16.msra.mxu0 %v5802_v16 }
 0xe0c   : > { %5594 = vmatprep.subr.bf16.mxu0 %v6397_v42  ;;  %v5832_v42 = vld [vmem:[%s6973_s6 + $0x10] ss:$8 sps:$4 sm:$0xff]  }
 0xe0f   : > { %5595 = vmatpush3.bf16.msra.mxu0 %v5803_v17 }
 0xe12   : > { %5597 = vmatmul.mubr.msk.bf16.vlgmr.msra.gmra.mrb[52].mxu0 %vm3122_vm7, %v3027_v13  ;;  %v5844_v13 = vld [vmem:[%s6973_s6 + $0x50] ss:$8 sps:$4 sm:$0xff]   ;;  %s4637_s6 = sshll.u32 %s6977_s5, 4  ;;  %s4638_s6 = int_to_ptr.vmem [resolvable:$true] %s4637_s6 }
 0xe13   : > { %3863 = vmatprep.mubr.bf16.mxu0 %v6052_v1  ;;  %s5921_s12 = scalar_lea.vmem %s4638_s6, 16  ;;  %p5928_p0 = scmp.lt.s32.totalorder %s4638_s6, %s5926_s14 }
 0xe14   : > { %p5922_p11 = scmp.ne.s32.totalorder %s4638_s6, %s5921_s12  ;;  %p5929_p1 = scmp.lt.s32.totalorder %s5927_s17, %s5921_s12 }
 0xe16   : > { %p5923_p12 = pnand %p5922_p11, %p6257_p5  ;;  %p5930_p2 = por %p5929_p1, %p5928_p0 }
 0xe18   : > { %p5924_p13 = pneg %p5923_p12 }
 0xe1a   : > { %p5931_p3 = pnand %p5930_p2, %p5924_p13 }
 0xee5   : > { %v3228_v18 = vpop.f32.mrb[52].mxu0 }
 0xee6   : > { %3235 = vst [vmem:[#allocation5] sm:$0xff] %v3228_v18  ;;  %v5598_v19 = vpop.f32.mrb[53].mxu0 }
 0xee7   : > { %v3231_v20 = vpop.f32.mrb[54].mxu0 }
 0xee8   : > { %3236 = vst [vmem:[#allocation5 + $0x8] sm:$0xff] %v3231_v20  ;;  %v5599_v21 = vpop.f32.mrb[55].mxu0 }
 0xeef   : > { %v3237_v24 = vld [vmem:[#allocation5 + $0x1] sm:$0xff]  ;;  %v3238_v26 = vld [vmem:[#allocation5 + $0x9] sm:$0x3f] }
 0xef0   : > { %v3248_v27 = vadd.f32 %v3246_v23, %v3237_v24  ;;  %v3249_v29 = vadd.f32 %v3246_v23, %v3238_v26 }
 0xef2   : > { %v3250_v30 = vmax.f32 %v3248_v27, 0.0  ;;  %v3251_v31 = vmax.f32 %v3249_v29, 0.0 }
 0xef4   : > { %v3252_v32 = vpack.c.bf16 %v3251_v31, %v3250_v30 }
 0xef6   : > { %3268 = vrot.lane.b32.xlu1 %v3252_v32, %s6056_s8  ;;  %s6974_s8 = sld [smem:[#allocation35_spill]] }
 0xefc   : > { %v3691_v16 = vld [vmem:[%s6974_s8] sm:$0x3]  ;;  %s6975_s8 = sld [smem:[#allocation37_spill]] }
 0xefd   : > { %v3696_v17 = vrot.slane %v3691_v16, %v2551_v51  ;;  %v3700_v18 = vrot.slane %v3691_v16, %v6515_v28  ;;  %v5920_v51 = vld [vmem:[#allocation6] sm:$0xff] }
 0xefe   : > { %3727 = vst.msk [vmem:[#allocation6 + $0x38] sm:$0x3f] %vm3726_vm10, %v5920_v51 }
 0xf02   : > { %v5853_v51 = vld [vmem:[%s6975_s8 + $0x78] sm:$0xff]  }
 0xf68   : > { %v3269_v33 = vpop.permute.xlu1 %3268 }
 0xf69   : > { %5624 = vmatprep.subr.msk.bf16.mxu1 %vm1016_vm5, %v3269_v33  ;;  %v3278_v34 = vsel %vm1016_vm5, %v3269_v33, 0 }
 0xf6a   : > { %5601 = vmatpush3.bf16.msra.mxu1 %v3278_v34 }
 0xf6b   : > { %5625 = vmatprep.subr.msk.bf16.mxu1 %vm1016_vm5, %v3269_v33 }
 0xf6d   : > { %5603 = vmatmul.mubr.msk.bf16.vlgmr.msra.gmra.mrb[68].mxu1 %vm3270_vm2, %v5805_v35 }
 0xf6e   : > { %5607 = vmatpush3.bf16.msra.mxu1 %v3278_v34  ;;  %5608 = vmatprep.mubr.msk.bf16.mxu1 %vm3270_vm2, %v5806_v36 }
 0xf6f   : > { %3509 = vmatprep.subr.bf16.mxu1 %v5810_v37 }
 0xf75   : > { %5609 = vmatmul.mubr.msk.bf16.vlgmr.msra.gmra.mrb[72].mxu1 %vm3270_vm2, %v5807_v38 }
 0xf76   : > { %3510 = vmatpush1.bf16.msra.mxu1 %v5808_v39  ;;  %3541 = vmatprep.mubr.bf16.mxu1 %v6052_v1 }
 0xf77   : > { %3511 = vmatprep.subr.bf16.mxu1 %v5813_v40 }
 0xf7a   : > { %3512 = vmatpush1.bf16.msra.mxu1 %v5811_v41 }
 0xf7b   : > { %3513 = vmatprep.subr.bf16.mxu1 %v5816_v43 }
 0xf7e   : > { %3514 = vmatpush1.bf16.msra.mxu1 %v5814_v44 }
 0xf7f   : > { %3515 = vmatprep.subr.bf16.mxu1 %v5819_v45 }
 0xf82   : > { %3516 = vmatpush1.bf16.msra.mxu1 %v5817_v0 }
 0xf83   : > { %3517 = vmatprep.subr.bf16.mxu1 %v5822_v46 }
 0xf86   : > { %3518 = vmatpush1.bf16.msra.mxu1 %v5820_v47 }
 0xf87   : > { %3519 = vmatprep.subr.bf16.mxu1 %v5825_v48 }
 0xf8a   : > { %3520 = vmatpush1.bf16.msra.mxu1 %v5823_v49 }
 0xf8b   : > { %3521 = vmatprep.subr.bf16.mxu1 %v5828_v50 }
 0xf8e   : > { %3522 = vmatpush1.bf16.msra.mxu1 %v5826_v52 }
 0xf8f   : > { %3638 = vmatprep.subr.bf16.mxu1 %v5831_v53 }
0x1040   : > { %v5604_v54 = vpop.f32.mrb[68].mxu1 }
0x1041   : > { %v3314_v55 = vpop.f32.mrb[69].mxu1 }
0x1042   : > { %v5605_v56 = vpop.f32.mrb[70].mxu1 }
0x1043   : > { %v3330_v57 = vpack.c.bf16 %v5605_v56, %v5604_v54  ;;  %v3317_v58 = vpop.f32.mrb[71].mxu1 }
0x1044   : > { %v3329_v59 = vpack.c.bf16 %v3317_v58, %v3314_v55  ;;  %v5869_v58 = vld [vmem:[%s6975_s8] sm:$0xff]  }
0x1048   : > { %v5610_v60 = vpop.f32.mrb[72].mxu1 }
0x1049   : > { %v3400_v61 = vpop.f32.mrb[73].mxu1 }
0x104a   : > { %v5611_v62 = vpop.f32.mrb[74].mxu1 }
0x104b   : > { %v3416_v63 = vpack.c.bf16 %v5611_v62, %v5610_v60  ;;  %v3403_v2 = vpop.f32.mrb[75].mxu1  ;;  %v5871_v60 = vld [vmem:[%s6975_s8 + $0x10] sm:$0xff]   ;;  %v5873_v62 = vld [vmem:[%s6975_s8 + $0x20] sm:$0xff]  }
0x104c   : > { %v3415_v4 = vpack.c.bf16 %v3403_v2, %v3400_v61  ;;  %v5872_v61 = vld [vmem:[%s6975_s8 + $0x18] sm:$0xff]   ;;  %v5875_v2 = vld [vmem:[%s6975_s8 + $0x30] sm:$0xff]  }
0x104e   : > { %5049 = vmatmul.mubr.msk.bf16.vlgmr.msra.gmra.mrb[76].mxu1 %vm3502_vm8, %v3415_v4 }
0x104f   : > { %3639 = vmatpush1.bf16.msra.mxu1 %v5829_v3  ;;  %3551 = vmatprep.mubr.bf16.mxu1 %v6052_v1 }
0x1050   : > { %3640 = vmatprep.subr.bf16.mxu1 %v5834_v5 }
0x1053   : > { %3641 = vmatpush1.bf16.msra.mxu1 %v5832_v42  ;;  %v5876_v42 = vld [vmem:[%s6975_s8 + $0x38] sm:$0xff]  }
0x1054   : > { %3642 = vmatprep.subr.bf16.mxu1 %v5837_v6 }
0x1056   : > { %5050 = vmatmul.mubr.msk.bf16.gmra.mrb[80].mxu1 %vm3502_vm8, %v3416_v63  ;;  %v5874_v63 = vld [vmem:[%s6975_s8 + $0x28] sm:$0xff]  }
0x1057   : > { %3643 = vmatpush1.bf16.msra.mxu1 %v5835_v7  ;;  %3670 = vmatprep.mubr.bf16.mxu1 %v6052_v1 }
0x1058   : > { %3644 = vmatprep.subr.bf16.mxu1 %v5840_v8 }
0x105b   : > { %3645 = vmatpush1.bf16.msra.mxu1 %v5838_v9  ;;  %v5877_v9 = vld [vmem:[%s6975_s8 + $0x40] sm:$0xff]  }
0x105c   : > { %3646 = vmatprep.subr.bf16.mxu1 %v5843_v10 }
0x105f   : > { %3647 = vmatpush1.bf16.msra.mxu1 %v5841_v11 }
0x1060   : > { %3648 = vmatprep.subr.bf16.mxu1 %v5846_v12  ;;  %v5878_v12 = vld [vmem:[%s6975_s8 + $0x48] sm:$0xff]  }
0x1063   : > { %3649 = vmatpush1.bf16.msra.mxu1 %v5844_v13 }
0x1064   : > { %3650 = vmatprep.subr.bf16.mxu1 %v5849_v14 }
0x1067   : > { %3651 = vmatpush1.bf16.msra.mxu1 %v5847_v15 }
0x1068   : > { %4268 = vmatprep.subr.bf16.mxu1 %v6052_v1 }
0x106a   : > { %5065 = vmatmul.mubr.msk.bf16.vlgmr.msra.gmra.mrb[76].mxu1 %vm3502_vm8, %v3329_v59  ;;  %v5870_v59 = vld [vmem:[%s6975_s8 + $0x8] sm:$0xff]  }
0x106b   : > { %3680 = vmatprep.mubr.bf16.mxu1 %v6052_v1  ;;  %4269 = vmatpush1.bf16.msra.mxu1 %v5869_v58 }
0x106c   : > { %4270 = vmatprep.subr.bf16.mxu1 %v6052_v1 }
0x106f   : > { %4271 = vmatpush1.bf16.msra.mxu1 %v5870_v59 }
0x1070   : > { %4272 = vmatprep.subr.bf16.mxu1 %v6052_v1 }
0x1072   : > { %5066 = vmatmul.mubr.msk.bf16.gmra.mrb[80].mxu1 %vm3502_vm8, %v3330_v57 }
0x1073   : > { %4273 = vmatpush1.bf16.msra.mxu1 %v5871_v60 }
0x1074   : > { %4274 = vmatprep.subr.bf16.mxu1 %v6052_v1 }
0x1077   : > { %4275 = vmatpush1.bf16.msra.mxu1 %v5872_v61 }
0x1078   : > { %4276 = vmatprep.subr.bf16.mxu1 %v6052_v1 }
0x107b   : > { %4277 = vmatpush1.bf16.msra.mxu1 %v5873_v62 }
0x107c   : > { %4278 = vmatprep.subr.bf16.mxu1 %v6052_v1 }
0x107f   : > { %4279 = vmatpush1.bf16.msra.mxu1 %v5874_v63 }
0x1080   : > { %4280 = vmatprep.subr.bf16.mxu1 %v6052_v1 }
0x1083   : > { %4281 = vmatpush1.bf16.msra.mxu1 %v5875_v2 }
0x1084   : > { %4282 = vmatprep.subr.bf16.mxu1 %v6052_v1 }
0x1087   : > { %4283 = vmatpush1.bf16.msra.mxu1 %v5876_v42 }
0x1088   : > { %4284 = vmatprep.subr.bf16.mxu1 %v6052_v1 }
0x108b   : > { %4285 = vmatpush1.bf16.msra.mxu1 %v5877_v9 }
0x108c   : > { %4286 = vmatprep.subr.bf16.mxu1 %v6052_v1 }
0x108f   : > { %4287 = vmatpush1.bf16.msra.mxu1 %v5878_v12 }
0x1090   : > { %4288 = vmatprep.subr.bf16.mxu1 %v6052_v1 }
0x113d   : > { %v3672_v19 = vpop.f32.mrb[76].mxu1 }
0x113e   : > { %v3703_v20 = vadd.f32 %v3696_v17, %v3672_v19  ;;  %v3674_v21 = vpop.f32.mrb[77].mxu1  ;;  %v5879_v19 = vld [vmem:[%s6975_s8 + $0x50] sm:$0xff]  }
0x113f   : > { %v3704_v22 = vadd.f32 %v3700_v18, %v3674_v21  ;;  %v3676_v23 = vpop.f32.mrb[78].mxu1  ;;  %4289 = vmatpush1.bf16.msra.mxu1 %v5879_v19  ;;  %v5888_v19 = vld [vmem:[%s6975_s8 + $0x100] sm:$0xff]  }
0x1140   : > { %v3711_v24 = vmax.f32 %v3703_v20, 0.0  ;;  %v3705_v26 = vadd.f32 %v3696_v17, %v3676_v23  ;;  %v3678_v27 = vpop.f32.mrb[79].mxu1  ;;  %4290 = vmatprep.subr.bf16.mxu1 %v6052_v1 }
0x1141   : > { %v3712_v29 = vmax.f32 %v3704_v22, 0.0  ;;  %v3706_v30 = vadd.f32 %v3700_v18, %v3678_v27 }
0x1142   : > { %v3737_v31 = vrot.slane %v3711_v24, 7  ;;  %v3713_v32 = vmax.f32 %v3705_v26, 0.0  ;;  %v5880_v24 = vld [vmem:[%s6975_s8 + $0x58] sm:$0xff]  }
0x1143   : > { %v3738_v33 = vrot.slane %v3712_v29, 7  ;;  %v3714_v34 = vmax.f32 %v3706_v30, 0.0  ;;  %4291 = vmatpush1.bf16.msra.mxu1 %v5880_v24  ;;  %v5881_v30 = vld [vmem:[%s6975_s8 + $0x60] sm:$0xff]   ;;  %v5893_v24 = vld [vmem:[%s6975_s8 + $0x128] sm:$0xff]  }
0x1144   : > { %v3739_v35 = vrot.slane %v3713_v32, 7  ;;  %3751 = vrot.lane.b32.xlu0 %v3737_v31, %s6971_s3  ;;  %4292 = vmatprep.subr.bf16.mxu1 %v6052_v1 }
0x1145   : > { %v3741_v25 = vrot.slane %v3714_v34, 7  ;;  %3753 = vrot.lane.b32.xlu1 %v3738_v33, %s6971_s3  ;;  %v3682_v28 = vpop.f32.mrb[80].mxu1 }
0x1146   : > { %v3707_v36 = vadd.f32 %v3696_v17, %v3682_v28  ;;  %v3684_v37 = vpop.f32.mrb[81].mxu1  ;;  %v3740_v38 = vsel %vm3736_vm9, %v3737_v31, %v3739_v35 }
0x1147   : > { %v3708_v39 = vadd.f32 %v3700_v18, %v3684_v37  ;;  %v3686_v40 = vpop.f32.mrb[82].mxu1  ;;  %v3742_v41 = vsel %vm3736_vm9, %v3738_v33, %v3741_v25  ;;  %4293 = vmatpush1.bf16.msra.mxu1 %v5881_v30  ;;  %v5897_v30 = vld [vmem:[%s6975_s8 + $0x148] sm:$0xff]  }
0x1148   : > { %v3715_v43 = vmax.f32 %v3707_v36, 0.0  ;;  %v3709_v44 = vadd.f32 %v3696_v17, %v3686_v40  ;;  %3755 = vrot.lane.b32.xlu0 %v3740_v38, %s6971_s3  ;;  %v3688_v45 = vpop.f32.mrb[83].mxu1  ;;  %4294 = vmatprep.subr.bf16.mxu1 %v6052_v1  ;;  %v5854_v36 = vld [vmem:[%s6975_s8 + $0x80] sm:$0xff]   ;;  %v5856_v38 = vld [vmem:[%s6975_s8 + $0x88] sm:$0xff]   ;;  %v5858_v40 = vld [vmem:[%s6975_s8 + $0x98] sm:$0xff]  }
0x1149   : > { %v3716_v0 = vmax.f32 %v3708_v39, 0.0  ;;  %v3710_v46 = vadd.f32 %v3700_v18, %v3688_v45  ;;  %3757 = vrot.lane.b32.xlu1 %v3742_v41, %s6971_s3  ;;  %v5857_v39 = vld [vmem:[%s6975_s8 + $0x90] sm:$0xff]   ;;  %v5859_v41 = vld [vmem:[%s6975_s8 + $0xa0] sm:$0xff]   ;;  %v5862_v45 = vld [vmem:[%s6975_s8 + $0xb8] sm:$0xff]  }
0x114a   : > { %v3743_v47 = vrot.slane %v3715_v43, 7  ;;  %v3717_v48 = vmax.f32 %v3709_v44, 0.0  ;;  %v5860_v43 = vld [vmem:[%s6975_s8 + $0xa8] sm:$0xff]   ;;  %v5861_v44 = vld [vmem:[%s6975_s8 + $0xb0] sm:$0xff]  }
0x114b   : > { %v3745_v49 = vrot.slane %v3716_v0, 7  ;;  %v3718_v50 = vmax.f32 %v3710_v46, 0.0  ;;  %v5863_v0 = vld [vmem:[%s6975_s8 + $0xc0] sm:$0xff]   ;;  %v5864_v46 = vld [vmem:[%s6975_s8 + $0xc8] sm:$0xff]  }
0x114c   : > { %v3747_v52 = vrot.slane %v3717_v48, 7  ;;  %v3744_v53 = vsel %vm3736_vm9, %v3739_v35, %v3743_v47  ;;  %v5866_v48 = vld [vmem:[%s6975_s8 + $0xd8] sm:$0xff]  }
0x114d   : > { %v3749_v54 = vrot.slane %v3718_v50, 7  ;;  %3759 = vrot.lane.b32.xlu0 %v3744_v53, %s6971_s3  ;;  %v3746_v55 = vsel %vm3736_vm9, %v3741_v25, %v3745_v49  ;;  %v5868_v50 = vld [vmem:[%s6975_s8 + $0xe8] sm:$0xff]   ;;  %v5883_v53 = vld [vmem:[%s6975_s8 + $0x70] sm:$0xff]  }
0x114e   : > { %3761 = vrot.lane.b32.xlu1 %v3746_v55, %s6971_s3  ;;  %v3748_v56 = vsel %vm3736_vm9, %v3743_v47, %v3747_v52  ;;  %v5865_v47 = vld [vmem:[%s6975_s8 + $0xd0] sm:$0xff]   ;;  %v5882_v52 = vld [vmem:[%s6975_s8 + $0x68] sm:$0xff]  }
0x114f   : > { %v3750_v57 = vsel %vm3736_vm9, %v3745_v49, %v3749_v54  ;;  %v5867_v49 = vld [vmem:[%s6975_s8 + $0xe0] sm:$0xff]   ;;  %4295 = vmatpush1.bf16.msra.mxu1 %v5882_v52 }
0x1150   : > { %4296 = vmatprep.subr.bf16.mxu1 %v6052_v1 }
0x1151   : > { %3763 = vrot.lane.b32.xlu0 %v3748_v56, %s6971_s3 }
0x1152   : > { %3765 = vrot.lane.b32.xlu1 %v3750_v57, %s6971_s3  ;;  %s6976_s3 = sld [smem:[#allocation36_spill]] }
0x1153   : > { %4297 = vmatpush1.bf16.msra.mxu1 %v5883_v53 }
0x1158   : > { %v5850_v35 = vld [vmem:[%s6976_s3] sm:$0xff]   ;;  %v5851_v25 = vld [vmem:[%s6976_s3 + $0x8] sm:$0x3f]   ;;  %v5852_v28 = vld [vmem:[%s6976_s3 + $0x10] sm:$0xff]  }
0x1159   : > { %v5855_v37 = vld [vmem:[%s6976_s3 + $0x18] sm:$0x3f]  }
0x11b6   : > { %v3752_v3 = vpop.permute.xlu0 %3751 }
0x11b7   : > { %3780 = vst.msk [vmem:[#allocation6] sm:$0xfe] %vm3779_vm11, %v3752_v3  ;;  %v3754_v4 = vpop.permute.xlu1 %3753 }
0x11b8   : > { %v3767_v5 = vsel %vm2979_vm6, %v3752_v3, %v3754_v4 }
0x11b9   : > { %3782 = vst.msk [vmem:[#allocation6 + $0x8] sm:$0xfe] %vm3781_vm12, %v3767_v5 }
0x11ba   : > { %v3756_v6 = vpop.permute.xlu0 %3755 }
0x11bb   : > { %3784 = vst.msk [vmem:[#allocation6 + $0x10] sm:$0xff] %vm3783_vm13, %v3756_v6  ;;  %v3758_v7 = vpop.permute.xlu1 %3757 }
0x11bc   : > { %v3768_v8 = vsel %vm2979_vm6, %v3756_v6, %v3758_v7 }
0x11bd   : > { %3786 = vst.msk [vmem:[#allocation6 + $0x18] sm:$0xff] %vm3785_vm14, %v3768_v8 }
0x11be   : > { %v3793_v22 = vld [vmem:[#allocation6] sm:$0xff] }
0x11bf   : > { %v3760_v10 = vpop.permute.xlu0 %3759 }
0x11c0   : > { %3787 = vst.msk [vmem:[#allocation6 + $0x20] sm:$0xff] %vm3783_vm13, %v3760_v10  ;;  %v3762_v11 = vpop.permute.xlu1 %3761  ;;  %v3794_v17 = vld [vmem:[#allocation6 + $0x8] sm:$0xff] }
0x11c1   : > { %v3769_v13 = vsel %vm2979_vm6, %v3760_v10, %v3762_v11 }
0x11c2   : > { %3788 = vst.msk [vmem:[#allocation6 + $0x28] sm:$0xff] %vm3785_vm14, %v3769_v13  ;;  %v3795_v15 = vld [vmem:[#allocation6 + $0x10] sm:$0xff] }
0x11c3   : > { %v3764_v14 = vpop.permute.xlu0 %3763  ;;  %v6709_v23 = vpack.c.bf16 %v3795_v15, %v3793_v22  ;;  %v5884_v15 = vld [vmem:[%s6976_s3 + $0x20] sm:$0xff]   ;;  %v5891_v22 = vld [vmem:[%s6975_s8 + $0x118] sm:$0xff]  }
0x11c4   : > { %3790 = vst.msk [vmem:[#allocation6 + $0x30] sm:$0x1f] %vm3789_vm15, %v3764_v14  ;;  %v3766_v16 = vpop.permute.xlu1 %3765  ;;  %v3796_v18 = vld [vmem:[#allocation6 + $0x18] sm:$0xff] }
0x11c5   : > { %v3770_v20 = vsel %vm2979_vm6, %v3764_v14, %v3766_v16  ;;  %v6706_v21 = vpack.c.bf16 %v3796_v18, %v3794_v17  ;;  %v5886_v16 = vld [vmem:[%s6975_s8 + $0xf0] sm:$0xff]   ;;  %v5887_v17 = vld [vmem:[%s6975_s8 + $0xf8] sm:$0xff]   ;;  %v5885_v18 = vld [vmem:[%s6976_s3 + $0x28] sm:$0x3f]   ;;  %s5202_s3 = sshll.u32 %s6240_s0, 4 }
0x11c6   : > { %3792 = vst.msk [vmem:[#allocation6 + $0x38] sm:$0x1f] %vm3791_vm1, %v3770_v20  ;;  %v5889_v20 = vld [vmem:[%s6975_s8 + $0x108] sm:$0xff]  }
0x11c7   : > { %3831 = vmatprep.subr.bf16.mxu0 %v6706_v21  ;;  %v3797_v26 = vld [vmem:[#allocation6 + $0x20] sm:$0xff] }
0x11c8   : > { %3832 = vmatpush1.bf16.msra.mxu0 %v6709_v23 }
0x11c9   : > { %v3798_v31 = vld [vmem:[#allocation6 + $0x28] sm:$0xff] }
0x11cb   : > { %v3799_v27 = vld [vmem:[#allocation6 + $0x30] sm:$0x3f] }
0x11cc   : > { %v3803_v29 = vpack.c.bf16 %v3799_v27, %v3797_v26  ;;  %v5894_v26 = vld [vmem:[%s6975_s8 + $0x130] sm:$0xff]   ;;  %v5895_v27 = vld [vmem:[%s6975_s8 + $0x138] sm:$0xff]  }
0x11cd   : > { %v3800_v32 = vld [vmem:[#allocation6 + $0x38] sm:$0x3f] }
0x11ce   : > { %v6717_v33 = vpack.c.bf16 %v3800_v32, %v3798_v31  ;;  %v6722_v34 = vsel %vm1016_vm5, %v3803_v29, 0  ;;  %v5896_v29 = vld [vmem:[%s6975_s8 + $0x140] sm:$0xff]   ;;  %v5898_v31 = vld [vmem:[%s6975_s8 + $0x150] sm:$0xff]   ;;  %v5899_v32 = vld [vmem:[%s6975_s8 + $0x158] sm:$0xff]  }
0x11d0   : > { %5069 = vmatprep.subr.msk.bf16.mxu0 %vm1016_vm5, %v6717_v33 }
0x11d1   : > { %3834 = vmatpush1.bf16.msra.mxu0 %v6722_v34 }
0x11d2   : > { %3939 = vmatprep.subr.bf16.mxu0 %v6706_v21 }
0x11d4   : > { %5070 = vmatmul.mubr.msk.bf16.vlgmr.msra.gmra.mrb[56].mxu0 %vm968_vm0, %v5850_v35 }
0x11d5   : > { %3940 = vmatpush1.bf16.msra.mxu0 %v6709_v23  ;;  %3873 = vmatprep.mubr.bf16.mxu0 %v6052_v1 }
0x11d6   : > { %5078 = vmatprep.subr.msk.bf16.mxu0 %vm1016_vm5, %v6717_v33 }
0x11d9   : > { %3942 = vmatpush1.bf16.msra.mxu0 %v6722_v34 }
0x11da   : > { %4123 = vmatprep.subr.bf16.mxu0 %v6052_v1 }
0x11dc   : > { %5071 = vmatmul.mubr.msk.bf16.gmra.mrb[60].mxu0 %vm968_vm0, %v5851_v25 }
0x11dd   : > { %3971 = vmatprep.mubr.bf16.mxu0 %v6052_v1 }
0x11e4   : > { %5079 = vmatmul.mubr.msk.bf16.vlgmr.msra.gmra.mrb[64].mxu0 %vm968_vm0, %v5852_v28 }
0x11e5   : > { %4124 = vmatpush1.bf16.msra.mxu0 %v5853_v51  ;;  %3981 = vmatprep.mubr.bf16.mxu0 %v6052_v1 }
0x11e6   : > { %4125 = vmatprep.subr.bf16.mxu0 %v6052_v1 }
0x11e9   : > { %4126 = vmatpush1.bf16.msra.mxu0 %v5854_v36 }
0x11ea   : > { %4127 = vmatprep.subr.bf16.mxu0 %v6052_v1 }
0x11ec   : > { %5080 = vmatmul.mubr.msk.bf16.gmra.mrb[68].mxu0 %vm968_vm0, %v5855_v37 }
0x11ed   : > { %4128 = vmatpush1.bf16.msra.mxu0 %v5856_v38 }
0x11ee   : > { %4129 = vmatprep.subr.bf16.mxu0 %v6052_v1 }
0x11f1   : > { %4130 = vmatpush1.bf16.msra.mxu0 %v5857_v39 }
0x11f2   : > { %4131 = vmatprep.subr.bf16.mxu0 %v6052_v1 }
0x11f5   : > { %4132 = vmatpush1.bf16.msra.mxu0 %v5858_v40 }
0x11f6   : > { %4133 = vmatprep.subr.bf16.mxu0 %v6052_v1 }
0x11f9   : > { %4134 = vmatpush1.bf16.msra.mxu0 %v5859_v41 }
0x11fa   : > { %4135 = vmatprep.subr.bf16.mxu0 %v6052_v1 }
0x11fd   : > { %4136 = vmatpush1.bf16.msra.mxu0 %v5860_v43 }
0x11fe   : > { %4137 = vmatprep.subr.bf16.mxu0 %v6052_v1 }
0x1201   : > { %4138 = vmatpush1.bf16.msra.mxu0 %v5861_v44 }
0x1202   : > { %4139 = vmatprep.subr.bf16.mxu0 %v6052_v1 }
0x1205   : > { %4140 = vmatpush1.bf16.msra.mxu0 %v5862_v45 }
0x1206   : > { %4141 = vmatprep.subr.bf16.mxu0 %v6052_v1 }
0x1209   : > { %4142 = vmatpush1.bf16.msra.mxu0 %v5863_v0 }
0x120a   : > { %4143 = vmatprep.subr.bf16.mxu0 %v6052_v1 }
0x120d   : > { %4144 = vmatpush1.bf16.msra.mxu0 %v5864_v46 }
0x120e   : > { %4145 = vmatprep.subr.bf16.mxu0 %v6052_v1 }
0x1211   : > { %4146 = vmatpush1.bf16.msra.mxu0 %v5865_v47 }
0x1212   : > { %4147 = vmatprep.subr.bf16.mxu0 %v6052_v1 }
0x1215   : > { %4148 = vmatpush1.bf16.msra.mxu0 %v5866_v48 }
0x1216   : > { %4149 = vmatprep.subr.bf16.mxu0 %v6052_v1 }
0x1219   : > { %4150 = vmatpush1.bf16.msra.mxu0 %v5867_v49 }
0x121a   : > { %4151 = vmatprep.subr.bf16.mxu0 %v6052_v1 }
0x121d   : > { %4152 = vmatpush1.bf16.msra.mxu0 %v5868_v50 }
0x121e   : > { %4338 = vmatprep.subr.bf16.mxu0 %v6706_v21  ;;  %v5890_v21 = vld [vmem:[%s6975_s8 + $0x110] sm:$0xff]  }
0x12a7   : > { %v3865_v54 = vpop.f32.mrb[56].mxu0 }
0x12a8   : > { %v3867_v55 = vpop.f32.mrb[57].mxu0 }
0x12a9   : > { %v3869_v56 = vpop.f32.mrb[58].mxu0 }
0x12aa   : > { %v3884_v57 = vpack.c.bf16 %v3869_v56, %v3865_v54  ;;  %v3871_v58 = vpop.f32.mrb[59].mxu0 }
0x12ab   : > { %v3885_v59 = vpack.c.bf16 %v3871_v58, %v3867_v55 }
0x12ad   : > { %5143 = vmatprep.mubr.msk.bf16.mxu1 %vm3502_vm8, %v3885_v59 }
0x12ae   : > { %4301 = vmatmul.mubr.bf16.vlgmr.msra.gmra.mrb[84].mxu1 %v3884_v57 }
0x12af   : > { %v3875_v60 = vpop.f32.mrb[60].mxu0 }
0x12b0   : > { %v3877_v61 = vpop.f32.mrb[61].mxu0 }
0x12b1   : > { %v3879_v62 = vpop.f32.mrb[62].mxu0 }
0x12b2   : > { %v3886_v63 = vpack.c.bf16 %v3879_v62, %v3875_v60  ;;  %v3881_v2 = vpop.f32.mrb[63].mxu0 }
0x12b3   : > { %v3887_v3 = vpack.c.bf16 %v3881_v2, %v3877_v61 }
0x12b5   : > { %5144 = vmatprep.mubr.msk.bf16.mxu1 %vm3502_vm8, %v3887_v3 }
0x12b6   : > { %4309 = vmatmul.mubr.bf16.gmra.mrb[88].mxu1 %v3886_v63 }
0x12b7   : > { %v3973_v4 = vpop.f32.mrb[64].mxu0 }
0x12b8   : > { %v3975_v5 = vpop.f32.mrb[65].mxu0 }
0x12b9   : > { %v3977_v42 = vpop.f32.mrb[66].mxu0 }
0x12ba   : > { %v3992_v6 = vpack.c.bf16 %v3977_v42, %v3973_v4  ;;  %v3979_v7 = vpop.f32.mrb[67].mxu0 }
0x12bb   : > { %v3993_v8 = vpack.c.bf16 %v3979_v7, %v3975_v5 }
0x12bd   : > { %5126 = vmatprep.mubr.msk.bf16.mxu0 %vm3502_vm8, %v3993_v8 }
0x12be   : > { %4156 = vmatmul.mubr.bf16.vlgmr.msra.gmra.mrb[72].mxu0 %v3992_v6 }
0x12bf   : > { %4339 = vmatpush1.bf16.msra.mxu0 %v6709_v23  ;;  %v3983_v9 = vpop.f32.mrb[68].mxu0  ;;  %v5892_v23 = vld [vmem:[%s6975_s8 + $0x120] sm:$0xff]  }
0x12c0   : > { %5151 = vmatprep.subr.msk.bf16.mxu0 %vm1016_vm5, %v6717_v33  ;;  %v3985_v10 = vpop.f32.mrb[69].mxu0  ;;  %v5900_v33 = vld [vmem:[%s6975_s8 + $0x160] sm:$0xff]   ;;  %s6836_s8 = scalar_lea.hbm %s6949_s4, %s5202_s3 }
0x12c1   : > { %v3987_v11 = vpop.f32.mrb[70].mxu0 }
0x12c2   : > { %v3994_v12 = vpack.c.bf16 %v3987_v11, %v3983_v9  ;;  %v3989_v13 = vpop.f32.mrb[71].mxu0 }
0x12c3   : > { %v3995_v14 = vpack.c.bf16 %v3989_v13, %v3985_v10  ;;  %4341 = vmatpush1.bf16.msra.mxu0 %v6722_v34 }
0x12c4   : > { %4522 = vmatprep.subr.bf16.mxu0 %v6052_v1 }
0x12c5   : > { %5127 = vmatprep.mubr.msk.bf16.mxu0 %vm3502_vm8, %v3995_v14 }
0x12c6   : > { %4164 = vmatmul.mubr.bf16.gmra.mrb[76].mxu0 %v3994_v12 }
0x12c7   : > { %4370 = vmatprep.mubr.bf16.mxu0 %v6052_v1 }
0x12ce   : > { %5152 = vmatmul.mubr.msk.bf16.vlgmr.msra.gmra.mrb[80].mxu0 %vm968_vm0, %v5884_v15 }
0x12cf   : > { %4380 = vmatprep.mubr.bf16.mxu0 %v6052_v1  ;;  %4523 = vmatpush1.bf16.msra.mxu0 %v5886_v16 }
0x12d0   : > { %4524 = vmatprep.subr.bf16.mxu0 %v6052_v1 }
0x12d3   : > { %4525 = vmatpush1.bf16.msra.mxu0 %v5887_v17 }
0x12d4   : > { %4526 = vmatprep.subr.bf16.mxu0 %v6052_v1 }
0x12d6   : > { %5153 = vmatmul.mubr.msk.bf16.gmra.mrb[84].mxu0 %vm968_vm0, %v5885_v18 }
0x12d7   : > { %4527 = vmatpush1.bf16.msra.mxu0 %v5888_v19 }
0x12d8   : > { %4528 = vmatprep.subr.bf16.mxu0 %v6052_v1 }
0x12db   : > { %4529 = vmatpush1.bf16.msra.mxu0 %v5889_v20 }
0x12dc   : > { %4530 = vmatprep.subr.bf16.mxu0 %v6052_v1 }
0x12df   : > { %4531 = vmatpush1.bf16.msra.mxu0 %v5890_v21 }
0x12e0   : > { %4532 = vmatprep.subr.bf16.mxu0 %v6052_v1 }
0x12e3   : > { %4533 = vmatpush1.bf16.msra.mxu0 %v5891_v22 }
0x12e4   : > { %4534 = vmatprep.subr.bf16.mxu0 %v6052_v1 }
0x12e7   : > { %4535 = vmatpush1.bf16.msra.mxu0 %v5892_v23 }
0x12e8   : > { %4536 = vmatprep.subr.bf16.mxu0 %v6052_v1 }
0x12eb   : > { %4537 = vmatpush1.bf16.msra.mxu0 %v5893_v24 }
0x12ec   : > { %4538 = vmatprep.subr.bf16.mxu0 %v6052_v1 }
0x12ef   : > { %4539 = vmatpush1.bf16.msra.mxu0 %v5894_v26 }
0x12f0   : > { %4540 = vmatprep.subr.bf16.mxu0 %v6052_v1 }
0x12f3   : > { %4541 = vmatpush1.bf16.msra.mxu0 %v5895_v27 }
0x12f4   : > { %4542 = vmatprep.subr.bf16.mxu0 %v6052_v1 }
0x12f7   : > { %4543 = vmatpush1.bf16.msra.mxu0 %v5896_v29 }
0x12f8   : > { %4544 = vmatprep.subr.bf16.mxu0 %v6052_v1 }
0x12fb   : > { %4545 = vmatpush1.bf16.msra.mxu0 %v5897_v30 }
0x12fc   : > { %4546 = vmatprep.subr.bf16.mxu0 %v6052_v1 }
0x12ff   : > { %4547 = vmatpush1.bf16.msra.mxu0 %v5898_v31 }
0x1300   : > { %4548 = vmatprep.subr.bf16.mxu0 %v6052_v1 }
0x1303   : > { %4549 = vmatpush1.bf16.msra.mxu0 %v5899_v32 }
0x1304   : > { %4550 = vmatprep.subr.bf16.mxu0 %v6052_v1 }
0x1307   : > { %4551 = vmatpush1.bf16.msra.mxu0 %v5900_v33 }
0x1381   : > { %v4302_v34 = vpop.f32.mrb[84].mxu1 }
0x1382   : > { %v4304_v35 = vpop.f32.mrb[85].mxu1 }
0x1383   : > { %v4305_v25 = vpop.f32.mrb[86].mxu1 }
0x1384   : > { %v4307_v28 = vpop.f32.mrb[87].mxu1 }
0x1389   : > { %v4310_v51 = vpop.f32.mrb[88].mxu1 }
0x138a   : > { %v4312_v36 = vpop.f32.mrb[89].mxu1 }
0x138b   : > { %v4313_v37 = vpop.f32.mrb[90].mxu1 }
0x138c   : > { %v4315_v38 = vpop.f32.mrb[91].mxu1 }
0x1391   : > { %v4157_v39 = vpop.f32.mrb[72].mxu0 }
0x1392   : > { %v6820_v40 = vadd.f32 %v4302_v34, %v4157_v39  ;;  %v4159_v41 = vpop.f32.mrb[73].mxu0 }
0x1393   : > { %v4160_v43 = vpop.f32.mrb[74].mxu0 }
0x1394   : > { %v6822_v44 = vadd.f32 %v4305_v25, %v4160_v43  ;;  %v4162_v45 = vpop.f32.mrb[75].mxu0 }
0x1399   : > { %v4165_v0 = vpop.f32.mrb[76].mxu0 }
0x139a   : > { %v6824_v1 = vadd.f32 %v4310_v51, %v4165_v0  ;;  %v4167_v46 = vpop.f32.mrb[77].mxu0 }
0x139b   : > { %v4168_v47 = vpop.f32.mrb[78].mxu0 }
0x139c   : > { %v6826_v48 = vadd.f32 %v4313_v37, %v4168_v47  ;;  %v4170_v49 = vpop.f32.mrb[79].mxu0 }
0x13a1   : > { %v4372_v50 = vpop.f32.mrb[80].mxu0 }
0x13a2   : > { %v4374_v52 = vpop.f32.mrb[81].mxu0 }
0x13a3   : > { %v4376_v53 = vpop.f32.mrb[82].mxu0 }
0x13a4   : > { %v4391_v54 = vpack.c.bf16 %v4376_v53, %v4372_v50  ;;  %v4378_v55 = vpop.f32.mrb[83].mxu0 }
0x13a5   : > { %v4392_v56 = vpack.c.bf16 %v4378_v55, %v4374_v52 }
0x13a7   : > { %5199 = vmatprep.mubr.msk.bf16.mxu0 %vm3502_vm8, %v4392_v56 }
0x13a8   : > { %4555 = vmatmul.mubr.bf16.vlgmr.msra.gmra.mrb[88].mxu0 %v4391_v54 }
0x13a9   : > { %v4382_v57 = vpop.f32.mrb[84].mxu0 }
0x13aa   : > { %v4384_v58 = vpop.f32.mrb[85].mxu0 }
0x13ab   : > { %v4386_v59 = vpop.f32.mrb[86].mxu0 }
0x13ac   : > { %v4393_v60 = vpack.c.bf16 %v4386_v59, %v4382_v57  ;;  %v4388_v61 = vpop.f32.mrb[87].mxu0 }
0x13ad   : > { %v4394_v62 = vpack.c.bf16 %v4388_v61, %v4384_v58 }
0x13af   : > { %5200 = vmatprep.mubr.msk.bf16.mxu0 %vm3502_vm8, %v4394_v62 }
0x13b0   : > { %4563 = vmatmul.mubr.bf16.gmra.mrb[92].mxu0 %v4393_v60 }
0x13b1   : > { %5934 = shalt.err (!%p5931_p3)
}
0x13b2   : > { %s5935_s5 = scalar_lea.hbm %s6836_s8, 16  ;;  %s5939_s13 = scalar_lea.hbm %s6949_s4, 32 }
0x13b3   : > { %p5936_p4 = scmp.ne.s32.totalorder %s6836_s8, %s5935_s5  ;;  %p5940_p9 = scmp.lt.u32.totalorder %s6836_s8, %s6949_s4 }
0x13b4   : > { %p5941_p10 = scmp.lt.u32.totalorder %s5939_s13, %s5935_s5  ;;  %p5943_p12 = scmp.lt.u32.totalorder %s5935_s5, %s6836_s8 }
0x13b5   : > { %p5937_p7 = pnand %p5936_p4, %p6257_p5 }
0x13b6   : > { %p5942_p11 = por %p5941_p10, %p5940_p9 }
0x13b7   : > { %p5938_p8 = pneg %p5937_p7 }
0x13b8   : > { %p5944_p0 = por %p5943_p12, %p5942_p11 }
0x13ba   : > { %p5945_p13 = pnand %p5944_p0, %p5938_p8 }
0x13bc   : > { %5948 = shalt.err (!%p5945_p13)
}
0x13bd   : > { %5626 = dma.vmem_to_hbm [thread:$0]  (%p6257_p5), %s4638_s6, 16, %s6836_s8, %s4618_s9  }
0x13be   : > { %s6855_s17 = scalar_lea.hbm %s6217_s30, %s5202_s3  ;;  %s6978_s14 = scalar_lea.vmem [#allocation10], %s6539_s1 }
0x13bf   : > { %s4650_s12 = sshll.u32 %s6978_s14, 4  ;;  %s4622_s13 = scalar_lea.sflag [#allocation11], %s6539_s1  ;;  %s4651_s12 = int_to_ptr.vmem [resolvable:$true] %s4650_s12 }
0x13c0   : > { %s5949_s5 = scalar_lea.vmem %s4651_s12, 16  ;;  %s6058_s4 = smov [#allocation10]  }
0x13c1   : > { %p5950_p1 = scmp.ne.s32.totalorder %s4651_s12, %s5949_s5  ;;  %s5953_s19 = sshll.u32 %s6058_s4, 4  ;;  %s5954_s19 = int_to_ptr.vmem [resolvable:$false] %s5953_s19 }
0x13c2   : > { %s5955_s21 = scalar_lea.vmem %s5954_s19, 32  ;;  %p5956_p4 = scmp.lt.s32.totalorder %s4651_s12, %s5954_s19 }
0x13c3   : > { %p5951_p2 = pnand %p5950_p1, %p6257_p5  ;;  %p5957_p7 = scmp.lt.s32.totalorder %s5955_s21, %s5949_s5 }
0x13c5   : > { %p5952_p3 = pneg %p5951_p2  ;;  %p5958_p8 = por %p5957_p7, %p5956_p4 }
0x13c7   : > { %p5959_p9 = pnand %p5958_p8, %p5952_p3 }
0x13c9   : > { %5962 = shalt.err (!%p5959_p9)
}
0x13ca   : > { %s5963_s9 = scalar_lea.hbm %s6855_s17, 16  ;;  %s5967_s4 = scalar_lea.hbm %s6217_s30, 32 }
0x13cb   : > { %p5964_p10 = scmp.ne.s32.totalorder %s6855_s17, %s5963_s9  ;;  %p5968_p0 = scmp.lt.u32.totalorder %s6855_s17, %s6217_s30 }
0x13cc   : > { %p5969_p13 = scmp.lt.u32.totalorder %s5967_s4, %s5963_s9  ;;  %p5971_p2 = scmp.lt.u32.totalorder %s5963_s9, %s6855_s17 }
0x13cd   : > { %p5965_p11 = pnand %p5964_p10, %p6257_p5 }
0x13ce   : > { %p5970_p1 = por %p5969_p13, %p5968_p0 }
0x13cf   : > { %p5966_p12 = pneg %p5965_p11 }
0x13d0   : > { %p5972_p4 = por %p5971_p2, %p5970_p1 }
0x13d2   : > { %p5973_p3 = pnand %p5972_p4, %p5966_p12 }
0x13d4   : > { %5976 = shalt.err (!%p5973_p3)
}
0x13d5   : > { %5627 = dma.vmem_to_hbm [thread:$0]  (%p6257_p5), %s4651_s12, 16, %s6855_s17, %s4622_s13   ;;  %v5201_v2 = vld [vmem:[%s6202_s20] ss:$0 sm:$0xff]  ;;  %vm4606_vm0 = vcmask 228352   ;;  %vm4610_vm5 = vcmask 224256  }
0x13d6   : > { %s6979_s21 = sshll.u32 %s6286_s11, 5 }
0x13d7   : > { %s966_s19 = scalar_lea.vmem %s6207_s27, %s6979_s21 }
0x147b   : > { %v4556_v63 = vpop.f32.mrb[88].mxu0 }
0x147c   : > { %v4571_v3 = vadd.f32 %v4556_v63, %v6820_v40  ;;  %v4558_v4 = vpop.f32.mrb[89].mxu0 }
0x147d   : > { %v4559_v5 = vpop.f32.mrb[90].mxu0 }
0x147e   : > { %v4582_v42 = vadd.f32 %v5201_v2, %v4571_v3  ;;  %v4572_v6 = vadd.f32 %v4559_v5, %v6822_v44  ;;  %v4561_v7 = vpop.f32.mrb[91].mxu0 }
0x1480   : > { %v4586_v8 = vsub.f32 0.0, %v4582_v42  ;;  %v4583_v9 = vadd.f32 %v5201_v2, %v4572_v6 }
0x1482   : > { %v4590_v10 = vmul.f32 1.442695, %v4586_v8  ;;  %v4587_v11 = vsub.f32 0.0, %v4583_v9 }
0x1483   : > { %v4564_v12 = vpop.f32.mrb[92].mxu0 }
0x1484   : > { %5903 = vpow2.f32 %v4590_v10  ;;  %v4592_v13 = vmul.f32 1.442695, %v4587_v11  ;;  %v4573_v14 = vadd.f32 %v4564_v12, %v6824_v1  ;;  %v4566_v15 = vpop.f32.mrb[93].mxu0 }
0x1485   : > { %v4567_v16 = vpop.f32.mrb[94].mxu0 }
0x1486   : > { %5905 = vpow2.f32 %v4592_v13  ;;  %v4584_v17 = vadd.f32 %v5201_v2, %v4573_v14  ;;  %v4574_v18 = vadd.f32 %v4567_v16, %v6826_v48  ;;  %v4569_v19 = vpop.f32.mrb[95].mxu0 }
0x1488   : > { %v4588_v20 = vsub.f32 0.0, %v4584_v17  ;;  %v4585_v21 = vadd.f32 %v5201_v2, %v4574_v18 }
0x148a   : > { %v4594_v22 = vmul.f32 1.442695, %v4588_v20  ;;  %v4589_v23 = vsub.f32 0.0, %v4585_v21 }
0x148c   : > { %5907 = vpow2.f32 %v4594_v22  ;;  %v4596_v24 = vmul.f32 1.442695, %v4589_v23 }
0x148e   : > { %v5904_v26 = vpop.eup %5903  ;;  %5909 = vpow2.f32 %v4596_v24 }
0x148f   : > { %v4598_v27 = vadd.f32 1.0, %v5904_v26 }
0x1490   : > { %v5906_v29 = vpop.eup %5905 }
0x1491   : > { %5911 = vrcp.f32 %v4598_v27  ;;  %v4599_v30 = vadd.f32 1.0, %v5906_v29 }
0x1493   : > { %5913 = vrcp.f32 %v4599_v30 }
0x1496   : > { %v5908_v31 = vpop.eup %5907 }
0x1497   : > { %v4600_v32 = vadd.f32 1.0, %v5908_v31 }
0x1498   : > { %v5910_v33 = vpop.eup %5909 }
0x1499   : > { %5915 = vrcp.f32 %v4600_v32  ;;  %v4601_v34 = vadd.f32 1.0, %v5910_v33 }
0x149b   : > { %v5912_v35 = vpop.eup %5911  ;;  %5917 = vrcp.f32 %v4601_v34 }
0x149c   : > { %4607 = vst.msk [vmem:[%s966_s19] sm:$0xff] %vm4606_vm0, %v5912_v35 }
0x149d   : > { %v5914_v25 = vpop.eup %5913 }
0x149e   : > { %4608 = vst.msk [vmem:[%s966_s19 + $0x8] sm:$0xff] %vm4606_vm0, %v5914_v25 }
0x14a3   : > { %v5916_v28 = vpop.eup %5915 }
0x14a4   : > { %4609 = vst.msk [vmem:[%s966_s19 + $0x10] sm:$0xff] %vm4606_vm0, %v5916_v28 }
0x14a5   : > { %v5918_v51 = vpop.eup %5917 }
0x14a6   : > { %4611 = vst.msk [vmem:[%s966_s19 + $0x18] sm:$0xf] %vm4610_vm5, %v5918_v51 }
0x14a7 PF: > { %p5637_p5 = scmp.ge.s32.totalorder %s6015_s22, 2  ;;  %s4670_s0 = sand.u32 1, %s6003_s15  }
0x14a8   : > { %s4671_s7 = scalar_lea.sflag [#allocation9], %s4670_s0 }
0x14a9   : > { %p5631_p7 = pnand %p5637_p5, %p6261_p6 }
0x14ab   : > { %5994 = dma.done.wait (!%p5631_p7), %s4671_s7, 16  }
0x14ac   : > { %5996 = vsyncadd (!%p5631_p7), %s4671_s7, 4294967280  ;;  %s4679_s11 = scalar_lea.sflag [#allocation11], %s4670_s0 }
0x14ad   : > { %5998 = dma.done.wait (!%p5631_p7), %s4679_s11, 16  }
0x14ae   : > { %6000 = vsyncadd (!%p5631_p7), %s4679_s11, 4294967280  ;;  %p75_p8 = scmp.ge.s32.totalorder %s6244_s26, 4   ;;  %s6980_s15 = smov %s6007_s16 }
0x14af   : > { %s6981_s16 = smov %s6011_s18  ;;  %s6982_s18 = smov %s6255_s2 }
0x14b0   : > { %s6983_s22 = smov %s6244_s26  ;;  %77 = sbr.rel (!%p75_p8) target bundleno = 68 (0x44), region = 251 }
0x14b7   :  { %4683 = vsyncpa [#allocation9], 1 }
0x14b8   :  { %4685 = vsyncpa [#allocation9 + $0x1], 1 }
0x14b9   :  { %4686 = vsyncpa [#allocation11], 1 }
0x14ba   :  { %4688 = vsyncpa [#allocation11 + $0x1], 1 }

</bundles_post_ra>
